<compile_context>
chip_gen: v7x
topology: tpu7x:2x2x1
jax: 0.10.0
libtpu: 0.0.40
codegen_flags: <defaults>
</compile_context>

<pallas_src>
import functools

import jax
import jax.numpy as jnp
from jax import lax
from jax.experimental import pallas as pl
from jax.experimental.pallas import tpu as pltpu


LANE = 128      # f32 vreg lane width
SUBLANE = 8     # f32 vreg sublane width


def _round_up(x, m):
    return ((x + m - 1) // m) * m


def _pick_time_chunk(seq_len, target=64):
    tc = min(seq_len, target)
    while seq_len % tc:
        tc -= 1
    return tc


def _pack_gate_cols(w, H, H_pad):
    """(rows, 4H) in PyTorch gate order [i, f, g, o] -> (rows, 4*H_pad) in
    order [i, f, o, g], each gate zero-padded into its own H_pad lane group."""
    i, f, g, o = (w[:, k * H:(k + 1) * H] for k in range(4))
    out = jnp.zeros((w.shape[0], 4 * H_pad), w.dtype)
    for slot, gate in enumerate((i, f, o, g)):
        out = out.at[:, slot * H_pad: slot * H_pad + H].set(gate)
    return out


# ----------------------------------------------------------------------------
# Fused kernel: per-time-chunk multi-layer LSTM recurrence + Linear projection
# ----------------------------------------------------------------------------
def fused_lstm_proj_kernel(*refs, num_layers, time_chunk, batch, hidden_pad,
                           unroll):
    """Ref layout (all VMEM):

      refs[0]                 x_ref    (Tc*B, D)      bf16 streamed input chunk
      refs[1 + 3*l + 0]       wih_l    (D_l, 4*Hp)    bf16, gate-packed
      refs[1 + 3*l + 1]       whh_l    (Hp, 4*Hp)     bf16, gate-packed
      refs[1 + 3*l + 2]       b_l      (1, 4*Hp)      f32  (b_ih + b_hh)
      refs[1 + 3*L + 0]       wproj    (Hp, O)        bf16
      refs[1 + 3*L + 1]       bproj    (1, O)         f32
      refs[1 + 3*L + 2]       out_ref  (Tc*B, O)      streamed output chunk
      refs[1 + 3*L + 3]       gx_ref   (Tc*B, 4*Hp)   scratch: hoisted x-gates
      refs[1 + 3*L + 4]       hseq_ref (Tc*B, Hp)     scratch: inter-layer h
      refs[1 + 3*L + 5]       h_ref    (L, B, Hp)     scratch: carried h state
      refs[1 + 3*L + 6]       c_ref    (L, B, Hp)     scratch: carried c state
    """
    B, Hp, Tc = batch, hidden_pad, time_chunk
    x_ref = refs[0]
    base = 1 + 3 * num_layers
    wproj_ref = refs[base + 0]
    bproj_ref = refs[base + 1]
    out_ref = refs[base + 2]
    gx_ref = refs[base + 3]
    hseq_ref = refs[base + 4]
    h_ref = refs[base + 5]
    c_ref = refs[base + 6]

    # Zero the carried recurrent state at the first time chunk.
    @pl.when(pl.program_id(0) == 0)
    def _():
        h_ref[...] = jnp.zeros_like(h_ref)
        c_ref[...] = jnp.zeros_like(c_ref)

    for l in range(num_layers):
        wih_ref = refs[1 + 3 * l + 0]
        whh_ref = refs[1 + 3 * l + 1]
        b_ref = refs[1 + 3 * l + 2]

        # Hoisted input projection + bias: one (Tc*B, D) @ (D, 4*Hp) bf16 MXU
        # matmul per layer per chunk instead of Tc tiny matmuls on the serial
        # path.  For l>0 the hseq read feeding gx happens strictly before the
        # step loop rewrites hseq (enforced by the data-dependency chain
        # hseq-read -> gx-write -> gx-read -> hseq-write).
        x_in = x_ref[...] if l == 0 else hseq_ref[...].astype(jnp.bfloat16)
        gx_ref[...] = (
            jnp.dot(x_in, wih_ref[...], preferred_element_type=jnp.float32)
            + b_ref[...]
        )

        whh = whh_ref[...]                        # (Hp, 4*Hp) bf16, resident
        h0 = h_ref[l].astype(jnp.bfloat16)        # carried state, prev chunk
        c0 = c_ref[l]                             # f32 cell state

        def step(t, carry, whh=whh):
            h, c = carry
            row = pl.multiple_of(t * B, B)        # sublane-aligned row offset
            gates = gx_ref[pl.ds(row, B), :] + jnp.dot(
                h, whh, preferred_element_type=jnp.float32)      # (B, 4*Hp)
            # Gate order [i, f, o, g]; each gate owns a full 128-lane group so
            # one sigmoid + one tanh cover all gates and every slice is
            # vreg-aligned.
            sig = jax.nn.sigmoid(gates[:, :3 * Hp])
            i_g = sig[:, 0 * Hp:1 * Hp]
            f_g = sig[:, 1 * Hp:2 * Hp]
            o_g = sig[:, 2 * Hp:3 * Hp]
            g_g = jnp.tanh(gates[:, 3 * Hp:4 * Hp])
            c_new = f_g * c + i_g * g_g
            h_f32 = o_g * jnp.tanh(c_new)
            hseq_ref[pl.ds(row, B), :] = h_f32    # aligned (8,128) f32 store
            return (h_f32.astype(jnp.bfloat16), c_new)

        h_fin, c_fin = lax.fori_loop(0, Tc, step, (h0, c0), unroll=unroll)
        h_ref[l] = h_fin.astype(jnp.float32)
        c_ref[l] = c_fin

    # Fused output projection over the whole chunk (O kept unpadded: the
    # output slab is memory-bound, so avoid 8x write amplification).
    out_ref[...] = (
        jnp.dot(hseq_ref[...].astype(jnp.bfloat16), wproj_ref[...],
                preferred_element_type=jnp.float32)
        + bproj_ref[...]
    ).astype(out_ref.dtype)


# ----------------------------------------------------------------------------
# Wrapper
# ----------------------------------------------------------------------------
def bilstm_dropout_unidir_forward(feat, params, *, time_chunk_target=64):
    """Inference forward of BiLSTM_Dropout_Unidir (dropout = identity in eval)."""
    T, B, D = feat.shape
    num_layers = len(params["lstm"])
    H = params["lstm"][0]["whh"].shape[0]
    O = params["proj_w"].shape[1]

    B_pad = _round_up(B, SUBLANE)     # fill vreg sublanes / MXU rows
    H_pad = _round_up(H, LANE)        # one 128-lane group per gate
    Tc = _pick_time_chunk(T, time_chunk_target)
    NC = T // Tc
    unroll = min(8, Tc)

    # Single pad + cast pass over the input (no zeros().at[].set() scatter).
    x2d = jnp.pad(feat, ((0, 0), (0, B_pad - B), (0, 0))).astype(jnp.bfloat16)
    x2d = x2d.reshape(T * B_pad, D)

    inputs = [x2d]
    in_specs = [pl.BlockSpec((Tc * B_pad, D), lambda c: (c, 0))]

    for l, layer in enumerate(params["lstm"]):
        wih = layer["wih"]
        whh = layer["whh"]
        bias = layer["bias"].reshape(1, 4 * H)
        if l > 0:
            # Layer l>0 consumes the H_pad-wide hidden buffer -> row-pad Wih.
            wih = jnp.pad(wih, ((0, H_pad - H), (0, 0)))
        wih_k = _pack_gate_cols(wih, H, H_pad).astype(jnp.bfloat16)
        whh_k = _pack_gate_cols(
            jnp.pad(whh, ((0, H_pad - H), (0, 0))), H, H_pad
        ).astype(jnp.bfloat16)
        b_k = _pack_gate_cols(bias, H, H_pad).astype(jnp.float32)
        inputs += [wih_k, whh_k, b_k]
        in_specs += [
            pl.BlockSpec(wih_k.shape, lambda c: (0, 0)),
            pl.BlockSpec(whh_k.shape, lambda c: (0, 0)),
            pl.BlockSpec(b_k.shape, lambda c: (0, 0)),
        ]

    wproj = jnp.pad(params["proj_w"], ((0, H_pad - H), (0, 0))).astype(jnp.bfloat16)
    bproj = params["proj_b"].reshape(1, O).astype(jnp.float32)
    inputs += [wproj, bproj]
    in_specs += [
        pl.BlockSpec(wproj.shape, lambda c: (0, 0)),
        pl.BlockSpec(bproj.shape, lambda c: (0, 0)),
    ]

    scratch_shapes = [
        pltpu.VMEM((Tc * B_pad, 4 * H_pad), jnp.float32),      # hoisted gates
        pltpu.VMEM((Tc * B_pad, H_pad), jnp.float32),          # inter-layer h
        pltpu.VMEM((num_layers, B_pad, H_pad), jnp.float32),   # carried h
        pltpu.VMEM((num_layers, B_pad, H_pad), jnp.float32),   # carried c
    ]

    # Scoped-VMEM budget: resident weights + double-buffered streamed chunks +
    # scratch, with headroom (default scoped limit is only 16/32 MiB).
    def _nbytes(a):
        return a.size * a.dtype.itemsize

    chunk_in = Tc * B_pad * D * 2            # bf16 x chunk
    chunk_out = Tc * B_pad * O * 4           # f32 out chunk
    weights = sum(_nbytes(a) for a in inputs[1:])
    scratch = (Tc * B_pad * 4 * H_pad * 4 + Tc * B_pad * H_pad * 4
               + 2 * num_layers * B_pad * H_pad * 4)
    vmem_bytes = 2 * (chunk_in + chunk_out) + weights + scratch
    vmem_limit = max(32 << 20, min(96 << 20, 2 * vmem_bytes + (8 << 20)))

    kernel = functools.partial(
        fused_lstm_proj_kernel,
        num_layers=num_layers, time_chunk=Tc, batch=B_pad,
        hidden_pad=H_pad, unroll=unroll,
    )

    out = pl.pallas_call(
        kernel,
        out_shape=jax.ShapeDtypeStruct((T * B_pad, O), jnp.float32),
        grid_spec=pltpu.PrefetchScalarGridSpec(
            num_scalar_prefetch=0,
            grid=(NC,),
            in_specs=in_specs,
            out_specs=pl.BlockSpec((Tc * B_pad, O), lambda c: (c, 0)),
            scratch_shapes=scratch_shapes,
        ),
        compiler_params=pltpu.CompilerParams(
            dimension_semantics=("arbitrary",),
            vmem_limit_bytes=vmem_limit,
        ),
    )(*inputs)

    return out.reshape(T, B_pad, O)[:, :B, :]


# ----------------------------------------------------------------------------
# Deterministic parameter init (PyTorch-style uniform(-1/sqrt(H), 1/sqrt(H)),
# PyTorch gate order [i, f, g, o])
# ----------------------------------------------------------------------------
def init_params(key, num_layers, in_dims, hidden_dims, out_dims):
    params = {"lstm": []}
    bound = 1.0 / jnp.sqrt(jnp.float32(hidden_dims))
    for l in range(num_layers):
        d_in = in_dims if l == 0 else hidden_dims
        key, k1, k2, k3, k4 = jax.random.split(key, 5)
        wih = jax.random.uniform(k1, (d_in, 4 * hidden_dims), jnp.float32,
                                 -bound, bound)
        whh = jax.random.uniform(k2, (hidden_dims, 4 * hidden_dims), jnp.float32,
                                 -bound, bound)
        b_ih = jax.random.uniform(k3, (4 * hidden_dims,), jnp.float32, -bound, bound)
        b_hh = jax.random.uniform(k4, (4 * hidden_dims,), jnp.float32, -bound, bound)
        params["lstm"].append({"wih": wih, "whh": whh, "bias": b_ih + b_hh})
    key, k5, k6 = jax.random.split(key, 3)
    params["proj_w"] = jax.random.uniform(k5, (hidden_dims, out_dims), jnp.float32,
                                          -bound, bound)
    params["proj_b"] = jax.random.uniform(k6, (out_dims,), jnp.float32,
                                          -bound, bound)
    return params


# ----------------------------------------------------------------------------
# Pure-JAX f32 reference (numerical sanity check)
# ----------------------------------------------------------------------------
def reference_forward(feat, params):
    def layer_ref(x, wih, whh, bias):
        H = whh.shape[0]

        def step(carry, x_t):
            h, c = carry
            g = x_t @ wih + h @ whh + bias
            i = jax.nn.sigmoid(g[:, 0 * H:1 * H])
            f = jax.nn.sigmoid(g[:, 1 * H:2 * H])
            gg = jnp.tanh(g[:, 2 * H:3 * H])
            o = jax.nn.sigmoid(g[:, 3 * H:4 * H])
            c = f * c + i * gg
            h = o * jnp.tanh(c)
            return (h, c), h

        B = x.shape[1]
        init = (jnp.zeros((B, H), jnp.float32), jnp.zeros((B, H), jnp.float32))
        _, hs = lax.scan(step, init, x)
        return hs

    h = feat
    for layer in params["lstm"]:
        h = layer_ref(h, layer["wih"], layer["whh"], layer["bias"])
    return h @ params["proj_w"] + params["proj_b"]


# ----------------------------------------------------------------------------
if __name__ == "__main__":
    num_layers = 2
    in_dims = 16
    hidden_dims = 32
    out_dims = 16
    dropout = 0.1   # identity in eval mode

    seq_len = 8
    batch = 4

    key = jax.random.PRNGKey(0)
    key, k_feat = jax.random.split(key)
    feat = jax.random.normal(k_feat, (seq_len, batch, in_dims), jnp.float32)

    params = init_params(key, num_layers, in_dims, hidden_dims, out_dims)

    out = bilstm_dropout_unidir_forward(feat, params)
    out = jax.block_until_ready(out)

    ref = jax.block_until_ready(reference_forward(feat, params))
    assert out.shape == (seq_len, batch, out_dims)
    # bf16 MXU operands (f32 accumulation) vs the pure-f32 reference.
    assert jnp.allclose(out, ref, atol=5e-2, rtol=5e-2), "mismatch vs reference"

    print("KERNEL_OK")
</pallas_src>

<mosaic_0001>
module attributes {stable_mosaic.version = 11 : i64} {
  func.func @fused_lstm_proj_kernel(%arg0: i32, %arg1: memref<64x16xbf16, #tpu.memory_space<vmem>>, %arg2: memref<16x512xbf16, #tpu.memory_space<vmem>>, %arg3: memref<128x512xbf16, #tpu.memory_space<vmem>>, %arg4: memref<1x512xf32, #tpu.memory_space<vmem>>, %arg5: memref<128x512xbf16, #tpu.memory_space<vmem>>, %arg6: memref<128x512xbf16, #tpu.memory_space<vmem>>, %arg7: memref<1x512xf32, #tpu.memory_space<vmem>>, %arg8: memref<128x16xbf16, #tpu.memory_space<vmem>>, %arg9: memref<1x16xf32, #tpu.memory_space<vmem>>, %arg10: memref<64x16xf32, #tpu.memory_space<vmem>>, %arg11: memref<64x512xf32, #tpu.memory_space<vmem>>, %arg12: memref<64x128xf32, #tpu.memory_space<vmem>>, %arg13: memref<2x8x128xf32, #tpu.memory_space<vmem>>, %arg14: memref<2x8x128xf32, #tpu.memory_space<vmem>>) attributes {dimension_semantics = [#tpu.dimension_semantics<arbitrary>], iteration_bounds = array<i64: 1>, scalar_prefetch = 0 : i64, scratch_operands = 4 : i64, tpu.core_type = #tpu.core_type<tc>, window_params = [{transform_indices = @transform_0, window_bounds = array<i64: 64, 16>}, {pipeline_mode = #tpu.pipeline_mode<synchronous>, transform_indices = @transform_1, window_bounds = array<i64: 16, 512>}, {pipeline_mode = #tpu.pipeline_mode<synchronous>, transform_indices = @transform_2, window_bounds = array<i64: 128, 512>}, {pipeline_mode = #tpu.pipeline_mode<synchronous>, transform_indices = @transform_3, window_bounds = array<i64: 1, 512>}, {pipeline_mode = #tpu.pipeline_mode<synchronous>, transform_indices = @transform_4, window_bounds = array<i64: 128, 512>}, {pipeline_mode = #tpu.pipeline_mode<synchronous>, transform_indices = @transform_5, window_bounds = array<i64: 128, 512>}, {pipeline_mode = #tpu.pipeline_mode<synchronous>, transform_indices = @transform_6, window_bounds = array<i64: 1, 512>}, {pipeline_mode = #tpu.pipeline_mode<synchronous>, transform_indices = @transform_7, window_bounds = array<i64: 128, 16>}, {pipeline_mode = #tpu.pipeline_mode<synchronous>, transform_indices = @transform_8, window_bounds = array<i64: 1, 16>}, {transform_indices = @transform_9, window_bounds = array<i64: 64, 16>}]} {
    %c0_i32 = arith.constant 0 : i32
    %0 = arith.cmpi eq, %arg0, %c0_i32 : i32
    %1 = arith.extui %0 : i1 to i32
    %c0_i32_0 = arith.constant 0 : i32
    %2 = arith.cmpi ne, %1, %c0_i32_0 : i32
    scf.if %2 {
      %cst_143 = arith.constant 0.000000e+00 : f32
      %452 = vector.broadcast %cst_143 : f32 to vector<2x8x128xf32>
      %c0_144 = arith.constant 0 : index
      %c0_145 = arith.constant 0 : index
      %c0_146 = arith.constant 0 : index
      %453 = vector.load %arg13[%c0_144, %c0_145, %c0_146] : memref<2x8x128xf32, #tpu.memory_space<vmem>>, vector<2x8x128xf32>
      tpu.vector_store %arg13[%c0_144, %c0_145, %c0_146], %452 {strides = array<i32>} : memref<2x8x128xf32, #tpu.memory_space<vmem>>, vector<2x8x128xf32>,
      %cst_147 = arith.constant 0.000000e+00 : f32
      %454 = vector.broadcast %cst_147 : f32 to vector<2x8x128xf32>
      %c0_148 = arith.constant 0 : index
      %c0_149 = arith.constant 0 : index
      %c0_150 = arith.constant 0 : index
      %455 = vector.load %arg14[%c0_148, %c0_149, %c0_150] : memref<2x8x128xf32, #tpu.memory_space<vmem>>, vector<2x8x128xf32>
      tpu.vector_store %arg14[%c0_148, %c0_149, %c0_150], %454 {strides = array<i32>} : memref<2x8x128xf32, #tpu.memory_space<vmem>>, vector<2x8x128xf32>,
    } else {
    }
    %c0 = arith.constant 0 : index
    %c0_1 = arith.constant 0 : index
    %3 = vector.load %arg1[%c0, %c0_1] : memref<64x16xbf16, #tpu.memory_space<vmem>>, vector<64x16xbf16>
    %c0_2 = arith.constant 0 : index
    %c0_3 = arith.constant 0 : index
    %4 = vector.load %arg2[%c0_2, %c0_3] : memref<16x512xbf16, #tpu.memory_space<vmem>>, vector<16x512xbf16>
    %cst = arith.constant dense<0.000000e+00> : vector<64x512xf32>
    %5 = tpu.matmul %3, %4, %cst {dimension_numbers = #tpu.dot_dimension_numbers<[1], [0], [0], [1], [0, 0, 1, 1], [], []>} : vector<64x16xbf16>, vector<16x512xbf16>, vector<64x512xf32> -> vector<64x512xf32>
    %c0_4 = arith.constant 0 : index
    %c0_5 = arith.constant 0 : index
    %6 = vector.load %arg4[%c0_4, %c0_5] : memref<1x512xf32, #tpu.memory_space<vmem>>, vector<1x512xf32>
    %7 = vector.broadcast %6 : vector<1x512xf32> to vector<64x512xf32>
    %8 = arith.addf %5, %7 : vector<64x512xf32>
    %c0_6 = arith.constant 0 : index
    %c0_7 = arith.constant 0 : index
    %9 = vector.load %arg11[%c0_6, %c0_7] : memref<64x512xf32, #tpu.memory_space<vmem>>, vector<64x512xf32>
    tpu.vector_store %arg11[%c0_6, %c0_7], %8 {strides = array<i32>} : memref<64x512xf32, #tpu.memory_space<vmem>>, vector<64x512xf32>,
    %c0_8 = arith.constant 0 : index
    %c0_9 = arith.constant 0 : index
    %10 = vector.load %arg3[%c0_8, %c0_9] : memref<128x512xbf16, #tpu.memory_space<vmem>>, vector<128x512xbf16>
    %c0_10 = arith.constant 0 : index
    %c0_11 = arith.constant 0 : index
    %c0_12 = arith.constant 0 : index
    %11 = vector.load %arg13[%c0_10, %c0_11, %c0_12] : memref<2x8x128xf32, #tpu.memory_space<vmem>>, vector<1x8x128xf32>
    %12 = vector.shape_cast %11 : vector<1x8x128xf32> to vector<8x128xf32>
    %13 = arith.truncf %12 : vector<8x128xf32> to vector<8x128xbf16>
    %c0_13 = arith.constant 0 : index
    %c0_14 = arith.constant 0 : index
    %c0_15 = arith.constant 0 : index
    %14 = vector.load %arg14[%c0_13, %c0_14, %c0_15] : memref<2x8x128xf32, #tpu.memory_space<vmem>>, vector<1x8x128xf32>
    %15 = vector.shape_cast %14 : vector<1x8x128xf32> to vector<8x128xf32>
    %c0_i32_16 = arith.constant 0 : i32
    %c8_i32 = arith.constant 8 : i32
    %16 = arith.muli %c0_i32_16, %c8_i32 : i32
    %17 = tpu.assume_multiple %16, 8 : i32
    %18 = arith.index_cast %17 : i32 to index
    %c0_17 = arith.constant 0 : index
    %19 = vector.load %arg11[%18, %c0_17] : memref<64x512xf32, #tpu.memory_space<vmem>>, vector<8x512xf32>
    %cst_18 = arith.constant dense<0.000000e+00> : vector<8x512xf32>
    %20 = tpu.matmul %13, %10, %cst_18 {dimension_numbers = #tpu.dot_dimension_numbers<[1], [0], [0], [1], [0, 0, 1, 1], [], []>} : vector<8x128xbf16>, vector<128x512xbf16>, vector<8x512xf32> -> vector<8x512xf32>
    %21 = arith.addf %19, %20 : vector<8x512xf32>
    %22 = vector.extract_strided_slice %21 {offsets = [0, 0], sizes = [8, 384], strides = [1, 1]} : vector<8x512xf32> to vector<8x384xf32>
    %23 = arith.negf %22 : vector<8x384xf32>
    %24 = math.exp %23 : vector<8x384xf32>
    %cst_19 = arith.constant 1.000000e+00 : f32
    %25 = vector.broadcast %cst_19 : f32 to vector<8x384xf32>
    %26 = arith.addf %25, %24 : vector<8x384xf32>
    %27 = arith.divf %25, %26 : vector<8x384xf32>
    %28 = vector.extract_strided_slice %27 {offsets = [0, 0], sizes = [8, 128], strides = [1, 1]} : vector<8x384xf32> to vector<8x128xf32>
    %29 = vector.extract_strided_slice %27 {offsets = [0, 128], sizes = [8, 128], strides = [1, 1]} : vector<8x384xf32> to vector<8x128xf32>
    %30 = vector.extract_strided_slice %27 {offsets = [0, 256], sizes = [8, 128], strides = [1, 1]} : vector<8x384xf32> to vector<8x128xf32>
    %31 = vector.extract_strided_slice %21 {offsets = [0, 384], sizes = [8, 128], strides = [1, 1]} : vector<8x512xf32> to vector<8x128xf32>
    %32 = math.tanh %31 : vector<8x128xf32>
    %33 = arith.mulf %29, %15 : vector<8x128xf32>
    %34 = arith.mulf %28, %32 : vector<8x128xf32>
    %35 = arith.addf %33, %34 : vector<8x128xf32>
    %36 = math.tanh %35 : vector<8x128xf32>
    %37 = arith.mulf %30, %36 : vector<8x128xf32>
    %38 = arith.index_cast %17 : i32 to index
    %c0_20 = arith.constant 0 : index
    %39 = vector.load %arg12[%38, %c0_20] : memref<64x128xf32, #tpu.memory_space<vmem>>, vector<8x128xf32>
    tpu.vector_store %arg12[%38, %c0_20], %37 {strides = array<i32>} : memref<64x128xf32, #tpu.memory_space<vmem>>, vector<8x128xf32>,
    %40 = arith.truncf %37 : vector<8x128xf32> to vector<8x128xbf16>
    %c1_i32 = arith.constant 1 : i32
    %c8_i32_21 = arith.constant 8 : i32
    %41 = arith.muli %c1_i32, %c8_i32_21 : i32
    %42 = tpu.assume_multiple %41, 8 : i32
    %43 = arith.index_cast %42 : i32 to index
    %c0_22 = arith.constant 0 : index
    %44 = vector.load %arg11[%43, %c0_22] : memref<64x512xf32, #tpu.memory_space<vmem>>, vector<8x512xf32>
    %cst_23 = arith.constant dense<0.000000e+00> : vector<8x512xf32>
    %45 = tpu.matmul %40, %10, %cst_23 {dimension_numbers = #tpu.dot_dimension_numbers<[1], [0], [0], [1], [0, 0, 1, 1], [], []>} : vector<8x128xbf16>, vector<128x512xbf16>, vector<8x512xf32> -> vector<8x512xf32>
    %46 = arith.addf %44, %45 : vector<8x512xf32>
    %47 = vector.extract_strided_slice %46 {offsets = [0, 0], sizes = [8, 384], strides = [1, 1]} : vector<8x512xf32> to vector<8x384xf32>
    %48 = arith.negf %47 : vector<8x384xf32>
    %49 = math.exp %48 : vector<8x384xf32>
    %cst_24 = arith.constant 1.000000e+00 : f32
    %50 = vector.broadcast %cst_24 : f32 to vector<8x384xf32>
    %51 = arith.addf %50, %49 : vector<8x384xf32>
    %52 = arith.divf %50, %51 : vector<8x384xf32>
    %53 = vector.extract_strided_slice %52 {offsets = [0, 0], sizes = [8, 128], strides = [1, 1]} : vector<8x384xf32> to vector<8x128xf32>
    %54 = vector.extract_strided_slice %52 {offsets = [0, 128], sizes = [8, 128], strides = [1, 1]} : vector<8x384xf32> to vector<8x128xf32>
    %55 = vector.extract_strided_slice %52 {offsets = [0, 256], sizes = [8, 128], strides = [1, 1]} : vector<8x384xf32> to vector<8x128xf32>
    %56 = vector.extract_strided_slice %46 {offsets = [0, 384], sizes = [8, 128], strides = [1, 1]} : vector<8x512xf32> to vector<8x128xf32>
    %57 = math.tanh %56 : vector<8x128xf32>
    %58 = arith.mulf %54, %35 : vector<8x128xf32>
    %59 = arith.mulf %53, %57 : vector<8x128xf32>
    %60 = arith.addf %58, %59 : vector<8x128xf32>
    %61 = math.tanh %60 : vector<8x128xf32>
    %62 = arith.mulf %55, %61 : vector<8x128xf32>
    %63 = arith.index_cast %42 : i32 to index
    %c0_25 = arith.constant 0 : index
    %64 = vector.load %arg12[%63, %c0_25] : memref<64x128xf32, #tpu.memory_space<vmem>>, vector<8x128xf32>
    tpu.vector_store %arg12[%63, %c0_25], %62 {strides = array<i32>} : memref<64x128xf32, #tpu.memory_space<vmem>>, vector<8x128xf32>,
    %65 = arith.truncf %62 : vector<8x128xf32> to vector<8x128xbf16>
    %c2_i32 = arith.constant 2 : i32
    %c8_i32_26 = arith.constant 8 : i32
    %66 = arith.muli %c2_i32, %c8_i32_26 : i32
    %67 = tpu.assume_multiple %66, 8 : i32
    %68 = arith.index_cast %67 : i32 to index
    %c0_27 = arith.constant 0 : index
    %69 = vector.load %arg11[%68, %c0_27] : memref<64x512xf32, #tpu.memory_space<vmem>>, vector<8x512xf32>
    %cst_28 = arith.constant dense<0.000000e+00> : vector<8x512xf32>
    %70 = tpu.matmul %65, %10, %cst_28 {dimension_numbers = #tpu.dot_dimension_numbers<[1], [0], [0], [1], [0, 0, 1, 1], [], []>} : vector<8x128xbf16>, vector<128x512xbf16>, vector<8x512xf32> -> vector<8x512xf32>
    %71 = arith.addf %69, %70 : vector<8x512xf32>
    %72 = vector.extract_strided_slice %71 {offsets = [0, 0], sizes = [8, 384], strides = [1, 1]} : vector<8x512xf32> to vector<8x384xf32>
    %73 = arith.negf %72 : vector<8x384xf32>
    %74 = math.exp %73 : vector<8x384xf32>
    %cst_29 = arith.constant 1.000000e+00 : f32
    %75 = vector.broadcast %cst_29 : f32 to vector<8x384xf32>
    %76 = arith.addf %75, %74 : vector<8x384xf32>
    %77 = arith.divf %75, %76 : vector<8x384xf32>
    %78 = vector.extract_strided_slice %77 {offsets = [0, 0], sizes = [8, 128], strides = [1, 1]} : vector<8x384xf32> to vector<8x128xf32>
    %79 = vector.extract_strided_slice %77 {offsets = [0, 128], sizes = [8, 128], strides = [1, 1]} : vector<8x384xf32> to vector<8x128xf32>
    %80 = vector.extract_strided_slice %77 {offsets = [0, 256], sizes = [8, 128], strides = [1, 1]} : vector<8x384xf32> to vector<8x128xf32>
    %81 = vector.extract_strided_slice %71 {offsets = [0, 384], sizes = [8, 128], strides = [1, 1]} : vector<8x512xf32> to vector<8x128xf32>
    %82 = math.tanh %81 : vector<8x128xf32>
    %83 = arith.mulf %79, %60 : vector<8x128xf32>
    %84 = arith.mulf %78, %82 : vector<8x128xf32>
    %85 = arith.addf %83, %84 : vector<8x128xf32>
    %86 = math.tanh %85 : vector<8x128xf32>
    %87 = arith.mulf %80, %86 : vector<8x128xf32>
    %88 = arith.index_cast %67 : i32 to index
    %c0_30 = arith.constant 0 : index
    %89 = vector.load %arg12[%88, %c0_30] : memref<64x128xf32, #tpu.memory_space<vmem>>, vector<8x128xf32>
    tpu.vector_store %arg12[%88, %c0_30], %87 {strides = array<i32>} : memref<64x128xf32, #tpu.memory_space<vmem>>, vector<8x128xf32>,
    %90 = arith.truncf %87 : vector<8x128xf32> to vector<8x128xbf16>
    %c3_i32 = arith.constant 3 : i32
    %c8_i32_31 = arith.constant 8 : i32
    %91 = arith.muli %c3_i32, %c8_i32_31 : i32
    %92 = tpu.assume_multiple %91, 8 : i32
    %93 = arith.index_cast %92 : i32 to index
    %c0_32 = arith.constant 0 : index
    %94 = vector.load %arg11[%93, %c0_32] : memref<64x512xf32, #tpu.memory_space<vmem>>, vector<8x512xf32>
    %cst_33 = arith.constant dense<0.000000e+00> : vector<8x512xf32>
    %95 = tpu.matmul %90, %10, %cst_33 {dimension_numbers = #tpu.dot_dimension_numbers<[1], [0], [0], [1], [0, 0, 1, 1], [], []>} : vector<8x128xbf16>, vector<128x512xbf16>, vector<8x512xf32> -> vector<8x512xf32>
    %96 = arith.addf %94, %95 : vector<8x512xf32>
    %97 = vector.extract_strided_slice %96 {offsets = [0, 0], sizes = [8, 384], strides = [1, 1]} : vector<8x512xf32> to vector<8x384xf32>
    %98 = arith.negf %97 : vector<8x384xf32>
    %99 = math.exp %98 : vector<8x384xf32>
    %cst_34 = arith.constant 1.000000e+00 : f32
    %100 = vector.broadcast %cst_34 : f32 to vector<8x384xf32>
    %101 = arith.addf %100, %99 : vector<8x384xf32>
    %102 = arith.divf %100, %101 : vector<8x384xf32>
    %103 = vector.extract_strided_slice %102 {offsets = [0, 0], sizes = [8, 128], strides = [1, 1]} : vector<8x384xf32> to vector<8x128xf32>
    %104 = vector.extract_strided_slice %102 {offsets = [0, 128], sizes = [8, 128], strides = [1, 1]} : vector<8x384xf32> to vector<8x128xf32>
    %105 = vector.extract_strided_slice %102 {offsets = [0, 256], sizes = [8, 128], strides = [1, 1]} : vector<8x384xf32> to vector<8x128xf32>
    %106 = vector.extract_strided_slice %96 {offsets = [0, 384], sizes = [8, 128], strides = [1, 1]} : vector<8x512xf32> to vector<8x128xf32>
    %107 = math.tanh %106 : vector<8x128xf32>
    %108 = arith.mulf %104, %85 : vector<8x128xf32>
    %109 = arith.mulf %103, %107 : vector<8x128xf32>
    %110 = arith.addf %108, %109 : vector<8x128xf32>
    %111 = math.tanh %110 : vector<8x128xf32>
    %112 = arith.mulf %105, %111 : vector<8x128xf32>
    %113 = arith.index_cast %92 : i32 to index
    %c0_35 = arith.constant 0 : index
    %114 = vector.load %arg12[%113, %c0_35] : memref<64x128xf32, #tpu.memory_space<vmem>>, vector<8x128xf32>
    tpu.vector_store %arg12[%113, %c0_35], %112 {strides = array<i32>} : memref<64x128xf32, #tpu.memory_space<vmem>>, vector<8x128xf32>,
    %115 = arith.truncf %112 : vector<8x128xf32> to vector<8x128xbf16>
    %c4_i32 = arith.constant 4 : i32
    %c8_i32_36 = arith.constant 8 : i32
    %116 = arith.muli %c4_i32, %c8_i32_36 : i32
    %117 = tpu.assume_multiple %116, 8 : i32
    %118 = arith.index_cast %117 : i32 to index
    %c0_37 = arith.constant 0 : index
    %119 = vector.load %arg11[%118, %c0_37] : memref<64x512xf32, #tpu.memory_space<vmem>>, vector<8x512xf32>
    %cst_38 = arith.constant dense<0.000000e+00> : vector<8x512xf32>
    %120 = tpu.matmul %115, %10, %cst_38 {dimension_numbers = #tpu.dot_dimension_numbers<[1], [0], [0], [1], [0, 0, 1, 1], [], []>} : vector<8x128xbf16>, vector<128x512xbf16>, vector<8x512xf32> -> vector<8x512xf32>
    %121 = arith.addf %119, %120 : vector<8x512xf32>
    %122 = vector.extract_strided_slice %121 {offsets = [0, 0], sizes = [8, 384], strides = [1, 1]} : vector<8x512xf32> to vector<8x384xf32>
    %123 = arith.negf %122 : vector<8x384xf32>
    %124 = math.exp %123 : vector<8x384xf32>
    %cst_39 = arith.constant 1.000000e+00 : f32
    %125 = vector.broadcast %cst_39 : f32 to vector<8x384xf32>
    %126 = arith.addf %125, %124 : vector<8x384xf32>
    %127 = arith.divf %125, %126 : vector<8x384xf32>
    %128 = vector.extract_strided_slice %127 {offsets = [0, 0], sizes = [8, 128], strides = [1, 1]} : vector<8x384xf32> to vector<8x128xf32>
    %129 = vector.extract_strided_slice %127 {offsets = [0, 128], sizes = [8, 128], strides = [1, 1]} : vector<8x384xf32> to vector<8x128xf32>
    %130 = vector.extract_strided_slice %127 {offsets = [0, 256], sizes = [8, 128], strides = [1, 1]} : vector<8x384xf32> to vector<8x128xf32>
    %131 = vector.extract_strided_slice %121 {offsets = [0, 384], sizes = [8, 128], strides = [1, 1]} : vector<8x512xf32> to vector<8x128xf32>
    %132 = math.tanh %131 : vector<8x128xf32>
    %133 = arith.mulf %129, %110 : vector<8x128xf32>
    %134 = arith.mulf %128, %132 : vector<8x128xf32>
    %135 = arith.addf %133, %134 : vector<8x128xf32>
    %136 = math.tanh %135 : vector<8x128xf32>
    %137 = arith.mulf %130, %136 : vector<8x128xf32>
    %138 = arith.index_cast %117 : i32 to index
    %c0_40 = arith.constant 0 : index
    %139 = vector.load %arg12[%138, %c0_40] : memref<64x128xf32, #tpu.memory_space<vmem>>, vector<8x128xf32>
    tpu.vector_store %arg12[%138, %c0_40], %137 {strides = array<i32>} : memref<64x128xf32, #tpu.memory_space<vmem>>, vector<8x128xf32>,
    %140 = arith.truncf %137 : vector<8x128xf32> to vector<8x128xbf16>
    %c5_i32 = arith.constant 5 : i32
    %c8_i32_41 = arith.constant 8 : i32
    %141 = arith.muli %c5_i32, %c8_i32_41 : i32
    %142 = tpu.assume_multiple %141, 8 : i32
    %143 = arith.index_cast %142 : i32 to index
    %c0_42 = arith.constant 0 : index
    %144 = vector.load %arg11[%143, %c0_42] : memref<64x512xf32, #tpu.memory_space<vmem>>, vector<8x512xf32>
    %cst_43 = arith.constant dense<0.000000e+00> : vector<8x512xf32>
    %145 = tpu.matmul %140, %10, %cst_43 {dimension_numbers = #tpu.dot_dimension_numbers<[1], [0], [0], [1], [0, 0, 1, 1], [], []>} : vector<8x128xbf16>, vector<128x512xbf16>, vector<8x512xf32> -> vector<8x512xf32>
    %146 = arith.addf %144, %145 : vector<8x512xf32>
    %147 = vector.extract_strided_slice %146 {offsets = [0, 0], sizes = [8, 384], strides = [1, 1]} : vector<8x512xf32> to vector<8x384xf32>
    %148 = arith.negf %147 : vector<8x384xf32>
    %149 = math.exp %148 : vector<8x384xf32>
    %cst_44 = arith.constant 1.000000e+00 : f32
    %150 = vector.broadcast %cst_44 : f32 to vector<8x384xf32>
    %151 = arith.addf %150, %149 : vector<8x384xf32>
    %152 = arith.divf %150, %151 : vector<8x384xf32>
    %153 = vector.extract_strided_slice %152 {offsets = [0, 0], sizes = [8, 128], strides = [1, 1]} : vector<8x384xf32> to vector<8x128xf32>
    %154 = vector.extract_strided_slice %152 {offsets = [0, 128], sizes = [8, 128], strides = [1, 1]} : vector<8x384xf32> to vector<8x128xf32>
    %155 = vector.extract_strided_slice %152 {offsets = [0, 256], sizes = [8, 128], strides = [1, 1]} : vector<8x384xf32> to vector<8x128xf32>
    %156 = vector.extract_strided_slice %146 {offsets = [0, 384], sizes = [8, 128], strides = [1, 1]} : vector<8x512xf32> to vector<8x128xf32>
    %157 = math.tanh %156 : vector<8x128xf32>
    %158 = arith.mulf %154, %135 : vector<8x128xf32>
    %159 = arith.mulf %153, %157 : vector<8x128xf32>
    %160 = arith.addf %158, %159 : vector<8x128xf32>
    %161 = math.tanh %160 : vector<8x128xf32>
    %162 = arith.mulf %155, %161 : vector<8x128xf32>
    %163 = arith.index_cast %142 : i32 to index
    %c0_45 = arith.constant 0 : index
    %164 = vector.load %arg12[%163, %c0_45] : memref<64x128xf32, #tpu.memory_space<vmem>>, vector<8x128xf32>
    tpu.vector_store %arg12[%163, %c0_45], %162 {strides = array<i32>} : memref<64x128xf32, #tpu.memory_space<vmem>>, vector<8x128xf32>,
    %165 = arith.truncf %162 : vector<8x128xf32> to vector<8x128xbf16>
    %c6_i32 = arith.constant 6 : i32
    %c8_i32_46 = arith.constant 8 : i32
    %166 = arith.muli %c6_i32, %c8_i32_46 : i32
    %167 = tpu.assume_multiple %166, 8 : i32
    %168 = arith.index_cast %167 : i32 to index
    %c0_47 = arith.constant 0 : index
    %169 = vector.load %arg11[%168, %c0_47] : memref<64x512xf32, #tpu.memory_space<vmem>>, vector<8x512xf32>
    %cst_48 = arith.constant dense<0.000000e+00> : vector<8x512xf32>
    %170 = tpu.matmul %165, %10, %cst_48 {dimension_numbers = #tpu.dot_dimension_numbers<[1], [0], [0], [1], [0, 0, 1, 1], [], []>} : vector<8x128xbf16>, vector<128x512xbf16>, vector<8x512xf32> -> vector<8x512xf32>
    %171 = arith.addf %169, %170 : vector<8x512xf32>
    %172 = vector.extract_strided_slice %171 {offsets = [0, 0], sizes = [8, 384], strides = [1, 1]} : vector<8x512xf32> to vector<8x384xf32>
    %173 = arith.negf %172 : vector<8x384xf32>
    %174 = math.exp %173 : vector<8x384xf32>
    %cst_49 = arith.constant 1.000000e+00 : f32
    %175 = vector.broadcast %cst_49 : f32 to vector<8x384xf32>
    %176 = arith.addf %175, %174 : vector<8x384xf32>
    %177 = arith.divf %175, %176 : vector<8x384xf32>
    %178 = vector.extract_strided_slice %177 {offsets = [0, 0], sizes = [8, 128], strides = [1, 1]} : vector<8x384xf32> to vector<8x128xf32>
    %179 = vector.extract_strided_slice %177 {offsets = [0, 128], sizes = [8, 128], strides = [1, 1]} : vector<8x384xf32> to vector<8x128xf32>
    %180 = vector.extract_strided_slice %177 {offsets = [0, 256], sizes = [8, 128], strides = [1, 1]} : vector<8x384xf32> to vector<8x128xf32>
    %181 = vector.extract_strided_slice %171 {offsets = [0, 384], sizes = [8, 128], strides = [1, 1]} : vector<8x512xf32> to vector<8x128xf32>
    %182 = math.tanh %181 : vector<8x128xf32>
    %183 = arith.mulf %179, %160 : vector<8x128xf32>
    %184 = arith.mulf %178, %182 : vector<8x128xf32>
    %185 = arith.addf %183, %184 : vector<8x128xf32>
    %186 = math.tanh %185 : vector<8x128xf32>
    %187 = arith.mulf %180, %186 : vector<8x128xf32>
    %188 = arith.index_cast %167 : i32 to index
    %c0_50 = arith.constant 0 : index
    %189 = vector.load %arg12[%188, %c0_50] : memref<64x128xf32, #tpu.memory_space<vmem>>, vector<8x128xf32>
    tpu.vector_store %arg12[%188, %c0_50], %187 {strides = array<i32>} : memref<64x128xf32, #tpu.memory_space<vmem>>, vector<8x128xf32>,
    %190 = arith.truncf %187 : vector<8x128xf32> to vector<8x128xbf16>
    %c7_i32 = arith.constant 7 : i32
    %c8_i32_51 = arith.constant 8 : i32
    %191 = arith.muli %c7_i32, %c8_i32_51 : i32
    %192 = tpu.assume_multiple %191, 8 : i32
    %193 = arith.index_cast %192 : i32 to index
    %c0_52 = arith.constant 0 : index
    %194 = vector.load %arg11[%193, %c0_52] : memref<64x512xf32, #tpu.memory_space<vmem>>, vector<8x512xf32>
    %cst_53 = arith.constant dense<0.000000e+00> : vector<8x512xf32>
    %195 = tpu.matmul %190, %10, %cst_53 {dimension_numbers = #tpu.dot_dimension_numbers<[1], [0], [0], [1], [0, 0, 1, 1], [], []>} : vector<8x128xbf16>, vector<128x512xbf16>, vector<8x512xf32> -> vector<8x512xf32>
    %196 = arith.addf %194, %195 : vector<8x512xf32>
    %197 = vector.extract_strided_slice %196 {offsets = [0, 0], sizes = [8, 384], strides = [1, 1]} : vector<8x512xf32> to vector<8x384xf32>
    %198 = arith.negf %197 : vector<8x384xf32>
    %199 = math.exp %198 : vector<8x384xf32>
    %cst_54 = arith.constant 1.000000e+00 : f32
    %200 = vector.broadcast %cst_54 : f32 to vector<8x384xf32>
    %201 = arith.addf %200, %199 : vector<8x384xf32>
    %202 = arith.divf %200, %201 : vector<8x384xf32>
    %203 = vector.extract_strided_slice %202 {offsets = [0, 0], sizes = [8, 128], strides = [1, 1]} : vector<8x384xf32> to vector<8x128xf32>
    %204 = vector.extract_strided_slice %202 {offsets = [0, 128], sizes = [8, 128], strides = [1, 1]} : vector<8x384xf32> to vector<8x128xf32>
    %205 = vector.extract_strided_slice %202 {offsets = [0, 256], sizes = [8, 128], strides = [1, 1]} : vector<8x384xf32> to vector<8x128xf32>
    %206 = vector.extract_strided_slice %196 {offsets = [0, 384], sizes = [8, 128], strides = [1, 1]} : vector<8x512xf32> to vector<8x128xf32>
    %207 = math.tanh %206 : vector<8x128xf32>
    %208 = arith.mulf %204, %185 : vector<8x128xf32>
    %209 = arith.mulf %203, %207 : vector<8x128xf32>
    %210 = arith.addf %208, %209 : vector<8x128xf32>
    %211 = math.tanh %210 : vector<8x128xf32>
    %212 = arith.mulf %205, %211 : vector<8x128xf32>
    %213 = arith.index_cast %192 : i32 to index
    %c0_55 = arith.constant 0 : index
    %214 = vector.load %arg12[%213, %c0_55] : memref<64x128xf32, #tpu.memory_space<vmem>>, vector<8x128xf32>
    tpu.vector_store %arg12[%213, %c0_55], %212 {strides = array<i32>} : memref<64x128xf32, #tpu.memory_space<vmem>>, vector<8x128xf32>,
    %215 = arith.truncf %212 : vector<8x128xf32> to vector<8x128xbf16>
    %c8_i32_56 = arith.constant 8 : i32
    %216 = arith.extf %215 : vector<8x128xbf16> to vector<8x128xf32>
    %c0_57 = arith.constant 0 : index
    %c0_58 = arith.constant 0 : index
    %c0_59 = arith.constant 0 : index
    %217 = vector.load %arg13[%c0_57, %c0_58, %c0_59] : memref<2x8x128xf32, #tpu.memory_space<vmem>>, vector<1x8x128xf32>
    %218 = vector.shape_cast %217 : vector<1x8x128xf32> to vector<8x128xf32>
    %219 = vector.shape_cast %216 : vector<8x128xf32> to vector<1x8x128xf32>
    tpu.vector_store %arg13[%c0_57, %c0_58, %c0_59], %219 {strides = array<i32>} : memref<2x8x128xf32, #tpu.memory_space<vmem>>, vector<1x8x128xf32>,
    %c0_60 = arith.constant 0 : index
    %c0_61 = arith.constant 0 : index
    %c0_62 = arith.constant 0 : index
    %220 = vector.load %arg14[%c0_60, %c0_61, %c0_62] : memref<2x8x128xf32, #tpu.memory_space<vmem>>, vector<1x8x128xf32>
    %221 = vector.shape_cast %220 : vector<1x8x128xf32> to vector<8x128xf32>
    %222 = vector.shape_cast %210 : vector<8x128xf32> to vector<1x8x128xf32>
    tpu.vector_store %arg14[%c0_60, %c0_61, %c0_62], %222 {strides = array<i32>} : memref<2x8x128xf32, #tpu.memory_space<vmem>>, vector<1x8x128xf32>,
    %c0_63 = arith.constant 0 : index
    %c0_64 = arith.constant 0 : index
    %223 = vector.load %arg12[%c0_63, %c0_64] : memref<64x128xf32, #tpu.memory_space<vmem>>, vector<64x128xf32>
    %224 = arith.truncf %223 : vector<64x128xf32> to vector<64x128xbf16>
    %c0_65 = arith.constant 0 : index
    %c0_66 = arith.constant 0 : index
    %225 = vector.load %arg5[%c0_65, %c0_66] : memref<128x512xbf16, #tpu.memory_space<vmem>>, vector<128x512xbf16>
    %cst_67 = arith.constant dense<0.000000e+00> : vector<64x512xf32>
    %226 = tpu.matmul %224, %225, %cst_67 {dimension_numbers = #tpu.dot_dimension_numbers<[1], [0], [0], [1], [0, 0, 1, 1], [], []>} : vector<64x128xbf16>, vector<128x512xbf16>, vector<64x512xf32> -> vector<64x512xf32>
    %c0_68 = arith.constant 0 : index
    %c0_69 = arith.constant 0 : index
    %227 = vector.load %arg7[%c0_68, %c0_69] : memref<1x512xf32, #tpu.memory_space<vmem>>, vector<1x512xf32>
    %228 = vector.broadcast %227 : vector<1x512xf32> to vector<64x512xf32>
    %229 = arith.addf %226, %228 : vector<64x512xf32>
    %c0_70 = arith.constant 0 : index
    %c0_71 = arith.constant 0 : index
    %230 = vector.load %arg11[%c0_70, %c0_71] : memref<64x512xf32, #tpu.memory_space<vmem>>, vector<64x512xf32>
    tpu.vector_store %arg11[%c0_70, %c0_71], %229 {strides = array<i32>} : memref<64x512xf32, #tpu.memory_space<vmem>>, vector<64x512xf32>,
    %c0_72 = arith.constant 0 : index
    %c0_73 = arith.constant 0 : index
    %231 = vector.load %arg6[%c0_72, %c0_73] : memref<128x512xbf16, #tpu.memory_space<vmem>>, vector<128x512xbf16>
    %c1 = arith.constant 1 : index
    %c0_74 = arith.constant 0 : index
    %c0_75 = arith.constant 0 : index
    %232 = vector.load %arg13[%c1, %c0_74, %c0_75] : memref<2x8x128xf32, #tpu.memory_space<vmem>>, vector<1x8x128xf32>
    %233 = vector.shape_cast %232 : vector<1x8x128xf32> to vector<8x128xf32>
    %234 = arith.truncf %233 : vector<8x128xf32> to vector<8x128xbf16>
    %c1_76 = arith.constant 1 : index
    %c0_77 = arith.constant 0 : index
    %c0_78 = arith.constant 0 : index
    %235 = vector.load %arg14[%c1_76, %c0_77, %c0_78] : memref<2x8x128xf32, #tpu.memory_space<vmem>>, vector<1x8x128xf32>
    %236 = vector.shape_cast %235 : vector<1x8x128xf32> to vector<8x128xf32>
    %c0_i32_79 = arith.constant 0 : i32
    %c8_i32_80 = arith.constant 8 : i32
    %237 = arith.muli %c0_i32_79, %c8_i32_80 : i32
    %238 = tpu.assume_multiple %237, 8 : i32
    %239 = arith.index_cast %238 : i32 to index
    %c0_81 = arith.constant 0 : index
    %240 = vector.load %arg11[%239, %c0_81] : memref<64x512xf32, #tpu.memory_space<vmem>>, vector<8x512xf32>
    %cst_82 = arith.constant dense<0.000000e+00> : vector<8x512xf32>
    %241 = tpu.matmul %234, %231, %cst_82 {dimension_numbers = #tpu.dot_dimension_numbers<[1], [0], [0], [1], [0, 0, 1, 1], [], []>} : vector<8x128xbf16>, vector<128x512xbf16>, vector<8x512xf32> -> vector<8x512xf32>
    %242 = arith.addf %240, %241 : vector<8x512xf32>
    %243 = vector.extract_strided_slice %242 {offsets = [0, 0], sizes = [8, 384], strides = [1, 1]} : vector<8x512xf32> to vector<8x384xf32>
    %244 = arith.negf %243 : vector<8x384xf32>
    %245 = math.exp %244 : vector<8x384xf32>
    %cst_83 = arith.constant 1.000000e+00 : f32
    %246 = vector.broadcast %cst_83 : f32 to vector<8x384xf32>
    %247 = arith.addf %246, %245 : vector<8x384xf32>
    %248 = arith.divf %246, %247 : vector<8x384xf32>
    %249 = vector.extract_strided_slice %248 {offsets = [0, 0], sizes = [8, 128], strides = [1, 1]} : vector<8x384xf32> to vector<8x128xf32>
    %250 = vector.extract_strided_slice %248 {offsets = [0, 128], sizes = [8, 128], strides = [1, 1]} : vector<8x384xf32> to vector<8x128xf32>
    %251 = vector.extract_strided_slice %248 {offsets = [0, 256], sizes = [8, 128], strides = [1, 1]} : vector<8x384xf32> to vector<8x128xf32>
    %252 = vector.extract_strided_slice %242 {offsets = [0, 384], sizes = [8, 128], strides = [1, 1]} : vector<8x512xf32> to vector<8x128xf32>
    %253 = math.tanh %252 : vector<8x128xf32>
    %254 = arith.mulf %250, %236 : vector<8x128xf32>
    %255 = arith.mulf %249, %253 : vector<8x128xf32>
    %256 = arith.addf %254, %255 : vector<8x128xf32>
    %257 = math.tanh %256 : vector<8x128xf32>
    %258 = arith.mulf %251, %257 : vector<8x128xf32>
    %259 = arith.index_cast %238 : i32 to index
    %c0_84 = arith.constant 0 : index
    %260 = vector.load %arg12[%259, %c0_84] : memref<64x128xf32, #tpu.memory_space<vmem>>, vector<8x128xf32>
    tpu.vector_store %arg12[%259, %c0_84], %258 {strides = array<i32>} : memref<64x128xf32, #tpu.memory_space<vmem>>, vector<8x128xf32>,
    %261 = arith.truncf %258 : vector<8x128xf32> to vector<8x128xbf16>
    %c1_i32_85 = arith.constant 1 : i32
    %c8_i32_86 = arith.constant 8 : i32
    %262 = arith.muli %c1_i32_85, %c8_i32_86 : i32
    %263 = tpu.assume_multiple %262, 8 : i32
    %264 = arith.index_cast %263 : i32 to index
    %c0_87 = arith.constant 0 : index
    %265 = vector.load %arg11[%264, %c0_87] : memref<64x512xf32, #tpu.memory_space<vmem>>, vector<8x512xf32>
    %cst_88 = arith.constant dense<0.000000e+00> : vector<8x512xf32>
    %266 = tpu.matmul %261, %231, %cst_88 {dimension_numbers = #tpu.dot_dimension_numbers<[1], [0], [0], [1], [0, 0, 1, 1], [], []>} : vector<8x128xbf16>, vector<128x512xbf16>, vector<8x512xf32> -> vector<8x512xf32>
    %267 = arith.addf %265, %266 : vector<8x512xf32>
    %268 = vector.extract_strided_slice %267 {offsets = [0, 0], sizes = [8, 384], strides = [1, 1]} : vector<8x512xf32> to vector<8x384xf32>
    %269 = arith.negf %268 : vector<8x384xf32>
    %270 = math.exp %269 : vector<8x384xf32>
    %cst_89 = arith.constant 1.000000e+00 : f32
    %271 = vector.broadcast %cst_89 : f32 to vector<8x384xf32>
    %272 = arith.addf %271, %270 : vector<8x384xf32>
    %273 = arith.divf %271, %272 : vector<8x384xf32>
    %274 = vector.extract_strided_slice %273 {offsets = [0, 0], sizes = [8, 128], strides = [1, 1]} : vector<8x384xf32> to vector<8x128xf32>
    %275 = vector.extract_strided_slice %273 {offsets = [0, 128], sizes = [8, 128], strides = [1, 1]} : vector<8x384xf32> to vector<8x128xf32>
    %276 = vector.extract_strided_slice %273 {offsets = [0, 256], sizes = [8, 128], strides = [1, 1]} : vector<8x384xf32> to vector<8x128xf32>
    %277 = vector.extract_strided_slice %267 {offsets = [0, 384], sizes = [8, 128], strides = [1, 1]} : vector<8x512xf32> to vector<8x128xf32>
    %278 = math.tanh %277 : vector<8x128xf32>
    %279 = arith.mulf %275, %256 : vector<8x128xf32>
    %280 = arith.mulf %274, %278 : vector<8x128xf32>
    %281 = arith.addf %279, %280 : vector<8x128xf32>
    %282 = math.tanh %281 : vector<8x128xf32>
    %283 = arith.mulf %276, %282 : vector<8x128xf32>
    %284 = arith.index_cast %263 : i32 to index
    %c0_90 = arith.constant 0 : index
    %285 = vector.load %arg12[%284, %c0_90] : memref<64x128xf32, #tpu.memory_space<vmem>>, vector<8x128xf32>
    tpu.vector_store %arg12[%284, %c0_90], %283 {strides = array<i32>} : memref<64x128xf32, #tpu.memory_space<vmem>>, vector<8x128xf32>,
    %286 = arith.truncf %283 : vector<8x128xf32> to vector<8x128xbf16>
    %c2_i32_91 = arith.constant 2 : i32
    %c8_i32_92 = arith.constant 8 : i32
    %287 = arith.muli %c2_i32_91, %c8_i32_92 : i32
    %288 = tpu.assume_multiple %287, 8 : i32
    %289 = arith.index_cast %288 : i32 to index
    %c0_93 = arith.constant 0 : index
    %290 = vector.load %arg11[%289, %c0_93] : memref<64x512xf32, #tpu.memory_space<vmem>>, vector<8x512xf32>
    %cst_94 = arith.constant dense<0.000000e+00> : vector<8x512xf32>
    %291 = tpu.matmul %286, %231, %cst_94 {dimension_numbers = #tpu.dot_dimension_numbers<[1], [0], [0], [1], [0, 0, 1, 1], [], []>} : vector<8x128xbf16>, vector<128x512xbf16>, vector<8x512xf32> -> vector<8x512xf32>
    %292 = arith.addf %290, %291 : vector<8x512xf32>
    %293 = vector.extract_strided_slice %292 {offsets = [0, 0], sizes = [8, 384], strides = [1, 1]} : vector<8x512xf32> to vector<8x384xf32>
    %294 = arith.negf %293 : vector<8x384xf32>
    %295 = math.exp %294 : vector<8x384xf32>
    %cst_95 = arith.constant 1.000000e+00 : f32
    %296 = vector.broadcast %cst_95 : f32 to vector<8x384xf32>
    %297 = arith.addf %296, %295 : vector<8x384xf32>
    %298 = arith.divf %296, %297 : vector<8x384xf32>
    %299 = vector.extract_strided_slice %298 {offsets = [0, 0], sizes = [8, 128], strides = [1, 1]} : vector<8x384xf32> to vector<8x128xf32>
    %300 = vector.extract_strided_slice %298 {offsets = [0, 128], sizes = [8, 128], strides = [1, 1]} : vector<8x384xf32> to vector<8x128xf32>
    %301 = vector.extract_strided_slice %298 {offsets = [0, 256], sizes = [8, 128], strides = [1, 1]} : vector<8x384xf32> to vector<8x128xf32>
    %302 = vector.extract_strided_slice %292 {offsets = [0, 384], sizes = [8, 128], strides = [1, 1]} : vector<8x512xf32> to vector<8x128xf32>
    %303 = math.tanh %302 : vector<8x128xf32>
    %304 = arith.mulf %300, %281 : vector<8x128xf32>
    %305 = arith.mulf %299, %303 : vector<8x128xf32>
    %306 = arith.addf %304, %305 : vector<8x128xf32>
    %307 = math.tanh %306 : vector<8x128xf32>
    %308 = arith.mulf %301, %307 : vector<8x128xf32>
    %309 = arith.index_cast %288 : i32 to index
    %c0_96 = arith.constant 0 : index
    %310 = vector.load %arg12[%309, %c0_96] : memref<64x128xf32, #tpu.memory_space<vmem>>, vector<8x128xf32>
    tpu.vector_store %arg12[%309, %c0_96], %308 {strides = array<i32>} : memref<64x128xf32, #tpu.memory_space<vmem>>, vector<8x128xf32>,
    %311 = arith.truncf %308 : vector<8x128xf32> to vector<8x128xbf16>
    %c3_i32_97 = arith.constant 3 : i32
    %c8_i32_98 = arith.constant 8 : i32
    %312 = arith.muli %c3_i32_97, %c8_i32_98 : i32
    %313 = tpu.assume_multiple %312, 8 : i32
    %314 = arith.index_cast %313 : i32 to index
    %c0_99 = arith.constant 0 : index
    %315 = vector.load %arg11[%314, %c0_99] : memref<64x512xf32, #tpu.memory_space<vmem>>, vector<8x512xf32>
    %cst_100 = arith.constant dense<0.000000e+00> : vector<8x512xf32>
    %316 = tpu.matmul %311, %231, %cst_100 {dimension_numbers = #tpu.dot_dimension_numbers<[1], [0], [0], [1], [0, 0, 1, 1], [], []>} : vector<8x128xbf16>, vector<128x512xbf16>, vector<8x512xf32> -> vector<8x512xf32>
    %317 = arith.addf %315, %316 : vector<8x512xf32>
    %318 = vector.extract_strided_slice %317 {offsets = [0, 0], sizes = [8, 384], strides = [1, 1]} : vector<8x512xf32> to vector<8x384xf32>
    %319 = arith.negf %318 : vector<8x384xf32>
    %320 = math.exp %319 : vector<8x384xf32>
    %cst_101 = arith.constant 1.000000e+00 : f32
    %321 = vector.broadcast %cst_101 : f32 to vector<8x384xf32>
    %322 = arith.addf %321, %320 : vector<8x384xf32>
    %323 = arith.divf %321, %322 : vector<8x384xf32>
    %324 = vector.extract_strided_slice %323 {offsets = [0, 0], sizes = [8, 128], strides = [1, 1]} : vector<8x384xf32> to vector<8x128xf32>
    %325 = vector.extract_strided_slice %323 {offsets = [0, 128], sizes = [8, 128], strides = [1, 1]} : vector<8x384xf32> to vector<8x128xf32>
    %326 = vector.extract_strided_slice %323 {offsets = [0, 256], sizes = [8, 128], strides = [1, 1]} : vector<8x384xf32> to vector<8x128xf32>
    %327 = vector.extract_strided_slice %317 {offsets = [0, 384], sizes = [8, 128], strides = [1, 1]} : vector<8x512xf32> to vector<8x128xf32>
    %328 = math.tanh %327 : vector<8x128xf32>
    %329 = arith.mulf %325, %306 : vector<8x128xf32>
    %330 = arith.mulf %324, %328 : vector<8x128xf32>
    %331 = arith.addf %329, %330 : vector<8x128xf32>
    %332 = math.tanh %331 : vector<8x128xf32>
    %333 = arith.mulf %326, %332 : vector<8x128xf32>
    %334 = arith.index_cast %313 : i32 to index
    %c0_102 = arith.constant 0 : index
    %335 = vector.load %arg12[%334, %c0_102] : memref<64x128xf32, #tpu.memory_space<vmem>>, vector<8x128xf32>
    tpu.vector_store %arg12[%334, %c0_102], %333 {strides = array<i32>} : memref<64x128xf32, #tpu.memory_space<vmem>>, vector<8x128xf32>,
    %336 = arith.truncf %333 : vector<8x128xf32> to vector<8x128xbf16>
    %c4_i32_103 = arith.constant 4 : i32
    %c8_i32_104 = arith.constant 8 : i32
    %337 = arith.muli %c4_i32_103, %c8_i32_104 : i32
    %338 = tpu.assume_multiple %337, 8 : i32
    %339 = arith.index_cast %338 : i32 to index
    %c0_105 = arith.constant 0 : index
    %340 = vector.load %arg11[%339, %c0_105] : memref<64x512xf32, #tpu.memory_space<vmem>>, vector<8x512xf32>
    %cst_106 = arith.constant dense<0.000000e+00> : vector<8x512xf32>
    %341 = tpu.matmul %336, %231, %cst_106 {dimension_numbers = #tpu.dot_dimension_numbers<[1], [0], [0], [1], [0, 0, 1, 1], [], []>} : vector<8x128xbf16>, vector<128x512xbf16>, vector<8x512xf32> -> vector<8x512xf32>
    %342 = arith.addf %340, %341 : vector<8x512xf32>
    %343 = vector.extract_strided_slice %342 {offsets = [0, 0], sizes = [8, 384], strides = [1, 1]} : vector<8x512xf32> to vector<8x384xf32>
    %344 = arith.negf %343 : vector<8x384xf32>
    %345 = math.exp %344 : vector<8x384xf32>
    %cst_107 = arith.constant 1.000000e+00 : f32
    %346 = vector.broadcast %cst_107 : f32 to vector<8x384xf32>
    %347 = arith.addf %346, %345 : vector<8x384xf32>
    %348 = arith.divf %346, %347 : vector<8x384xf32>
    %349 = vector.extract_strided_slice %348 {offsets = [0, 0], sizes = [8, 128], strides = [1, 1]} : vector<8x384xf32> to vector<8x128xf32>
    %350 = vector.extract_strided_slice %348 {offsets = [0, 128], sizes = [8, 128], strides = [1, 1]} : vector<8x384xf32> to vector<8x128xf32>
    %351 = vector.extract_strided_slice %348 {offsets = [0, 256], sizes = [8, 128], strides = [1, 1]} : vector<8x384xf32> to vector<8x128xf32>
    %352 = vector.extract_strided_slice %342 {offsets = [0, 384], sizes = [8, 128], strides = [1, 1]} : vector<8x512xf32> to vector<8x128xf32>
    %353 = math.tanh %352 : vector<8x128xf32>
    %354 = arith.mulf %350, %331 : vector<8x128xf32>
    %355 = arith.mulf %349, %353 : vector<8x128xf32>
    %356 = arith.addf %354, %355 : vector<8x128xf32>
    %357 = math.tanh %356 : vector<8x128xf32>
    %358 = arith.mulf %351, %357 : vector<8x128xf32>
    %359 = arith.index_cast %338 : i32 to index
    %c0_108 = arith.constant 0 : index
    %360 = vector.load %arg12[%359, %c0_108] : memref<64x128xf32, #tpu.memory_space<vmem>>, vector<8x128xf32>
    tpu.vector_store %arg12[%359, %c0_108], %358 {strides = array<i32>} : memref<64x128xf32, #tpu.memory_space<vmem>>, vector<8x128xf32>,
    %361 = arith.truncf %358 : vector<8x128xf32> to vector<8x128xbf16>
    %c5_i32_109 = arith.constant 5 : i32
    %c8_i32_110 = arith.constant 8 : i32
    %362 = arith.muli %c5_i32_109, %c8_i32_110 : i32
    %363 = tpu.assume_multiple %362, 8 : i32
    %364 = arith.index_cast %363 : i32 to index
    %c0_111 = arith.constant 0 : index
    %365 = vector.load %arg11[%364, %c0_111] : memref<64x512xf32, #tpu.memory_space<vmem>>, vector<8x512xf32>
    %cst_112 = arith.constant dense<0.000000e+00> : vector<8x512xf32>
    %366 = tpu.matmul %361, %231, %cst_112 {dimension_numbers = #tpu.dot_dimension_numbers<[1], [0], [0], [1], [0, 0, 1, 1], [], []>} : vector<8x128xbf16>, vector<128x512xbf16>, vector<8x512xf32> -> vector<8x512xf32>
    %367 = arith.addf %365, %366 : vector<8x512xf32>
    %368 = vector.extract_strided_slice %367 {offsets = [0, 0], sizes = [8, 384], strides = [1, 1]} : vector<8x512xf32> to vector<8x384xf32>
    %369 = arith.negf %368 : vector<8x384xf32>
    %370 = math.exp %369 : vector<8x384xf32>
    %cst_113 = arith.constant 1.000000e+00 : f32
    %371 = vector.broadcast %cst_113 : f32 to vector<8x384xf32>
    %372 = arith.addf %371, %370 : vector<8x384xf32>
    %373 = arith.divf %371, %372 : vector<8x384xf32>
    %374 = vector.extract_strided_slice %373 {offsets = [0, 0], sizes = [8, 128], strides = [1, 1]} : vector<8x384xf32> to vector<8x128xf32>
    %375 = vector.extract_strided_slice %373 {offsets = [0, 128], sizes = [8, 128], strides = [1, 1]} : vector<8x384xf32> to vector<8x128xf32>
    %376 = vector.extract_strided_slice %373 {offsets = [0, 256], sizes = [8, 128], strides = [1, 1]} : vector<8x384xf32> to vector<8x128xf32>
    %377 = vector.extract_strided_slice %367 {offsets = [0, 384], sizes = [8, 128], strides = [1, 1]} : vector<8x512xf32> to vector<8x128xf32>
    %378 = math.tanh %377 : vector<8x128xf32>
    %379 = arith.mulf %375, %356 : vector<8x128xf32>
    %380 = arith.mulf %374, %378 : vector<8x128xf32>
    %381 = arith.addf %379, %380 : vector<8x128xf32>
    %382 = math.tanh %381 : vector<8x128xf32>
    %383 = arith.mulf %376, %382 : vector<8x128xf32>
    %384 = arith.index_cast %363 : i32 to index
    %c0_114 = arith.constant 0 : index
    %385 = vector.load %arg12[%384, %c0_114] : memref<64x128xf32, #tpu.memory_space<vmem>>, vector<8x128xf32>
    tpu.vector_store %arg12[%384, %c0_114], %383 {strides = array<i32>} : memref<64x128xf32, #tpu.memory_space<vmem>>, vector<8x128xf32>,
    %386 = arith.truncf %383 : vector<8x128xf32> to vector<8x128xbf16>
    %c6_i32_115 = arith.constant 6 : i32
    %c8_i32_116 = arith.constant 8 : i32
    %387 = arith.muli %c6_i32_115, %c8_i32_116 : i32
    %388 = tpu.assume_multiple %387, 8 : i32
    %389 = arith.index_cast %388 : i32 to index
    %c0_117 = arith.constant 0 : index
    %390 = vector.load %arg11[%389, %c0_117] : memref<64x512xf32, #tpu.memory_space<vmem>>, vector<8x512xf32>
    %cst_118 = arith.constant dense<0.000000e+00> : vector<8x512xf32>
    %391 = tpu.matmul %386, %231, %cst_118 {dimension_numbers = #tpu.dot_dimension_numbers<[1], [0], [0], [1], [0, 0, 1, 1], [], []>} : vector<8x128xbf16>, vector<128x512xbf16>, vector<8x512xf32> -> vector<8x512xf32>
    %392 = arith.addf %390, %391 : vector<8x512xf32>
    %393 = vector.extract_strided_slice %392 {offsets = [0, 0], sizes = [8, 384], strides = [1, 1]} : vector<8x512xf32> to vector<8x384xf32>
    %394 = arith.negf %393 : vector<8x384xf32>
    %395 = math.exp %394 : vector<8x384xf32>
    %cst_119 = arith.constant 1.000000e+00 : f32
    %396 = vector.broadcast %cst_119 : f32 to vector<8x384xf32>
    %397 = arith.addf %396, %395 : vector<8x384xf32>
    %398 = arith.divf %396, %397 : vector<8x384xf32>
    %399 = vector.extract_strided_slice %398 {offsets = [0, 0], sizes = [8, 128], strides = [1, 1]} : vector<8x384xf32> to vector<8x128xf32>
    %400 = vector.extract_strided_slice %398 {offsets = [0, 128], sizes = [8, 128], strides = [1, 1]} : vector<8x384xf32> to vector<8x128xf32>
    %401 = vector.extract_strided_slice %398 {offsets = [0, 256], sizes = [8, 128], strides = [1, 1]} : vector<8x384xf32> to vector<8x128xf32>
    %402 = vector.extract_strided_slice %392 {offsets = [0, 384], sizes = [8, 128], strides = [1, 1]} : vector<8x512xf32> to vector<8x128xf32>
    %403 = math.tanh %402 : vector<8x128xf32>
    %404 = arith.mulf %400, %381 : vector<8x128xf32>
    %405 = arith.mulf %399, %403 : vector<8x128xf32>
    %406 = arith.addf %404, %405 : vector<8x128xf32>
    %407 = math.tanh %406 : vector<8x128xf32>
    %408 = arith.mulf %401, %407 : vector<8x128xf32>
    %409 = arith.index_cast %388 : i32 to index
    %c0_120 = arith.constant 0 : index
    %410 = vector.load %arg12[%409, %c0_120] : memref<64x128xf32, #tpu.memory_space<vmem>>, vector<8x128xf32>
    tpu.vector_store %arg12[%409, %c0_120], %408 {strides = array<i32>} : memref<64x128xf32, #tpu.memory_space<vmem>>, vector<8x128xf32>,
    %411 = arith.truncf %408 : vector<8x128xf32> to vector<8x128xbf16>
    %c7_i32_121 = arith.constant 7 : i32
    %c8_i32_122 = arith.constant 8 : i32
    %412 = arith.muli %c7_i32_121, %c8_i32_122 : i32
    %413 = tpu.assume_multiple %412, 8 : i32
    %414 = arith.index_cast %413 : i32 to index
    %c0_123 = arith.constant 0 : index
    %415 = vector.load %arg11[%414, %c0_123] : memref<64x512xf32, #tpu.memory_space<vmem>>, vector<8x512xf32>
    %cst_124 = arith.constant dense<0.000000e+00> : vector<8x512xf32>
    %416 = tpu.matmul %411, %231, %cst_124 {dimension_numbers = #tpu.dot_dimension_numbers<[1], [0], [0], [1], [0, 0, 1, 1], [], []>} : vector<8x128xbf16>, vector<128x512xbf16>, vector<8x512xf32> -> vector<8x512xf32>
    %417 = arith.addf %415, %416 : vector<8x512xf32>
    %418 = vector.extract_strided_slice %417 {offsets = [0, 0], sizes = [8, 384], strides = [1, 1]} : vector<8x512xf32> to vector<8x384xf32>
    %419 = arith.negf %418 : vector<8x384xf32>
    %420 = math.exp %419 : vector<8x384xf32>
    %cst_125 = arith.constant 1.000000e+00 : f32
    %421 = vector.broadcast %cst_125 : f32 to vector<8x384xf32>
    %422 = arith.addf %421, %420 : vector<8x384xf32>
    %423 = arith.divf %421, %422 : vector<8x384xf32>
    %424 = vector.extract_strided_slice %423 {offsets = [0, 0], sizes = [8, 128], strides = [1, 1]} : vector<8x384xf32> to vector<8x128xf32>
    %425 = vector.extract_strided_slice %423 {offsets = [0, 128], sizes = [8, 128], strides = [1, 1]} : vector<8x384xf32> to vector<8x128xf32>
    %426 = vector.extract_strided_slice %423 {offsets = [0, 256], sizes = [8, 128], strides = [1, 1]} : vector<8x384xf32> to vector<8x128xf32>
    %427 = vector.extract_strided_slice %417 {offsets = [0, 384], sizes = [8, 128], strides = [1, 1]} : vector<8x512xf32> to vector<8x128xf32>
    %428 = math.tanh %427 : vector<8x128xf32>
    %429 = arith.mulf %425, %406 : vector<8x128xf32>
    %430 = arith.mulf %424, %428 : vector<8x128xf32>
    %431 = arith.addf %429, %430 : vector<8x128xf32>
    %432 = math.tanh %431 : vector<8x128xf32>
    %433 = arith.mulf %426, %432 : vector<8x128xf32>
    %434 = arith.index_cast %413 : i32 to index
    %c0_126 = arith.constant 0 : index
    %435 = vector.load %arg12[%434, %c0_126] : memref<64x128xf32, #tpu.memory_space<vmem>>, vector<8x128xf32>
    tpu.vector_store %arg12[%434, %c0_126], %433 {strides = array<i32>} : memref<64x128xf32, #tpu.memory_space<vmem>>, vector<8x128xf32>,
    %436 = arith.truncf %433 : vector<8x128xf32> to vector<8x128xbf16>
    %c8_i32_127 = arith.constant 8 : i32
    %437 = arith.extf %436 : vector<8x128xbf16> to vector<8x128xf32>
    %c1_128 = arith.constant 1 : index
    %c0_129 = arith.constant 0 : index
    %c0_130 = arith.constant 0 : index
    %438 = vector.load %arg13[%c1_128, %c0_129, %c0_130] : memref<2x8x128xf32, #tpu.memory_space<vmem>>, vector<1x8x128xf32>
    %439 = vector.shape_cast %438 : vector<1x8x128xf32> to vector<8x128xf32>
    %440 = vector.shape_cast %437 : vector<8x128xf32> to vector<1x8x128xf32>
    tpu.vector_store %arg13[%c1_128, %c0_129, %c0_130], %440 {strides = array<i32>} : memref<2x8x128xf32, #tpu.memory_space<vmem>>, vector<1x8x128xf32>,
    %c1_131 = arith.constant 1 : index
    %c0_132 = arith.constant 0 : index
    %c0_133 = arith.constant 0 : index
    %441 = vector.load %arg14[%c1_131, %c0_132, %c0_133] : memref<2x8x128xf32, #tpu.memory_space<vmem>>, vector<1x8x128xf32>
    %442 = vector.shape_cast %441 : vector<1x8x128xf32> to vector<8x128xf32>
    %443 = vector.shape_cast %431 : vector<8x128xf32> to vector<1x8x128xf32>
    tpu.vector_store %arg14[%c1_131, %c0_132, %c0_133], %443 {strides = array<i32>} : memref<2x8x128xf32, #tpu.memory_space<vmem>>, vector<1x8x128xf32>,
    %c0_134 = arith.constant 0 : index
    %c0_135 = arith.constant 0 : index
    %444 = vector.load %arg12[%c0_134, %c0_135] : memref<64x128xf32, #tpu.memory_space<vmem>>, vector<64x128xf32>
    %445 = arith.truncf %444 : vector<64x128xf32> to vector<64x128xbf16>
    %c0_136 = arith.constant 0 : index
    %c0_137 = arith.constant 0 : index
    %446 = vector.load %arg8[%c0_136, %c0_137] : memref<128x16xbf16, #tpu.memory_space<vmem>>, vector<128x16xbf16>
    %cst_138 = arith.constant dense<0.000000e+00> : vector<64x16xf32>
    %447 = tpu.matmul %445, %446, %cst_138 {dimension_numbers = #tpu.dot_dimension_numbers<[1], [0], [0], [1], [0, 0, 1, 1], [], []>} : vector<64x128xbf16>, vector<128x16xbf16>, vector<64x16xf32> -> vector<64x16xf32>
    %c0_139 = arith.constant 0 : index
    %c0_140 = arith.constant 0 : index
    %448 = vector.load %arg9[%c0_139, %c0_140] : memref<1x16xf32, #tpu.memory_space<vmem>>, vector<1x16xf32>
    %449 = vector.broadcast %448 : vector<1x16xf32> to vector<64x16xf32>
    %450 = arith.addf %447, %449 : vector<64x16xf32>
    %c0_141 = arith.constant 0 : index
    %c0_142 = arith.constant 0 : index
    %451 = vector.load %arg10[%c0_141, %c0_142] : memref<64x16xf32, #tpu.memory_space<vmem>>, vector<64x16xf32>
    tpu.vector_store %arg10[%c0_141, %c0_142], %450 {strides = array<i32>} : memref<64x16xf32, #tpu.memory_space<vmem>>, vector<64x16xf32>,
    return
  }
  func.func @transform_0(%arg0: i32) -> (i32, i32) {
    %c0_i32 = arith.constant 0 : i32
    %c0_i32_0 = arith.constant 0 : i32
    return %arg0, %c0_i32 : i32, i32
  }
  func.func @transform_1(%arg0: i32) -> (i32, i32) {
    %c0_i32 = arith.constant 0 : i32
    %c0_i32_0 = arith.constant 0 : i32
    %c0_i32_1 = arith.constant 0 : i32
    return %c0_i32, %c0_i32_0 : i32, i32
  }
  func.func @transform_2(%arg0: i32) -> (i32, i32) {
    %c0_i32 = arith.constant 0 : i32
    %c0_i32_0 = arith.constant 0 : i32
    %c0_i32_1 = arith.constant 0 : i32
    return %c0_i32, %c0_i32_0 : i32, i32
  }
  func.func @transform_3(%arg0: i32) -> (i32, i32) {
    %c0_i32 = arith.constant 0 : i32
    %c0_i32_0 = arith.constant 0 : i32
    %c0_i32_1 = arith.constant 0 : i32
    return %c0_i32, %c0_i32_0 : i32, i32
  }
  func.func @transform_4(%arg0: i32) -> (i32, i32) {
    %c0_i32 = arith.constant 0 : i32
    %c0_i32_0 = arith.constant 0 : i32
    %c0_i32_1 = arith.constant 0 : i32
    return %c0_i32, %c0_i32_0 : i32, i32
  }
  func.func @transform_5(%arg0: i32) -> (i32, i32) {
    %c0_i32 = arith.constant 0 : i32
    %c0_i32_0 = arith.constant 0 : i32
    %c0_i32_1 = arith.constant 0 : i32
    return %c0_i32, %c0_i32_0 : i32, i32
  }
  func.func @transform_6(%arg0: i32) -> (i32, i32) {
    %c0_i32 = arith.constant 0 : i32
    %c0_i32_0 = arith.constant 0 : i32
    %c0_i32_1 = arith.constant 0 : i32
    return %c0_i32, %c0_i32_0 : i32, i32
  }
  func.func @transform_7(%arg0: i32) -> (i32, i32) {
    %c0_i32 = arith.constant 0 : i32
    %c0_i32_0 = arith.constant 0 : i32
    %c0_i32_1 = arith.constant 0 : i32
    return %c0_i32, %c0_i32_0 : i32, i32
  }
  func.func @transform_8(%arg0: i32) -> (i32, i32) {
    %c0_i32 = arith.constant 0 : i32
    %c0_i32_0 = arith.constant 0 : i32
    %c0_i32_1 = arith.constant 0 : i32
    return %c0_i32, %c0_i32_0 : i32, i32
  }
  func.func @transform_9(%arg0: i32) -> (i32, i32) {
    %c0_i32 = arith.constant 0 : i32
    %c0_i32_0 = arith.constant 0 : i32
    return %arg0, %c0_i32 : i32, i32
  }
}

</mosaic_0001>

<bundles_post_ra>
// kernel: tpu_custom_call.1
= control target key start
LH: loop header
LB: loop body
LE: loop exit
PB: predicated region body
PF: predicated region fallthrough
CT: control target
= control target key end

     0   :  { %14 = vsyncpa [#allocation7], 0  ;;  %s5356_s0 = inlined_call_operand.vmem [shape: bf16[64,16], index: 0, kind: input, shape index: {}]   ;;  %s5357_s1 = inlined_call_operand.vmem [shape: bf16[16,512], index: 1, kind: input, shape index: {}]   ;;  %s5358_s2 = inlined_call_operand.hbm [shape: bf16[128,512], index: 2, kind: input, shape index: {}]   ;;  %s5359_s3 = inlined_call_operand.vmem [shape: f32[1,512], index: 3, kind: input, shape index: {}]   ;;  %s5360_s4 = inlined_call_operand.hbm [shape: bf16[128,512], index: 4, kind: input, shape index: {}]   ;;  %s5361_s5 = inlined_call_operand.hbm [shape: bf16[128,512], index: 5, kind: input, shape index: {}]   ;;  %s5362_s6 = inlined_call_operand.vmem [shape: f32[1,512], index: 6, kind: input, shape index: {}]   ;;  %s5363_s7 = inlined_call_operand.vmem [shape: bf16[128,16], index: 7, kind: input, shape index: {}]   ;;  %s5364_s8 = inlined_call_operand.vmem [shape: f32[1,16], index: 8, kind: input, shape index: {}]   ;;  %s5365_s9 = inlined_call_operand.vmem [shape: f32[64,16], index: 9, kind: output, shape index: {}]  }
   0x1   :  { %15 = vsyncpa [#allocation9], 0  ;;  %s3969_s30 = smov [#allocation8]   ;;  %s3970_s11 = smov [#allocation6]  }
   0x2   :  { %s39_s10 = sshll.u32 %s3969_s30, 4  ;;  %s25_s12 = sshll.u32 %s3970_s11, 4  ;;  %s40_s10 = int_to_ptr.vmem [resolvable:$true] %s39_s10  ;;  %s4026_s12 = int_to_ptr.vmem [resolvable:$true] %s25_s12 }
   0x3   :  { %s3899_s15 = scalar_lea.hbm %s5360_s4, 4096 }
   0x4   :  { %p3900_p0 = scmp.ne.s32.totalorder %s5360_s4, %s3899_s15  ;;  %p3903_p1 = scmp.lt.u32.totalorder %s3899_s15, %s5360_s4 }
   0x6   :  { %p3905_p2 = pnand %p3903_p1, %p3900_p0 }
   0x8   :  { %3908 = shalt.err (!%p3905_p2)
}
   0x9   :  { %s3909_s20 = scalar_lea.vmem %s40_s10, 4096  ;;  %p3914_p4 = scmp.lt.s32.totalorder %s40_s10, %s40_s10 }
   0xa   :  { %p3910_p3 = scmp.ne.s32.totalorder %s40_s10, %s3909_s20  ;;  %p3915_p5 = scmp.lt.s32.totalorder %s3909_s20, %s3909_s20 }
   0xc   :  { %p3916_p6 = por %p3915_p5, %p3914_p4 }
   0xe   :  { %p3917_p7 = pnand %p3916_p6, %p3910_p3 }
  0x10   :  { %3920 = shalt.err (!%p3917_p7)
}
  0x11   :  { %s3971_s21 = smov 256   ;;  %s3972_s22 = smov 16  }
  0x12   :  { %45 = dma.hbm_to_vmem [thread:$0]  %s5360_s4, 4096, %s40_s10, [#allocation9], %s3971_s21, %s3971_s21, %s3972_s22  }
  0x13   :  { %s3921_s27 = scalar_lea.hbm %s5358_s2, 4096 }
  0x14   :  { %p3922_p8 = scmp.ne.s32.totalorder %s5358_s2, %s3921_s27  ;;  %p3925_p9 = scmp.lt.u32.totalorder %s3921_s27, %s5358_s2 }
  0x16   :  { %p3927_p10 = pnand %p3925_p9, %p3922_p8 }
  0x18   :  { %3930 = shalt.err (!%p3927_p10)
}
  0x19   :  { %s3931_s13 = scalar_lea.vmem %s4026_s12, 4096  ;;  %p3936_p12 = scmp.lt.s32.totalorder %s4026_s12, %s4026_s12 }
  0x1a   :  { %p3932_p11 = scmp.ne.s32.totalorder %s4026_s12, %s3931_s13  ;;  %p3937_p13 = scmp.lt.s32.totalorder %s3931_s13, %s3931_s13 }
  0x1c   :  { %p3938_p0 = por %p3937_p13, %p3936_p12 }
  0x1e   :  { %p3939_p1 = pnand %p3938_p0, %p3932_p11 }
  0x20   :  { %3942 = shalt.err (!%p3939_p1)
}
  0x21   :  { %31 = dma.hbm_to_vmem [thread:$0]  %s5358_s2, 4096, %s4026_s12, [#allocation7], %s3971_s21, %s3971_s21, %s3972_s22  }
  0x22   :  { %s3973_s14 = smov [#allocation10]   ;;  %s3943_s18 = scalar_lea.hbm %s5361_s5, 4096 }
  0x23   :  { %s51_s15 = sshll.u32 %s3973_s14, 4  ;;  %p3944_p2 = scmp.ne.s32.totalorder %s5361_s5, %s3943_s18  ;;  %s52_s15 = int_to_ptr.vmem [resolvable:$true] %s51_s15 }
  0x24   :  { %p3947_p3 = scmp.lt.u32.totalorder %s3943_s18, %s5361_s5 }
  0x26   :  { %p3949_p4 = pnand %p3947_p3, %p3944_p2 }
  0x28   :  { %3952 = shalt.err (!%p3949_p4)
}
  0x29   :  { %s3953_s25 = scalar_lea.vmem %s52_s15, 4096  ;;  %p3958_p6 = scmp.lt.s32.totalorder %s52_s15, %s52_s15 }
  0x2a   :  { %p3954_p5 = scmp.ne.s32.totalorder %s52_s15, %s3953_s25  ;;  %p3959_p7 = scmp.lt.s32.totalorder %s3953_s25, %s3953_s25 }
  0x2c   :  { %p3960_p8 = por %p3959_p7, %p3958_p6 }
  0x2e   :  { %p3961_p9 = pnand %p3960_p8, %p3954_p5 }
  0x30   :  { %3964 = shalt.err (!%p3961_p9)
}
  0x31   :  { %57 = dma.hbm_to_vmem [thread:$0]  %s5361_s5, 4096, %s52_s15, [#allocation9], %s3971_s21, %s3971_s21, %s3972_s22  }
  0x32   :  { %3965 = dma.done.wait [#allocation7], 4096  }
  0x33   :  { %3966 = vsyncadd [#allocation7], 4294963200 }
  0x34   :  { %3967 = dma.done.wait [#allocation9], 8192  }
  0x35   :  { %3968 = vsyncadd [#allocation9], 4294959104  ;;  %v5372_v0 = vmov 0   ;;  %v3417_v1 = vld [vmem:[%s5357_s1 + $0xc] ss:$16 sps:$4 sm:$0xff]   ;;  %v3420_v3 = vld [vmem:[%s5356_s0] sm:$0xff]   ;;  %v96_v42 = vlaneseq }
  0x36   :  { %274 = vmatprep.mubr.bf16.mxu1 %v5372_v0  ;;  %201 = vmatprep.mubr.bf16.mxu0 %v5372_v0  ;;  %v3419_v2 = vld [vmem:[%s5357_s1 + $0x8] ss:$16 sps:$4 sm:$0xff]   ;;  %vm156_vm0 = vcmask 130048   ;;  %v4089_v4 = vld [vmem:[#allocation6 + $0x4] ss:$16 sps:$4 sm:$0xff]   ;;  %v5370_v29 = vmov 0.0|0.0  }
  0x37   :  { %242 = vmatprep.subr.bf16.mxu1 %v3417_v1  ;;  %v4091_v5 = vld [vmem:[#allocation6] ss:$16 sps:$4 sm:$0xff]   ;;  %v4093_v6 = vld [vmem:[#allocation6 + $0x24] ss:$16 sps:$4 sm:$0xff]   ;;  %v3427_v9 = vld [vmem:[%s5356_s0 + $0x8] sm:$0xff]   ;;  %v4254_v43 = vshrl.u32 %v96_v42, 7 }
  0x38   :  { %243 = vmatpush1.bf16.msra.mxu1 %v3419_v2  ;;  %v4098_v7 = vld [vmem:[#allocation6 + $0x20] ss:$16 sps:$4 sm:$0xff]   ;;  %v4102_v8 = vld [vmem:[#allocation6 + $0x44] ss:$16 sps:$4 sm:$0xff]   ;;  %v3441_v21 = vld [vmem:[%s5356_s0 + $0x18] sm:$0xff]  }
  0x39   :  { %549 = vmatprep.subr.bf16.mxu1 %v4089_v4  ;;  %v4108_v10 = vld [vmem:[#allocation6 + $0x40] ss:$16 sps:$4 sm:$0xff]   ;;  %v4111_v11 = vld [vmem:[#allocation6 + $0x64] ss:$16 sps:$4 sm:$0xff]   ;;  %v4164_v25 = vld [vmem:[#allocation6 + $0xc] ss:$16 sps:$4 sm:$0xff]  }
  0x3a   :  { %v4114_v12 = vld [vmem:[#allocation6 + $0x60] ss:$16 sps:$4 sm:$0xff]   ;;  %v3445_v13 = vld [vmem:[%s5357_s1 + $0x4] ss:$16 sps:$4 sm:$0xff]   ;;  %v4171_v26 = vld [vmem:[#allocation6 + $0x8] ss:$16 sps:$4 sm:$0xff]  }
  0x3b   :  { %3217 = vmatmul.mubr.msk.bf16.vlgmr.msra.gmra.mrb[0].mxu1 %vm156_vm0, %v3420_v3  ;;  %v3447_v14 = vld [vmem:[%s5357_s1] ss:$16 sps:$4 sm:$0xff]   ;;  %v4125_v15 = vld [vmem:[#allocation6 + $0x84] ss:$16 sps:$4 sm:$0xff]   ;;  %169 = vmatprep.subr.bf16.mxu0 %v3445_v13  ;;  %v4174_v27 = vld [vmem:[#allocation6 + $0x2c] ss:$16 sps:$4 sm:$0xff]  }
  0x3c   :  { %550 = vmatpush1.bf16.msra.mxu1 %v4091_v5  ;;  %284 = vmatprep.mubr.bf16.mxu1 %v5372_v0  ;;  %v3434_v16 = vld [vmem:[%s5356_s0 + $0x10] sm:$0xff]   ;;  %v4180_v28 = vld [vmem:[#allocation6 + $0x28] ss:$16 sps:$4 sm:$0xff]   ;;  %v4184_v30 = vld [vmem:[#allocation6 + $0x4c] ss:$16 sps:$4 sm:$0xff]   ;;  %5376 = vst [vmem:[#allocation13_spill] sm:$0xff] %v4254_v43 }
  0x3d   :  { %551 = vmatprep.subr.bf16.mxu1 %v4093_v6  ;;  %170 = vmatpush1.bf16.msra.mxu0 %v3447_v14  ;;  %v4131_v17 = vld [vmem:[#allocation6 + $0x80] ss:$16 sps:$4 sm:$0xff]   ;;  %v4135_v18 = vld [vmem:[#allocation6 + $0xa4] ss:$16 sps:$4 sm:$0xff]   ;;  %v4191_v31 = vld [vmem:[#allocation6 + $0x48] ss:$16 sps:$4 sm:$0xff]  }
  0x3e   :  { %668 = vmatprep.subr.bf16.mxu0 %v4089_v4  ;;  %v4141_v19 = vld [vmem:[#allocation6 + $0xa0] ss:$16 sps:$4 sm:$0xff]   ;;  %v4145_v20 = vld [vmem:[#allocation6 + $0xc4] ss:$16 sps:$4 sm:$0xff]   ;;  %v4194_v32 = vld [vmem:[#allocation6 + $0x6c] ss:$16 sps:$4 sm:$0xff]  }
  0x3f   :  { %v4154_v22 = vld [vmem:[#allocation6 + $0xc0] ss:$16 sps:$4 sm:$0xff]   ;;  %v4158_v23 = vld [vmem:[#allocation6 + $0xe4] ss:$16 sps:$4 sm:$0xff]   ;;  %v4200_v33 = vld [vmem:[#allocation6 + $0x68] ss:$16 sps:$4 sm:$0xff]  }
  0x40   :  { %552 = vmatpush1.bf16.msra.mxu1 %v4098_v7  ;;  %3213 = vmatmul.mubr.msk.bf16.vlgmr.msra.gmra.mrb[0].mxu0 %vm156_vm0, %v3420_v3  ;;  %v4160_v24 = vld [vmem:[#allocation6 + $0xe0] ss:$16 sps:$4 sm:$0xff]   ;;  %v4203_v34 = vld [vmem:[#allocation6 + $0x8c] ss:$16 sps:$4 sm:$0xff]   ;;  %v4210_v35 = vld [vmem:[#allocation6 + $0x88] ss:$16 sps:$4 sm:$0xff]  }
  0x41   :  { %553 = vmatprep.subr.bf16.mxu1 %v4102_v8  ;;  %669 = vmatpush1.bf16.msra.mxu0 %v4091_v5  ;;  %v4212_v36 = vld [vmem:[#allocation6 + $0xac] ss:$16 sps:$4 sm:$0xff]   ;;  %v4219_v37 = vld [vmem:[#allocation6 + $0xa8] ss:$16 sps:$4 sm:$0xff]   ;;  %v5367_v44 = vsub.s32 2, %v4254_v43  ;;  %v5366_v46 = vsub.s32 3, %v4254_v43 }
  0x42   :  { %670 = vmatprep.subr.bf16.mxu0 %v4093_v6  ;;  %211 = vmatprep.mubr.bf16.mxu0 %v5372_v0  ;;  %v4222_v38 = vld [vmem:[#allocation6 + $0xcc] ss:$16 sps:$4 sm:$0xff]   ;;  %v4225_v39 = vld [vmem:[#allocation6 + $0xc8] ss:$16 sps:$4 sm:$0xff]   ;;  %v94_v45 = vld [vmem:[%s5359_s3] sm:$0xf] }
  0x43   :  { %3218 = vmatmul.mubr.msk.bf16.gmra.mrb[4].mxu1 %vm156_vm0, %v3427_v9  ;;  %v4228_v40 = vld [vmem:[#allocation6 + $0xec] ss:$16 sps:$4 sm:$0xff]   ;;  %v4231_v41 = vld [vmem:[#allocation6 + $0xe8] ss:$16 sps:$4 sm:$0xff]   ;;  %v4263_v47 = vrot.slane %v94_v45, %v5367_v44  ;;  %v4271_v50 = vrot.slane %v94_v45, %v5366_v46  ;;  %v5368_v63 = vsub.s32 0, %v4254_v43  ;;  %v5369_v1 = vsub.s32 1, %v4254_v43 }
  0x44   :  { %554 = vmatpush1.bf16.msra.mxu1 %v4108_v10  ;;  %294 = vmatprep.mubr.bf16.mxu1 %v5372_v0 }
  0x45   :  { %555 = vmatprep.subr.bf16.mxu1 %v4111_v11  ;;  %671 = vmatpush1.bf16.msra.mxu0 %v4098_v7 }
  0x46   :  { %672 = vmatprep.subr.bf16.mxu0 %v4102_v8 }
  0x48   :  { %556 = vmatpush1.bf16.msra.mxu1 %v4114_v12  ;;  %3214 = vmatmul.mubr.msk.bf16.gmra.mrb[4].mxu0 %vm156_vm0, %v3427_v9  ;;  %v99_v9 = vrot.slane %v94_v45, %v5368_v63 }
  0x49   :  { %557 = vmatprep.subr.bf16.mxu1 %v4125_v15  ;;  %673 = vmatpush1.bf16.msra.mxu0 %v4108_v10 }
  0x4a   :  { %674 = vmatprep.subr.bf16.mxu0 %v4111_v11  ;;  %221 = vmatprep.mubr.bf16.mxu0 %v5372_v0 }
  0x4b   :  { %3219 = vmatmul.mubr.msk.bf16.gmra.mrb[8].mxu1 %vm156_vm0, %v3434_v16 }
  0x4c   :  { %558 = vmatpush1.bf16.msra.mxu1 %v4131_v17  ;;  %304 = vmatprep.mubr.bf16.mxu1 %v5372_v0 }
  0x4d   :  { %559 = vmatprep.subr.bf16.mxu1 %v4135_v18  ;;  %675 = vmatpush1.bf16.msra.mxu0 %v4114_v12 }
  0x4e   :  { %676 = vmatprep.subr.bf16.mxu0 %v4125_v15 }
  0x50   :  { %560 = vmatpush1.bf16.msra.mxu1 %v4141_v19  ;;  %3215 = vmatmul.mubr.msk.bf16.gmra.mrb[8].mxu0 %vm156_vm0, %v3434_v16 }
  0x51   :  { %561 = vmatprep.subr.bf16.mxu1 %v4145_v20  ;;  %677 = vmatpush1.bf16.msra.mxu0 %v4131_v17 }
  0x52   :  { %678 = vmatprep.subr.bf16.mxu0 %v4135_v18  ;;  %231 = vmatprep.mubr.bf16.mxu0 %v5372_v0 }
  0x53   :  { %3220 = vmatmul.mubr.msk.bf16.gmra.mrb[12].mxu1 %vm156_vm0, %v3441_v21 }
  0x54   :  { %562 = vmatpush1.bf16.msra.mxu1 %v4154_v22  ;;  %581 = vmatprep.mubr.bf16.mxu1 %v5372_v0 }
  0x55   :  { %563 = vmatprep.subr.bf16.mxu1 %v4158_v23  ;;  %679 = vmatpush1.bf16.msra.mxu0 %v4141_v19 }
  0x56   :  { %680 = vmatprep.subr.bf16.mxu0 %v4145_v20 }
  0x58   :  { %564 = vmatpush1.bf16.msra.mxu1 %v4160_v24  ;;  %3216 = vmatmul.mubr.msk.bf16.gmra.mrb[12].mxu0 %vm156_vm0, %v3441_v21  ;;  %v103_v21 = vrot.slane %v94_v45, %v5369_v1 }
  0x59   :  { %590 = vmatprep.subr.bf16.mxu1 %v4164_v25  ;;  %681 = vmatpush1.bf16.msra.mxu0 %v4154_v22 }
  0x5a   :  { %700 = vmatprep.mubr.bf16.mxu0 %v5372_v0  ;;  %682 = vmatprep.subr.bf16.mxu0 %v4158_v23 }
  0x5b   :  { %582 = vmatmul.mubr.bf16.vlgmr.msra.gmra.mrb[16].mxu1 %v5370_v29 }
  0x5c   :  { %591 = vmatpush1.bf16.msra.mxu1 %v4171_v26  ;;  %622 = vmatprep.mubr.bf16.mxu1 %v5372_v0 }
  0x5d   :  { %592 = vmatprep.subr.bf16.mxu1 %v4174_v27  ;;  %683 = vmatpush1.bf16.msra.mxu0 %v4160_v24 }
  0x5e   :  { %788 = vmatprep.subr.bf16.mxu0 %v4089_v4 }
  0x60   :  { %593 = vmatpush1.bf16.msra.mxu1 %v4180_v28 }
  0x61   :  { %594 = vmatprep.subr.bf16.mxu1 %v4184_v30 }
  0x64   :  { %595 = vmatpush1.bf16.msra.mxu1 %v4191_v31 }
  0x65   :  { %596 = vmatprep.subr.bf16.mxu1 %v4194_v32 }
  0x68   :  { %597 = vmatpush1.bf16.msra.mxu1 %v4200_v33 }
  0x69   :  { %598 = vmatprep.subr.bf16.mxu1 %v4203_v34 }
  0x6c   :  { %599 = vmatpush1.bf16.msra.mxu1 %v4210_v35 }
  0x6d   :  { %600 = vmatprep.subr.bf16.mxu1 %v4212_v36 }
  0x70   :  { %601 = vmatpush1.bf16.msra.mxu1 %v4219_v37 }
  0x71   :  { %602 = vmatprep.subr.bf16.mxu1 %v4222_v38 }
  0x74   :  { %603 = vmatpush1.bf16.msra.mxu1 %v4225_v39 }
  0x75   :  { %604 = vmatprep.subr.bf16.mxu1 %v4228_v40 }
  0x78   :  { %605 = vmatpush1.bf16.msra.mxu1 %v4231_v41 }
  0x79   :  { %709 = vmatprep.subr.bf16.mxu1 %v4164_v25 }
  0x7b   :  { %623 = vmatmul.mubr.bf16.vlgmr.msra.gmra.mrb[20].mxu1 %v5370_v29 }
  0x7c   :  { %710 = vmatpush1.bf16.msra.mxu1 %v4171_v26  ;;  %741 = vmatprep.mubr.bf16.mxu1 %v5372_v0 }
  0x7d   :  { %711 = vmatprep.subr.bf16.mxu1 %v4174_v27 }
  0x80   :  { %712 = vmatpush1.bf16.msra.mxu1 %v4180_v28 }
  0x81   :  { %713 = vmatprep.subr.bf16.mxu1 %v4184_v30 }
  0x84   :  { %714 = vmatpush1.bf16.msra.mxu1 %v4191_v31 }
  0x85   :  { %715 = vmatprep.subr.bf16.mxu1 %v4194_v32 }
  0x88   :  { %716 = vmatpush1.bf16.msra.mxu1 %v4200_v33 }
  0x89   :  { %717 = vmatprep.subr.bf16.mxu1 %v4203_v34 }
  0x8c   :  { %718 = vmatpush1.bf16.msra.mxu1 %v4210_v35 }
  0x8d   :  { %719 = vmatprep.subr.bf16.mxu1 %v4212_v36 }
  0x90   :  { %720 = vmatpush1.bf16.msra.mxu1 %v4219_v37 }
  0x91   :  { %721 = vmatprep.subr.bf16.mxu1 %v4222_v38 }
  0x94   :  { %722 = vmatpush1.bf16.msra.mxu1 %v4225_v39 }
  0x95   :  { %723 = vmatprep.subr.bf16.mxu1 %v4228_v40 }
  0x98   :  { %724 = vmatpush1.bf16.msra.mxu1 %v4231_v41 }
  0x99   :  { %829 = vmatprep.subr.bf16.mxu1 %v4164_v25 }
 0x10e   :  { %v4265_v48 = vpop.f32.mrb[0].mxu1 }
 0x10f   :  { %v4267_v49 = vpop.f32.mrb[1].mxu1 }
 0x110   :  { %v280_v51 = vpop.f32.mrb[2].mxu1 }
 0x111   :  { %v4274_v52 = vadd.f32 %v280_v51, %v4263_v47  ;;  %v282_v53 = vpop.f32.mrb[3].mxu1 }
 0x112   :  { %v4277_v54 = vadd.f32 %v282_v53, %v4271_v50 }
 0x113   :  { %v203_v2 = vpop.f32.mrb[0].mxu0 }
 0x114   :  { %v205_v13 = vpop.f32.mrb[1].mxu0 }
 0x115   :  { %v207_v42 = vpop.f32.mrb[2].mxu0 }
 0x116   :  { %v286_v55 = vpop.f32.mrb[4].mxu1 }
 0x117   :  { %v4280_v56 = vadd.f32 %v286_v55, %v4263_v47  ;;  %v288_v57 = vpop.f32.mrb[5].mxu1  ;;  %v4303_v55 = vadd.f32 %v207_v42, %v99_v9 }
 0x118   :  { %v4283_v58 = vadd.f32 %v288_v57, %v4271_v50  ;;  %v290_v59 = vpop.f32.mrb[6].mxu1  ;;  %v209_v57 = vpop.f32.mrb[3].mxu0 }
 0x119   :  { %v4286_v60 = vadd.f32 %v290_v59, %v4263_v47  ;;  %v292_v61 = vpop.f32.mrb[7].mxu1  ;;  %v4308_v46 = vadd.f32 %v209_v57, %v103_v21 }
 0x11a   :  { %5377 = vst [vmem:[#allocation14_spill] sm:$0xff] %v4283_v58  ;;  %v4289_v62 = vadd.f32 %v292_v61, %v4271_v50 }
 0x11b   :  { %5378 = vst [vmem:[#allocation15_spill] sm:$0xff] %v4286_v60  ;;  %v213_v44 = vpop.f32.mrb[4].mxu0 }
 0x11c   :  { %5379 = vst [vmem:[#allocation16_spill] sm:$0xff] %v4289_v62  ;;  %v4313_v45 = vadd.f32 %v213_v44, %v99_v9  ;;  %v215_v1 = vpop.f32.mrb[5].mxu0 }
 0x11d   :  { %v4318_v29 = vadd.f32 %v215_v1, %v103_v21  ;;  %v217_v0 = vpop.f32.mrb[6].mxu0  ;;  %v206_v1 = vadd.f32 %v205_v13, %v103_v21 }
 0x11e   :  { %v296_v3 = vpop.f32.mrb[8].mxu1  ;;  %v4323_v43 = vadd.f32 %v217_v0, %v99_v9 }
 0x11f   :  { %v4296_v14 = vadd.f32 %v296_v3, %v4263_v47  ;;  %v298_v16 = vpop.f32.mrb[9].mxu1 }
 0x120   :  { %v4301_v51 = vadd.f32 %v298_v16, %v4271_v50  ;;  %v300_v53 = vpop.f32.mrb[10].mxu1  ;;  %5386 = vst [vmem:[#allocation23_spill] sm:$0xff] %v4323_v43 }
 0x121   :  { %5380 = vst [vmem:[#allocation17_spill] sm:$0xff] %v4296_v14  ;;  %v4306_v59 = vadd.f32 %v300_v53, %v4263_v47  ;;  %v302_v61 = vpop.f32.mrb[11].mxu1 }
 0x122   :  { %5381 = vst [vmem:[#allocation18_spill] sm:$0xff] %v4301_v51  ;;  %v4311_v3 = vadd.f32 %v302_v61, %v4271_v50  ;;  %v219_v61 = vpop.f32.mrb[7].mxu0 }
 0x123   :  { %5382 = vst [vmem:[#allocation19_spill] sm:$0xff] %v4306_v59  ;;  %v4328_v59 = vadd.f32 %v219_v61, %v103_v21  ;;  %v223_v51 = vpop.f32.mrb[8].mxu0 }
 0x124   :  { %5383 = vst [vmem:[#allocation20_spill] sm:$0xff] %v4311_v3  ;;  %v4333_v62 = vadd.f32 %v223_v51, %v99_v9 }
 0x125   :  { %5388 = vst [vmem:[#allocation25_spill] sm:$0xff] %v4328_v59 }
 0x126   :  { %v306_v63 = vpop.f32.mrb[12].mxu1  ;;  %5390 = vst [vmem:[#allocation27_spill] sm:$0xff] %v4333_v62 }
 0x127   :  { %v4316_v16 = vadd.f32 %v306_v63, %v4263_v47  ;;  %v308_v42 = vpop.f32.mrb[13].mxu1 }
 0x128   :  { %v4321_v53 = vadd.f32 %v308_v42, %v4271_v50  ;;  %v310_v57 = vpop.f32.mrb[14].mxu1  ;;  %v225_v42 = vpop.f32.mrb[9].mxu0 }
 0x129   :  { %5384 = vst [vmem:[#allocation21_spill] sm:$0xff] %v4316_v16  ;;  %v4326_v3 = vadd.f32 %v310_v57, %v4263_v47  ;;  %v312_v44 = vpop.f32.mrb[15].mxu1  ;;  %v204_v16 = vadd.f32 %v203_v2, %v99_v9  ;;  %v4335_v60 = vadd.f32 %v225_v42, %v103_v21  ;;  %v227_v43 = vpop.f32.mrb[10].mxu0 }
 0x12a   :  { %5385 = vst [vmem:[#allocation22_spill] sm:$0xff] %v4321_v53  ;;  %v4331_v63 = vadd.f32 %v312_v44, %v4271_v50  ;;  %v4337_v58 = vadd.f32 %v227_v43, %v99_v9  ;;  %v229_v61 = vpop.f32.mrb[11].mxu0 }
 0x12b   :  { %5387 = vst [vmem:[#allocation24_spill] sm:$0xff] %v4326_v3  ;;  %v4339_v44 = vadd.f32 %v229_v61, %v103_v21  ;;  %v233_v2 = vpop.f32.mrb[12].mxu0  ;;  %v277_v61 = vadd.f32 %v4265_v48, %v4263_v47 }
 0x12c   :  { %5389 = vst [vmem:[#allocation26_spill] sm:$0xff] %v4331_v63  ;;  %v4341_v13 = vadd.f32 %v233_v2, %v99_v9  ;;  %v235_v63 = vpop.f32.mrb[13].mxu0 }
 0x12d   :  { %v4343_v51 = vadd.f32 %v235_v63, %v103_v21  ;;  %v237_v62 = vpop.f32.mrb[14].mxu0  ;;  %v279_v63 = vadd.f32 %v4267_v49, %v4271_v50 }
 0x12e   :  { %v583_v14 = vpop.f32.mrb[16].mxu1 }
 0x12f   :  { %v631_v53 = vadd.f32 %v583_v14, %v204_v16  ;;  %v585_v0 = vpop.f32.mrb[17].mxu1  ;;  %5391 = vst [vmem:[#allocation28_spill] sm:$0xff] %v4343_v51  ;;  %v4345_v14 = vadd.f32 %v237_v62, %v99_v9  ;;  %v239_v16 = vpop.f32.mrb[15].mxu0 }
 0x130   :  { %v632_v57 = vadd.f32 %v585_v0, %v206_v1  ;;  %v587_v3 = vpop.f32.mrb[18].mxu1  ;;  %v4347_v42 = vadd.f32 %v239_v16, %v103_v21 }
 0x131   :  { %v588_v59 = vpop.f32.mrb[19].mxu1  ;;  %5392 = vst [vmem:[#allocation29_spill] sm:$0xff] %v4345_v14  ;;  %v3253_v3 = vmul.f32 -1.442695, %v631_v53 }
 0x132   :  { %5393 = vst [vmem:[#allocation30_spill] sm:$0xff] %v4347_v42  ;;  %v3254_v1 = vmul.f32 -1.442695, %v632_v57 }
 0x134   :  { %3579 = vpow2.f32 %v3254_v1 }
 0x135   :  { %3581 = vpow2.f32 %v3253_v3 }
 0x13e   :  { %v3580_v43 = vpop.eup %3579 }
 0x13f   :  { %v3582_v59 = vpop.eup %3581  ;;  %v645_v0 = vadd.f32 1.0, %v3580_v43 }
 0x140   :  { %v644_v2 = vadd.f32 1.0, %v3582_v59 }
 0x141   :  { %3583 = vrcp.f32 %v645_v0 }
 0x142   :  { %3585 = vrcp.f32 %v644_v2 }
 0x14b   :  { %v3584_v1 = vpop.eup %3583 }
 0x14c   :  { %v3586_v3 = vpop.eup %3585  ;;  %v654_v47 = vmul.f32 0.0, %v3584_v1 }
 0x14e   :  { %v624_v51 = vpop.f32.mrb[20].mxu1 }
 0x14f   :  { %v633_v62 = vadd.f32 %v624_v51, %v277_v61  ;;  %v626_v9 = vpop.f32.mrb[21].mxu1 }
 0x150   :  { %v634_v21 = vadd.f32 %v626_v9, %v279_v63  ;;  %v628_v16 = vpop.f32.mrb[22].mxu1 }
 0x151   :  { %v3255_v53 = vmul.f32 -1.442695, %v633_v62  ;;  %v629_v57 = vpop.f32.mrb[23].mxu1 }
 0x152   :  { %3587 = vtanh.f32 %v634_v21 }
 0x153   :  { %3589 = vpow2.f32 %v3255_v53 }
 0x15c   :  { %v3588_v43 = vpop.eup %3587 }
 0x15d   :  { %v3590_v42 = vpop.eup %3589  ;;  %v655_v48 = vmul.f32 %v3588_v43, %v3586_v3 }
 0x15e   :  { %v646_v59 = vadd.f32 1.0, %v3590_v42  ;;  %v5394_v42 = vmov 0  }
 0x15f   :  { %v4353_v14 = vadd.f32 %v655_v48, %v654_v47 }
 0x160   :  { %3591 = vrcp.f32 %v646_v59 }
 0x161   :  { %3593 = vtanh.f32 %v4353_v14 }
 0x16a   :  { %v3592_v49 = vpop.eup %3591 }
 0x16b   :  { %v3594_v50 = vpop.eup %3593 }
 0x16c   :  { %v4356_v51 = vmul.f32 %v3594_v50, %v3592_v49 }
 0x16e   :  { %v660_v0 = vpack.c.bf16 %v4356_v51, %v4356_v51 }
 0x170   :  { %701 = vmatmul.mubr.bf16.vlgmr.msra.gmra.mrb[16].mxu0 %v660_v0  ;;  %742 = vmatmul.mubr.bf16.vlgmr.msra.gmra.mrb[24].mxu1 %v660_v0 }
 0x171   :  { %789 = vmatpush1.bf16.msra.mxu0 %v4091_v5  ;;  %830 = vmatpush1.bf16.msra.mxu1 %v4171_v26 }
 0x172   :  { %790 = vmatprep.subr.bf16.mxu0 %v4093_v6  ;;  %831 = vmatprep.subr.bf16.mxu1 %v4174_v27 }
 0x173   :  { %820 = vmatprep.mubr.bf16.mxu0 %v5394_v42  ;;  %861 = vmatprep.mubr.bf16.mxu1 %v5394_v42 }
 0x175   :  { %791 = vmatpush1.bf16.msra.mxu0 %v4098_v7  ;;  %832 = vmatpush1.bf16.msra.mxu1 %v4180_v28 }
 0x176   :  { %792 = vmatprep.subr.bf16.mxu0 %v4102_v8  ;;  %833 = vmatprep.subr.bf16.mxu1 %v4184_v30 }
 0x179   :  { %793 = vmatpush1.bf16.msra.mxu0 %v4108_v10  ;;  %834 = vmatpush1.bf16.msra.mxu1 %v4191_v31 }
 0x17a   :  { %794 = vmatprep.subr.bf16.mxu0 %v4111_v11  ;;  %835 = vmatprep.subr.bf16.mxu1 %v4194_v32 }
 0x17d   :  { %795 = vmatpush1.bf16.msra.mxu0 %v4114_v12  ;;  %836 = vmatpush1.bf16.msra.mxu1 %v4200_v33 }
 0x17e   :  { %796 = vmatprep.subr.bf16.mxu0 %v4125_v15  ;;  %837 = vmatprep.subr.bf16.mxu1 %v4203_v34 }
 0x181   :  { %797 = vmatpush1.bf16.msra.mxu0 %v4131_v17  ;;  %838 = vmatpush1.bf16.msra.mxu1 %v4210_v35 }
 0x182   :  { %798 = vmatprep.subr.bf16.mxu0 %v4135_v18  ;;  %839 = vmatprep.subr.bf16.mxu1 %v4212_v36 }
 0x185   :  { %799 = vmatpush1.bf16.msra.mxu0 %v4141_v19  ;;  %840 = vmatpush1.bf16.msra.mxu1 %v4219_v37 }
 0x186   :  { %800 = vmatprep.subr.bf16.mxu0 %v4145_v20  ;;  %841 = vmatprep.subr.bf16.mxu1 %v4222_v38 }
 0x189   :  { %801 = vmatpush1.bf16.msra.mxu0 %v4154_v22  ;;  %842 = vmatpush1.bf16.msra.mxu1 %v4225_v39 }
 0x18a   :  { %802 = vmatprep.subr.bf16.mxu0 %v4158_v23  ;;  %843 = vmatprep.subr.bf16.mxu1 %v4228_v40 }
 0x18d   :  { %803 = vmatpush1.bf16.msra.mxu0 %v4160_v24  ;;  %844 = vmatpush1.bf16.msra.mxu1 %v4231_v41 }
 0x18e   :  { %908 = vmatprep.subr.bf16.mxu0 %v4089_v4  ;;  %949 = vmatprep.subr.bf16.mxu1 %v4164_v25 }
 0x243   :  { %v702_v61 = vpop.f32.mrb[16].mxu0  ;;  %v743_v2 = vpop.f32.mrb[24].mxu1 }
 0x244   :  { %v750_v63 = vadd.f32 %v702_v61, %v4303_v55  ;;  %v752_v62 = vadd.f32 %v743_v2, %v4274_v52  ;;  %v704_v9 = vpop.f32.mrb[17].mxu0  ;;  %v745_v21 = vpop.f32.mrb[25].mxu1 }
 0x245   :  { %v751_v16 = vadd.f32 %v704_v9, %v4308_v46  ;;  %v753_v53 = vadd.f32 %v745_v21, %v4277_v54  ;;  %v706_v57 = vpop.f32.mrb[18].mxu0  ;;  %v747_v1 = vpop.f32.mrb[26].mxu1 }
 0x246   :  { %v3256_v3 = vmul.f32 -1.442695, %v750_v63  ;;  %v707_v43 = vpop.f32.mrb[19].mxu0  ;;  %v748_v47 = vpop.f32.mrb[27].mxu1  ;;  %v3258_v59 = vmul.f32 -1.442695, %v752_v62 }
 0x247   :  { %v3257_v48 = vmul.f32 -1.442695, %v751_v16 }
 0x248   :  { %3595 = vpow2.f32 %v3256_v3 }
 0x249   :  { %3597 = vpow2.f32 %v3257_v48 }
 0x24a   :  { %3599 = vtanh.f32 %v753_v53 }
 0x24b   :  { %3601 = vpow2.f32 %v3258_v59 }
 0x252   :  { %v3596_v49 = vpop.eup %3595 }
 0x253   :  { %v763_v50 = vadd.f32 1.0, %v3596_v49  ;;  %v3598_v55 = vpop.eup %3597  ;;  %v5395_v49 = vld [vmem:[#allocation14_spill] sm:$0xff] }
 0x254   :  { %v764_v52 = vadd.f32 1.0, %v3598_v55  ;;  %v3600_v46 = vpop.eup %3599 }
 0x255   :  { %3603 = vrcp.f32 %v763_v50  ;;  %v3602_v0 = vpop.eup %3601 }
 0x256   :  { %3605 = vrcp.f32 %v764_v52  ;;  %v765_v63 = vadd.f32 1.0, %v3602_v0 }
 0x258   :  { %3607 = vrcp.f32 %v765_v63 }
 0x25f   :  { %v3604_v54 = vpop.eup %3603 }
 0x260   :  { %v774_v61 = vmul.f32 %v3604_v54, %v3600_v46  ;;  %v3606_v2 = vpop.eup %3605 }
 0x261   :  { %v773_v9 = vmul.f32 %v3606_v2, %v4353_v14 }
 0x262   :  { %v3608_v62 = vpop.eup %3607 }
 0x263   :  { %v4399_v21 = vadd.f32 %v774_v61, %v773_v9 }
 0x265   :  { %3609 = vtanh.f32 %v4399_v21 }
 0x26f   :  { %v3610_v16 = vpop.eup %3609 }
 0x270   :  { %v4402_v53 = vmul.f32 %v3610_v16, %v3608_v62 }
 0x272   :  { %v780_v57 = vpack.c.bf16 %v4402_v53, %v4402_v53 }
 0x274   :  { %821 = vmatmul.mubr.bf16.vlgmr.msra.gmra.mrb[20].mxu0 %v780_v57  ;;  %862 = vmatmul.mubr.bf16.vlgmr.msra.gmra.mrb[28].mxu1 %v780_v57 }
 0x275   :  { %909 = vmatpush1.bf16.msra.mxu0 %v4091_v5  ;;  %950 = vmatpush1.bf16.msra.mxu1 %v4171_v26 }
 0x276   :  { %910 = vmatprep.subr.bf16.mxu0 %v4093_v6  ;;  %951 = vmatprep.subr.bf16.mxu1 %v4174_v27 }
 0x277   :  { %940 = vmatprep.mubr.bf16.mxu0 %v5394_v42  ;;  %981 = vmatprep.mubr.bf16.mxu1 %v5394_v42 }
 0x279   :  { %911 = vmatpush1.bf16.msra.mxu0 %v4098_v7  ;;  %952 = vmatpush1.bf16.msra.mxu1 %v4180_v28 }
 0x27a   :  { %912 = vmatprep.subr.bf16.mxu0 %v4102_v8  ;;  %953 = vmatprep.subr.bf16.mxu1 %v4184_v30 }
 0x27d   :  { %913 = vmatpush1.bf16.msra.mxu0 %v4108_v10  ;;  %954 = vmatpush1.bf16.msra.mxu1 %v4191_v31 }
 0x27e   :  { %914 = vmatprep.subr.bf16.mxu0 %v4111_v11  ;;  %955 = vmatprep.subr.bf16.mxu1 %v4194_v32 }
 0x281   :  { %915 = vmatpush1.bf16.msra.mxu0 %v4114_v12  ;;  %956 = vmatpush1.bf16.msra.mxu1 %v4200_v33 }
 0x282   :  { %916 = vmatprep.subr.bf16.mxu0 %v4125_v15  ;;  %957 = vmatprep.subr.bf16.mxu1 %v4203_v34 }
 0x285   :  { %917 = vmatpush1.bf16.msra.mxu0 %v4131_v17  ;;  %958 = vmatpush1.bf16.msra.mxu1 %v4210_v35 }
 0x286   :  { %918 = vmatprep.subr.bf16.mxu0 %v4135_v18  ;;  %959 = vmatprep.subr.bf16.mxu1 %v4212_v36 }
 0x289   :  { %919 = vmatpush1.bf16.msra.mxu0 %v4141_v19  ;;  %960 = vmatpush1.bf16.msra.mxu1 %v4219_v37 }
 0x28a   :  { %920 = vmatprep.subr.bf16.mxu0 %v4145_v20  ;;  %961 = vmatprep.subr.bf16.mxu1 %v4222_v38 }
 0x28d   :  { %921 = vmatpush1.bf16.msra.mxu0 %v4154_v22  ;;  %962 = vmatpush1.bf16.msra.mxu1 %v4225_v39 }
 0x28e   :  { %922 = vmatprep.subr.bf16.mxu0 %v4158_v23  ;;  %963 = vmatprep.subr.bf16.mxu1 %v4228_v40 }
 0x291   :  { %923 = vmatpush1.bf16.msra.mxu0 %v4160_v24  ;;  %964 = vmatpush1.bf16.msra.mxu1 %v4231_v41 }
 0x292   :  { %1028 = vmatprep.subr.bf16.mxu0 %v4089_v4  ;;  %1069 = vmatprep.subr.bf16.mxu1 %v4164_v25 }
 0x347   :  { %v822_v14 = vpop.f32.mrb[20].mxu0  ;;  %v863_v1 = vpop.f32.mrb[28].mxu1 }
 0x348   :  { %v870_v3 = vadd.f32 %v822_v14, %v4313_v45  ;;  %v872_v43 = vadd.f32 %v863_v1, %v4280_v56  ;;  %v824_v47 = vpop.f32.mrb[21].mxu0  ;;  %v865_v48 = vpop.f32.mrb[29].mxu1 }
 0x349   :  { %v871_v59 = vadd.f32 %v824_v47, %v4318_v29  ;;  %v873_v50 = vadd.f32 %v865_v48, %v5395_v49  ;;  %v826_v55 = vpop.f32.mrb[22].mxu0  ;;  %v867_v52 = vpop.f32.mrb[30].mxu1 }
 0x34a   :  { %v3259_v46 = vmul.f32 -1.442695, %v870_v3  ;;  %v827_v0 = vpop.f32.mrb[23].mxu0  ;;  %v868_v54 = vpop.f32.mrb[31].mxu1  ;;  %v3261_v61 = vmul.f32 -1.442695, %v872_v43 }
 0x34b   :  { %v3260_v4 = vmul.f32 -1.442695, %v871_v59 }
 0x34c   :  { %3611 = vpow2.f32 %v3259_v46 }
 0x34d   :  { %3613 = vpow2.f32 %v3260_v4 }
 0x34e   :  { %3615 = vtanh.f32 %v873_v50 }
 0x34f   :  { %3617 = vpow2.f32 %v3261_v61 }
 0x356   :  { %v3612_v2 = vpop.eup %3611 }
 0x357   :  { %v883_v63 = vadd.f32 1.0, %v3612_v2  ;;  %v3614_v45 = vpop.eup %3613 }
 0x358   :  { %v884_v56 = vadd.f32 1.0, %v3614_v45  ;;  %v3616_v29 = vpop.eup %3615 }
 0x359   :  { %3619 = vrcp.f32 %v883_v63  ;;  %v3618_v9 = vpop.eup %3617 }
 0x35a   :  { %3621 = vrcp.f32 %v884_v56  ;;  %v885_v14 = vadd.f32 1.0, %v3618_v9 }
 0x35c   :  { %3623 = vrcp.f32 %v885_v14 }
 0x363   :  { %v3620_v62 = vpop.eup %3619 }
 0x364   :  { %v894_v16 = vmul.f32 %v3620_v62, %v3616_v29  ;;  %v3622_v57 = vpop.eup %3621 }
 0x365   :  { %v893_v1 = vmul.f32 %v3622_v57, %v4399_v21 }
 0x366   :  { %v3624_v43 = vpop.eup %3623 }
 0x367   :  { %v4445_v3 = vadd.f32 %v894_v16, %v893_v1  ;;  %v4500_v1 = vld [vmem:[#allocation6] ss:$16 sps:$4 sm:$0xff]  }
 0x369   :  { %3625 = vtanh.f32 %v4445_v3 }
 0x373   :  { %v3626_v47 = vpop.eup %3625 }
 0x374   :  { %v4448_v48 = vmul.f32 %v3626_v47, %v3624_v43  ;;  %v4510_v43 = vld [vmem:[#allocation6 + $0x20] ss:$16 sps:$4 sm:$0xff]   ;;  %v4514_v47 = vld [vmem:[#allocation6 + $0x44] ss:$16 sps:$4 sm:$0xff]  }
 0x376   :  { %v900_v59 = vpack.c.bf16 %v4448_v48, %v4448_v48 }
 0x378   :  { %941 = vmatmul.mubr.bf16.vlgmr.msra.gmra.mrb[24].mxu0 %v900_v59  ;;  %982 = vmatmul.mubr.bf16.vlgmr.msra.gmra.mrb[32].mxu1 %v900_v59  ;;  %v4526_v59 = vld [vmem:[#allocation6 + $0x60] ss:$16 sps:$4 sm:$0xff]  }
 0x379   :  { %1029 = vmatpush1.bf16.msra.mxu0 %v4091_v5  ;;  %1070 = vmatpush1.bf16.msra.mxu1 %v4171_v26  ;;  %v4484_v5 = vld [vmem:[#allocation6 + $0x4] ss:$16 sps:$4 sm:$0xff]  }
 0x37a   :  { %1030 = vmatprep.subr.bf16.mxu0 %v4093_v6  ;;  %1071 = vmatprep.subr.bf16.mxu1 %v4174_v27 }
 0x37b   :  { %1060 = vmatprep.mubr.bf16.mxu0 %v5394_v42  ;;  %1101 = vmatprep.mubr.bf16.mxu1 %v5394_v42 }
 0x37d   :  { %1031 = vmatpush1.bf16.msra.mxu0 %v4098_v7  ;;  %1072 = vmatpush1.bf16.msra.mxu1 %v4180_v28 }
 0x37e   :  { %1032 = vmatprep.subr.bf16.mxu0 %v4102_v8  ;;  %1073 = vmatprep.subr.bf16.mxu1 %v4184_v30  ;;  %v5396_v8 = vld [vmem:[#allocation23_spill] sm:$0xff] }
 0x381   :  { %1033 = vmatpush1.bf16.msra.mxu0 %v4108_v10  ;;  %1074 = vmatpush1.bf16.msra.mxu1 %v4191_v31 }
 0x382   :  { %1034 = vmatprep.subr.bf16.mxu0 %v4111_v11  ;;  %1075 = vmatprep.subr.bf16.mxu1 %v4194_v32  ;;  %v5397_v11 = vld [vmem:[#allocation15_spill] sm:$0xff] }
 0x385   :  { %1035 = vmatpush1.bf16.msra.mxu0 %v4114_v12  ;;  %1076 = vmatpush1.bf16.msra.mxu1 %v4200_v33 }
 0x386   :  { %1036 = vmatprep.subr.bf16.mxu0 %v4125_v15  ;;  %1077 = vmatprep.subr.bf16.mxu1 %v4203_v34 }
 0x389   :  { %1037 = vmatpush1.bf16.msra.mxu0 %v4131_v17  ;;  %1078 = vmatpush1.bf16.msra.mxu1 %v4210_v35 }
 0x38a   :  { %1038 = vmatprep.subr.bf16.mxu0 %v4135_v18  ;;  %1079 = vmatprep.subr.bf16.mxu1 %v4212_v36  ;;  %v5398_v18 = vld [vmem:[#allocation25_spill] sm:$0xff] }
 0x38d   :  { %1039 = vmatpush1.bf16.msra.mxu0 %v4141_v19  ;;  %1080 = vmatpush1.bf16.msra.mxu1 %v4219_v37 }
 0x38e   :  { %1040 = vmatprep.subr.bf16.mxu0 %v4145_v20  ;;  %1081 = vmatprep.subr.bf16.mxu1 %v4222_v38  ;;  %v5399_v20 = vld [vmem:[#allocation16_spill] sm:$0xff] }
 0x391   :  { %1041 = vmatpush1.bf16.msra.mxu0 %v4154_v22  ;;  %1082 = vmatpush1.bf16.msra.mxu1 %v4225_v39 }
 0x392   :  { %1042 = vmatprep.subr.bf16.mxu0 %v4158_v23  ;;  %1083 = vmatprep.subr.bf16.mxu1 %v4228_v40 }
 0x395   :  { %1043 = vmatpush1.bf16.msra.mxu0 %v4160_v24  ;;  %1084 = vmatpush1.bf16.msra.mxu1 %v4231_v41 }
 0x396   :  { %1148 = vmatprep.subr.bf16.mxu0 %v4484_v5  ;;  %1189 = vmatprep.subr.bf16.mxu1 %v4164_v25 }
 0x44b   :  { %v942_v6 = vpop.f32.mrb[24].mxu0  ;;  %v983_v7 = vpop.f32.mrb[32].mxu1 }
 0x44c   :  { %v990_v10 = vadd.f32 %v942_v6, %v5396_v8  ;;  %v992_v12 = vadd.f32 %v983_v7, %v5397_v11  ;;  %v944_v15 = vpop.f32.mrb[25].mxu0  ;;  %v985_v17 = vpop.f32.mrb[33].mxu1  ;;  %v4546_v6 = vld [vmem:[#allocation6 + $0xc4] ss:$16 sps:$4 sm:$0xff]   ;;  %v4550_v7 = vld [vmem:[#allocation6 + $0xc0] ss:$16 sps:$4 sm:$0xff]  }
 0x44d   :  { %v991_v19 = vadd.f32 %v944_v15, %v5398_v18  ;;  %v993_v22 = vadd.f32 %v985_v17, %v5399_v20  ;;  %v946_v23 = vpop.f32.mrb[26].mxu0  ;;  %v987_v24 = vpop.f32.mrb[34].mxu1  ;;  %v4554_v8 = vld [vmem:[#allocation6 + $0xe4] ss:$16 sps:$4 sm:$0xff]   ;;  %v4563_v11 = vld [vmem:[#allocation6 + $0xc] ss:$16 sps:$4 sm:$0xff]  }
 0x44e   :  { %v3262_v21 = vmul.f32 -1.442695, %v990_v10  ;;  %v947_v49 = vpop.f32.mrb[27].mxu0  ;;  %v988_v50 = vpop.f32.mrb[35].mxu1  ;;  %v3264_v25 = vmul.f32 -1.442695, %v992_v12 }
 0x44f   :  { %v3263_v55 = vmul.f32 -1.442695, %v991_v19  ;;  %v4558_v10 = vld [vmem:[#allocation6 + $0xe0] ss:$16 sps:$4 sm:$0xff]  }
 0x450   :  { %3627 = vpow2.f32 %v3262_v21  ;;  %v5400_v17 = vld [vmem:[#allocation27_spill] sm:$0xff]  ;;  %v5401_v19 = vld [vmem:[#allocation17_spill] sm:$0xff]  ;;  %v5402_v21 = vld [vmem:[#allocation18_spill] sm:$0xff] }
 0x451   :  { %3629 = vpow2.f32 %v3263_v55 }
 0x452   :  { %3631 = vtanh.f32 %v993_v22 }
 0x453   :  { %3633 = vpow2.f32 %v3264_v25 }
 0x45a   :  { %v3628_v52 = vpop.eup %3627 }
 0x45b   :  { %v1003_v46 = vadd.f32 1.0, %v3628_v52  ;;  %v3630_v0 = vpop.eup %3629 }
 0x45c   :  { %v1004_v54 = vadd.f32 1.0, %v3630_v0  ;;  %v3632_v4 = vpop.eup %3631 }
 0x45d   :  { %3635 = vrcp.f32 %v1003_v46  ;;  %v3634_v61 = vpop.eup %3633 }
 0x45e   :  { %3637 = vrcp.f32 %v1004_v54  ;;  %v1005_v56 = vadd.f32 1.0, %v3634_v61 }
 0x460   :  { %3639 = vrcp.f32 %v1005_v56 }
 0x467   :  { %v3636_v2 = vpop.eup %3635 }
 0x468   :  { %v1014_v63 = vmul.f32 %v3636_v2, %v3632_v4  ;;  %v3638_v45 = vpop.eup %3637 }
 0x469   :  { %v1013_v29 = vmul.f32 %v3638_v45, %v4445_v3  ;;  %v4504_v3 = vld [vmem:[#allocation6 + $0x24] ss:$16 sps:$4 sm:$0xff]  }
 0x46a   :  { %v3640_v62 = vpop.eup %3639 }
 0x46b   :  { %v4493_v9 = vadd.f32 %v1014_v63, %v1013_v29 }
 0x46d   :  { %3641 = vtanh.f32 %v4493_v9 }
 0x477   :  { %v3642_v16 = vpop.eup %3641 }
 0x478   :  { %v4496_v57 = vmul.f32 %v3642_v16, %v3640_v62 }
 0x47a   :  { %v1020_v14 = vpack.c.bf16 %v4496_v57, %v4496_v57 }
 0x47c   :  { %1061 = vmatmul.mubr.bf16.vlgmr.msra.gmra.mrb[28].mxu0 %v1020_v14  ;;  %1102 = vmatmul.mubr.bf16.vlgmr.msra.gmra.mrb[36].mxu1 %v1020_v14 }
 0x47d   :  { %1149 = vmatpush1.bf16.msra.mxu0 %v4500_v1  ;;  %1190 = vmatpush1.bf16.msra.mxu1 %v4171_v26  ;;  %v4518_v26 = vld [vmem:[#allocation6 + $0x40] ss:$16 sps:$4 sm:$0xff]  }
 0x47e   :  { %1150 = vmatprep.subr.bf16.mxu0 %v4504_v3  ;;  %1191 = vmatprep.subr.bf16.mxu1 %v4174_v27  ;;  %v4522_v27 = vld [vmem:[#allocation6 + $0x64] ss:$16 sps:$4 sm:$0xff]  }
 0x47f   :  { %1180 = vmatprep.mubr.bf16.mxu0 %v5394_v42  ;;  %1221 = vmatprep.mubr.bf16.mxu1 %v5394_v42 }
 0x481   :  { %1151 = vmatpush1.bf16.msra.mxu0 %v4510_v43  ;;  %1192 = vmatpush1.bf16.msra.mxu1 %v4180_v28  ;;  %v4530_v28 = vld [vmem:[#allocation6 + $0x84] ss:$16 sps:$4 sm:$0xff]  }
 0x482   :  { %1152 = vmatprep.subr.bf16.mxu0 %v4514_v47  ;;  %1193 = vmatprep.subr.bf16.mxu1 %v4184_v30  ;;  %v4534_v30 = vld [vmem:[#allocation6 + $0x80] ss:$16 sps:$4 sm:$0xff]  }
 0x485   :  { %1153 = vmatpush1.bf16.msra.mxu0 %v4518_v26  ;;  %1194 = vmatpush1.bf16.msra.mxu1 %v4191_v31  ;;  %v4538_v31 = vld [vmem:[#allocation6 + $0xa4] ss:$16 sps:$4 sm:$0xff]  }
 0x486   :  { %1154 = vmatprep.subr.bf16.mxu0 %v4522_v27  ;;  %1195 = vmatprep.subr.bf16.mxu1 %v4194_v32  ;;  %v4542_v32 = vld [vmem:[#allocation6 + $0xa0] ss:$16 sps:$4 sm:$0xff]  }
 0x489   :  { %1155 = vmatpush1.bf16.msra.mxu0 %v4526_v59  ;;  %1196 = vmatpush1.bf16.msra.mxu1 %v4200_v33 }
 0x48a   :  { %1156 = vmatprep.subr.bf16.mxu0 %v4530_v28  ;;  %1197 = vmatprep.subr.bf16.mxu1 %v4203_v34 }
 0x48d   :  { %1157 = vmatpush1.bf16.msra.mxu0 %v4534_v30  ;;  %1198 = vmatpush1.bf16.msra.mxu1 %v4210_v35 }
 0x48e   :  { %1158 = vmatprep.subr.bf16.mxu0 %v4538_v31  ;;  %1199 = vmatprep.subr.bf16.mxu1 %v4212_v36 }
 0x491   :  { %1159 = vmatpush1.bf16.msra.mxu0 %v4542_v32  ;;  %1200 = vmatpush1.bf16.msra.mxu1 %v4219_v37 }
 0x492   :  { %1160 = vmatprep.subr.bf16.mxu0 %v4546_v6  ;;  %1201 = vmatprep.subr.bf16.mxu1 %v4222_v38 }
 0x495   :  { %1161 = vmatpush1.bf16.msra.mxu0 %v4550_v7  ;;  %1202 = vmatpush1.bf16.msra.mxu1 %v4225_v39 }
 0x496   :  { %1162 = vmatprep.subr.bf16.mxu0 %v4554_v8  ;;  %1203 = vmatprep.subr.bf16.mxu1 %v4228_v40 }
 0x499   :  { %1163 = vmatpush1.bf16.msra.mxu0 %v4558_v10  ;;  %1204 = vmatpush1.bf16.msra.mxu1 %v4231_v41 }
 0x49a   :  { %1268 = vmatprep.subr.bf16.mxu0 %v4484_v5  ;;  %1309 = vmatprep.subr.bf16.mxu1 %v4563_v11 }
 0x54f   :  { %v1062_v12 = vpop.f32.mrb[28].mxu0  ;;  %v1103_v15 = vpop.f32.mrb[36].mxu1 }
 0x550   :  { %v1110_v18 = vadd.f32 %v1062_v12, %v5400_v17  ;;  %v1112_v20 = vadd.f32 %v1103_v15, %v5401_v19  ;;  %v1064_v22 = vpop.f32.mrb[29].mxu0  ;;  %v1105_v23 = vpop.f32.mrb[37].mxu1 }
 0x551   :  { %v1111_v24 = vadd.f32 %v1064_v22, %v4335_v60  ;;  %v1113_v49 = vadd.f32 %v1105_v23, %v5402_v21  ;;  %v1066_v50 = vpop.f32.mrb[30].mxu0  ;;  %v1107_v55 = vpop.f32.mrb[38].mxu1  ;;  %v4589_v22 = vld [vmem:[#allocation6 + $0x28] ss:$16 sps:$4 sm:$0xff]   ;;  %v4593_v23 = vld [vmem:[#allocation6 + $0x4c] ss:$16 sps:$4 sm:$0xff]  }
 0x552   :  { %v3265_v25 = vmul.f32 -1.442695, %v1110_v18  ;;  %v1067_v52 = vpop.f32.mrb[31].mxu0  ;;  %v1108_v46 = vpop.f32.mrb[39].mxu1  ;;  %v3267_v54 = vmul.f32 -1.442695, %v1112_v20 }
 0x553   :  { %v3266_v0 = vmul.f32 -1.442695, %v1111_v24  ;;  %v4579_v20 = vld [vmem:[#allocation6 + $0x8] ss:$16 sps:$4 sm:$0xff]   ;;  %v4601_v21 = vld [vmem:[#allocation6 + $0x6c] ss:$16 sps:$4 sm:$0xff]  }
 0x554   :  { %3643 = vpow2.f32 %v3265_v25  ;;  %v4597_v24 = vld [vmem:[#allocation6 + $0x48] ss:$16 sps:$4 sm:$0xff]  }
 0x555   :  { %3645 = vpow2.f32 %v3266_v0  ;;  %v5404_v50 = vld [vmem:[#allocation20_spill] sm:$0xff] }
 0x556   :  { %3647 = vtanh.f32 %v1113_v49 }
 0x557   :  { %3649 = vpow2.f32 %v3267_v54 }
 0x55e   :  { %v3644_v4 = vpop.eup %3643 }
 0x55f   :  { %v1123_v61 = vadd.f32 1.0, %v3644_v4  ;;  %v3646_v2 = vpop.eup %3645 }
 0x560   :  { %v1124_v63 = vadd.f32 1.0, %v3646_v2  ;;  %v3648_v60 = vpop.eup %3647 }
 0x561   :  { %3651 = vrcp.f32 %v1123_v61  ;;  %v3650_v45 = vpop.eup %3649 }
 0x562   :  { %3653 = vrcp.f32 %v1124_v63  ;;  %v1125_v16 = vadd.f32 1.0, %v3650_v45 }
 0x564   :  { %3655 = vrcp.f32 %v1125_v16 }
 0x56b   :  { %v3652_v56 = vpop.eup %3651 }
 0x56c   :  { %v1134_v29 = vmul.f32 %v3652_v56, %v3648_v60  ;;  %v3654_v62 = vpop.eup %3653 }
 0x56d   :  { %v1133_v14 = vmul.f32 %v3654_v62, %v4493_v9  ;;  %v4583_v9 = vld [vmem:[#allocation6 + $0x2c] ss:$16 sps:$4 sm:$0xff]  }
 0x56e   :  { %v3656_v15 = vpop.eup %3655 }
 0x56f   :  { %v4571_v12 = vadd.f32 %v1134_v29, %v1133_v14 }
 0x571   :  { %3657 = vtanh.f32 %v4571_v12 }
 0x57b   :  { %v3658_v17 = vpop.eup %3657 }
 0x57c   :  { %v4574_v18 = vmul.f32 %v3658_v17, %v3656_v15 }
 0x57e   :  { %v1140_v19 = vpack.c.bf16 %v4574_v18, %v4574_v18 }
 0x580   :  { %1181 = vmatmul.mubr.bf16.vlgmr.msra.gmra.mrb[32].mxu0 %v1140_v19  ;;  %1222 = vmatmul.mubr.bf16.vlgmr.msra.gmra.mrb[40].mxu1 %v1140_v19  ;;  %v5405_v19 = vld [vmem:[#allocation21_spill] sm:$0xff] }
 0x581   :  { %1269 = vmatpush1.bf16.msra.mxu0 %v4500_v1  ;;  %1310 = vmatpush1.bf16.msra.mxu1 %v4579_v20 }
 0x582   :  { %1270 = vmatprep.subr.bf16.mxu0 %v4504_v3  ;;  %1311 = vmatprep.subr.bf16.mxu1 %v4583_v9 }
 0x583   :  { %1300 = vmatprep.mubr.bf16.mxu0 %v5394_v42  ;;  %1341 = vmatprep.mubr.bf16.mxu1 %v5394_v42 }
 0x585   :  { %1271 = vmatpush1.bf16.msra.mxu0 %v4510_v43  ;;  %1312 = vmatpush1.bf16.msra.mxu1 %v4589_v22 }
 0x586   :  { %1272 = vmatprep.subr.bf16.mxu0 %v4514_v47  ;;  %1313 = vmatprep.subr.bf16.mxu1 %v4593_v23 }
 0x589   :  { %1273 = vmatpush1.bf16.msra.mxu0 %v4518_v26  ;;  %1314 = vmatpush1.bf16.msra.mxu1 %v4597_v24 }
 0x58a   :  { %1274 = vmatprep.subr.bf16.mxu0 %v4522_v27  ;;  %1315 = vmatprep.subr.bf16.mxu1 %v4601_v21 }
 0x58d   :  { %1275 = vmatpush1.bf16.msra.mxu0 %v4526_v59  ;;  %1316 = vmatpush1.bf16.msra.mxu1 %v4200_v33 }
 0x58e   :  { %1276 = vmatprep.subr.bf16.mxu0 %v4530_v28  ;;  %1317 = vmatprep.subr.bf16.mxu1 %v4203_v34 }
 0x591   :  { %1277 = vmatpush1.bf16.msra.mxu0 %v4534_v30  ;;  %1318 = vmatpush1.bf16.msra.mxu1 %v4210_v35 }
 0x592   :  { %1278 = vmatprep.subr.bf16.mxu0 %v4538_v31  ;;  %1319 = vmatprep.subr.bf16.mxu1 %v4212_v36  ;;  %v5403_v36 = vld [vmem:[#allocation19_spill] sm:$0xff] }
 0x595   :  { %1279 = vmatpush1.bf16.msra.mxu0 %v4542_v32  ;;  %1320 = vmatpush1.bf16.msra.mxu1 %v4219_v37 }
 0x596   :  { %1280 = vmatprep.subr.bf16.mxu0 %v4546_v6  ;;  %1321 = vmatprep.subr.bf16.mxu1 %v4222_v38 }
 0x599   :  { %1281 = vmatpush1.bf16.msra.mxu0 %v4550_v7  ;;  %1322 = vmatpush1.bf16.msra.mxu1 %v4225_v39 }
 0x59a   :  { %1282 = vmatprep.subr.bf16.mxu0 %v4554_v8  ;;  %1323 = vmatprep.subr.bf16.mxu1 %v4228_v40 }
 0x59d   :  { %1283 = vmatpush1.bf16.msra.mxu0 %v4558_v10  ;;  %1324 = vmatpush1.bf16.msra.mxu1 %v4231_v41 }
 0x59e   :  { %1388 = vmatprep.subr.bf16.mxu0 %v4484_v5  ;;  %1429 = vmatprep.subr.bf16.mxu1 %v4563_v11 }
 0x653   :  { %v1182_v33 = vpop.f32.mrb[32].mxu0  ;;  %v1223_v34 = vpop.f32.mrb[40].mxu1 }
 0x654   :  { %v1230_v35 = vadd.f32 %v1182_v33, %v4337_v58  ;;  %v1232_v37 = vadd.f32 %v1223_v34, %v5403_v36  ;;  %v1184_v38 = vpop.f32.mrb[33].mxu0  ;;  %v1225_v39 = vpop.f32.mrb[41].mxu1 }
 0x655   :  { %v1231_v49 = vadd.f32 %v1184_v38, %v4339_v44  ;;  %v1233_v40 = vadd.f32 %v1225_v39, %v5404_v50  ;;  %v1186_v55 = vpop.f32.mrb[34].mxu0  ;;  %v1227_v25 = vpop.f32.mrb[42].mxu1 }
 0x656   :  { %v3268_v52 = vmul.f32 -1.442695, %v1230_v35  ;;  %v1187_v41 = vpop.f32.mrb[35].mxu0  ;;  %v1228_v46 = vpop.f32.mrb[43].mxu1  ;;  %v3270_v11 = vmul.f32 -1.442695, %v1232_v37 }
 0x657   :  { %v3269_v5 = vmul.f32 -1.442695, %v1231_v49 }
 0x658   :  { %3659 = vpow2.f32 %v3268_v52 }
 0x659   :  { %3661 = vpow2.f32 %v3269_v5 }
 0x65a   :  { %3663 = vtanh.f32 %v1233_v40 }
 0x65b   :  { %3665 = vpow2.f32 %v3270_v11 }
 0x662   :  { %v3660_v0 = vpop.eup %3659 }
 0x663   :  { %v1243_v54 = vadd.f32 1.0, %v3660_v0  ;;  %v3662_v58 = vpop.eup %3661 }
 0x664   :  { %v1244_v4 = vadd.f32 1.0, %v3662_v58  ;;  %v3664_v44 = vpop.eup %3663  ;;  %v3475_v58 = vld [vmem:[#allocation8] ss:$16 sps:$4 sm:$0xff]  }
 0x665   :  { %3667 = vrcp.f32 %v1243_v54  ;;  %v3666_v61 = vpop.eup %3665 }
 0x666   :  { %3669 = vrcp.f32 %v1244_v4  ;;  %v1245_v45 = vadd.f32 1.0, %v3666_v61  ;;  %v3478_v4 = vld [vmem:[#allocation8 + $0x8] ss:$16 sps:$4 sm:$0xff]   ;;  %v3483_v61 = vld [vmem:[#allocation8 + $0x24] ss:$16 sps:$4 sm:$0xff]  }
 0x668   :  { %3671 = vrcp.f32 %v1245_v45  ;;  %v3489_v45 = vld [vmem:[#allocation8 + $0x44] ss:$16 sps:$4 sm:$0xff]  }
 0x66f   :  { %v3668_v2 = vpop.eup %3667 }
 0x670   :  { %v1254_v63 = vmul.f32 %v3668_v2, %v3664_v44  ;;  %v3670_v60 = vpop.eup %3669  ;;  %v3486_v2 = vld [vmem:[#allocation8 + $0x2c] ss:$16 sps:$4 sm:$0xff]  }
 0x671   :  { %v1253_v56 = vmul.f32 %v3670_v60, %v4571_v12  ;;  %v3484_v60 = vld [vmem:[#allocation8 + $0x28] ss:$16 sps:$4 sm:$0xff]  }
 0x672   :  { %v3672_v62 = vpop.eup %3671 }
 0x673   :  { %v4629_v29 = vadd.f32 %v1254_v63, %v1253_v56  ;;  %v3481_v63 = vld [vmem:[#allocation8 + $0x20] ss:$16 sps:$4 sm:$0xff]   ;;  %v3492_v56 = vld [vmem:[#allocation8 + $0x4c] ss:$16 sps:$4 sm:$0xff]  }
 0x675   :  { %3673 = vtanh.f32 %v4629_v29 }
 0x67f   :  { %v3674_v16 = vpop.eup %3673 }
 0x680   :  { %v4632_v14 = vmul.f32 %v3674_v16, %v3672_v62  ;;  %v3490_v62 = vld [vmem:[#allocation8 + $0x48] ss:$16 sps:$4 sm:$0xff]   ;;  %v3495_v16 = vld [vmem:[#allocation8 + $0x64] ss:$16 sps:$4 sm:$0xff]  }
 0x682   :  { %v1260_v15 = vpack.c.bf16 %v4632_v14, %v4632_v14 }
 0x684   :  { %1301 = vmatmul.mubr.bf16.vlgmr.msra.gmra.mrb[36].mxu0 %v1260_v15  ;;  %1342 = vmatmul.mubr.bf16.vlgmr.msra.gmra.mrb[44].mxu1 %v1260_v15  ;;  %v3498_v15 = vld [vmem:[#allocation8 + $0x6c] ss:$16 sps:$4 sm:$0xff]  }
 0x685   :  { %1389 = vmatpush1.bf16.msra.mxu0 %v4500_v1  ;;  %1430 = vmatpush1.bf16.msra.mxu1 %v4579_v20  ;;  %v3858_v1 = vld [vmem:[#allocation6 + $0x68] ss:$16 sps:$4 sm:$0xff]  }
 0x686   :  { %1390 = vmatprep.subr.bf16.mxu0 %v4504_v3  ;;  %1431 = vmatprep.subr.bf16.mxu1 %v4583_v9  ;;  %v3859_v3 = vld [vmem:[#allocation6 + $0x8c] ss:$16 sps:$4 sm:$0xff]  }
 0x687   :  { %1420 = vmatprep.mubr.bf16.mxu0 %v5394_v42  ;;  %1461 = vmatprep.mubr.bf16.mxu1 %v5394_v42 }
 0x689   :  { %1391 = vmatpush1.bf16.msra.mxu0 %v4510_v43  ;;  %1432 = vmatpush1.bf16.msra.mxu1 %v4589_v22  ;;  %v3860_v43 = vld [vmem:[#allocation6 + $0x88] ss:$16 sps:$4 sm:$0xff]  }
 0x68a   :  { %1392 = vmatprep.subr.bf16.mxu0 %v4514_v47  ;;  %1433 = vmatprep.subr.bf16.mxu1 %v4593_v23  ;;  %v3861_v47 = vld [vmem:[#allocation6 + $0xac] ss:$16 sps:$4 sm:$0xff]  }
 0x68b   :  { %v5406_v22 = vld [vmem:[#allocation28_spill] sm:$0xff]  ;;  %v5407_v23 = vld [vmem:[#allocation22_spill] sm:$0xff] }
 0x68d   :  { %1393 = vmatpush1.bf16.msra.mxu0 %v4518_v26  ;;  %1434 = vmatpush1.bf16.msra.mxu1 %v4597_v24  ;;  %v3862_v26 = vld [vmem:[#allocation6 + $0xa8] ss:$16 sps:$4 sm:$0xff]  }
 0x68e   :  { %1394 = vmatprep.subr.bf16.mxu0 %v4522_v27  ;;  %1435 = vmatprep.subr.bf16.mxu1 %v4601_v21  ;;  %v3863_v27 = vld [vmem:[#allocation6 + $0xcc] ss:$16 sps:$4 sm:$0xff]  }
 0x691   :  { %1395 = vmatpush1.bf16.msra.mxu0 %v4526_v59  ;;  %1436 = vmatpush1.bf16.msra.mxu1 %v3858_v1  ;;  %v3864_v59 = vld [vmem:[#allocation6 + $0xc8] ss:$16 sps:$4 sm:$0xff]   ;;  %v3493_v1 = vld [vmem:[#allocation8 + $0x60] ss:$16 sps:$4 sm:$0xff]  }
 0x692   :  { %1396 = vmatprep.subr.bf16.mxu0 %v4530_v28  ;;  %1437 = vmatprep.subr.bf16.mxu1 %v3859_v3  ;;  %v3865_v28 = vld [vmem:[#allocation6 + $0xec] ss:$16 sps:$4 sm:$0xff]   ;;  %v3496_v3 = vld [vmem:[#allocation8 + $0x68] ss:$16 sps:$4 sm:$0xff]  }
 0x695   :  { %1397 = vmatpush1.bf16.msra.mxu0 %v4534_v30  ;;  %1438 = vmatpush1.bf16.msra.mxu1 %v3860_v43  ;;  %v3866_v30 = vld [vmem:[#allocation6 + $0xe8] ss:$16 sps:$4 sm:$0xff]   ;;  %v3501_v43 = vld [vmem:[#allocation8 + $0x84] ss:$16 sps:$4 sm:$0xff]  }
 0x696   :  { %1398 = vmatprep.subr.bf16.mxu0 %v4538_v31  ;;  %1439 = vmatprep.subr.bf16.mxu1 %v3861_v47  ;;  %v3477_v31 = vld [vmem:[#allocation8 + $0x4] ss:$16 sps:$4 sm:$0xff]   ;;  %v3504_v47 = vld [vmem:[#allocation8 + $0x8c] ss:$16 sps:$4 sm:$0xff]  }
 0x699   :  { %1399 = vmatpush1.bf16.msra.mxu0 %v4542_v32  ;;  %1440 = vmatpush1.bf16.msra.mxu1 %v3862_v26  ;;  %v3480_v32 = vld [vmem:[#allocation8 + $0xc] ss:$16 sps:$4 sm:$0xff]   ;;  %v3499_v26 = vld [vmem:[#allocation8 + $0x80] ss:$16 sps:$4 sm:$0xff]  }
 0x69a   :  { %1400 = vmatprep.subr.bf16.mxu0 %v4546_v6  ;;  %1441 = vmatprep.subr.bf16.mxu1 %v3863_v27  ;;  %v3502_v27 = vld [vmem:[#allocation8 + $0x88] ss:$16 sps:$4 sm:$0xff]  }
 0x69d   :  { %1401 = vmatpush1.bf16.msra.mxu0 %v4550_v7  ;;  %1442 = vmatpush1.bf16.msra.mxu1 %v3864_v59  ;;  %v3507_v59 = vld [vmem:[#allocation8 + $0xa4] ss:$16 sps:$4 sm:$0xff]  }
 0x69e   :  { %1402 = vmatprep.subr.bf16.mxu0 %v4554_v8  ;;  %1443 = vmatprep.subr.bf16.mxu1 %v3865_v28  ;;  %v3510_v28 = vld [vmem:[#allocation8 + $0xac] ss:$16 sps:$4 sm:$0xff]  }
 0x6a1   :  { %1403 = vmatpush1.bf16.msra.mxu0 %v4558_v10  ;;  %1444 = vmatpush1.bf16.msra.mxu1 %v3866_v30  ;;  %v3505_v30 = vld [vmem:[#allocation8 + $0xa0] ss:$16 sps:$4 sm:$0xff]  }
 0x6a2   :  { %1730 = vmatprep.subr.bf16.mxu0 %v3477_v31  ;;  %1803 = vmatprep.subr.bf16.mxu1 %v3480_v32  ;;  %v3508_v31 = vld [vmem:[#allocation8 + $0xa8] ss:$16 sps:$4 sm:$0xff]   ;;  %v3513_v32 = vld [vmem:[#allocation8 + $0xc4] ss:$16 sps:$4 sm:$0xff]  }
 0x757   :  { %v1302_v12 = vpop.f32.mrb[36].mxu0  ;;  %v1343_v6 = vpop.f32.mrb[44].mxu1 }
 0x758   :  { %v1350_v17 = vadd.f32 %v1302_v12, %v4341_v13  ;;  %v1352_v7 = vadd.f32 %v1343_v6, %v5405_v19  ;;  %v1304_v20 = vpop.f32.mrb[37].mxu0  ;;  %v1345_v9 = vpop.f32.mrb[45].mxu1  ;;  %v3516_v12 = vld [vmem:[#allocation8 + $0xcc] ss:$16 sps:$4 sm:$0xff]   ;;  %v3511_v6 = vld [vmem:[#allocation8 + $0xc0] ss:$16 sps:$4 sm:$0xff]  }
 0x759   :  { %v1351_v8 = vadd.f32 %v1304_v20, %v5406_v22  ;;  %v1353_v24 = vadd.f32 %v1345_v9, %v5407_v23  ;;  %v1306_v21 = vpop.f32.mrb[38].mxu0  ;;  %v1347_v10 = vpop.f32.mrb[46].mxu1  ;;  %v3519_v19 = vld [vmem:[#allocation8 + $0xe4] ss:$16 sps:$4 sm:$0xff]   ;;  %v3517_v20 = vld [vmem:[#allocation8 + $0xe0] ss:$16 sps:$4 sm:$0xff]   ;;  %v1512_v22 = vpack.c.bf16 %v4402_v53, %v4356_v51  ;;  %v1514_v23 = vpack.c.bf16 %v4632_v14, %v4574_v18 }
 0x75a   :  { %v3271_v33 = vmul.f32 -1.442695, %v1350_v17  ;;  %v1307_v34 = vpop.f32.mrb[39].mxu0  ;;  %v1348_v35 = vpop.f32.mrb[47].mxu1  ;;  %v3273_v37 = vmul.f32 -1.442695, %v1352_v7 }
 0x75b   :  { %v3272_v36 = vmul.f32 -1.442695, %v1351_v8  ;;  %v3514_v17 = vld [vmem:[#allocation8 + $0xc8] ss:$16 sps:$4 sm:$0xff]   ;;  %v3522_v7 = vld [vmem:[#allocation8 + $0xec] ss:$16 sps:$4 sm:$0xff]   ;;  %v1513_v8 = vpack.c.bf16 %v4496_v57, %v4448_v48 }
 0x75c   :  { %3675 = vpow2.f32 %v3271_v33  ;;  %v3520_v9 = vld [vmem:[#allocation8 + $0xe8] ss:$16 sps:$4 sm:$0xff]   ;;  %v4685_v51 = vld [vmem:[#allocation10 + $0x4] ss:$16 sps:$4 sm:$0xff]   ;;  %v4687_v53 = vld [vmem:[#allocation10 + $0xc] ss:$16 sps:$4 sm:$0xff]  }
 0x75d   :  { %3677 = vpow2.f32 %v3272_v36  ;;  %v4689_v48 = vld [vmem:[#allocation10] ss:$16 sps:$4 sm:$0xff]   ;;  %v4691_v57 = vld [vmem:[#allocation10 + $0x8] ss:$16 sps:$4 sm:$0xff]   ;;  %v4697_v18 = vld [vmem:[#allocation10 + $0x24] ss:$16 sps:$4 sm:$0xff]  }
 0x75e   :  { %3679 = vtanh.f32 %v1353_v24  ;;  %v4699_v14 = vld [vmem:[#allocation10 + $0x2c] ss:$16 sps:$4 sm:$0xff]   ;;  %v4701_v24 = vld [vmem:[#allocation10 + $0x20] ss:$16 sps:$4 sm:$0xff]   ;;  %v4703_v21 = vld [vmem:[#allocation10 + $0x28] ss:$16 sps:$4 sm:$0xff]  }
 0x75f   :  { %3681 = vpow2.f32 %v3273_v37  ;;  %v4709_v10 = vld [vmem:[#allocation10 + $0x44] ss:$16 sps:$4 sm:$0xff]   ;;  %v4711_v33 = vld [vmem:[#allocation10 + $0x4c] ss:$16 sps:$4 sm:$0xff]   ;;  %v4713_v34 = vld [vmem:[#allocation10 + $0x40] ss:$16 sps:$4 sm:$0xff]  }
 0x760   :  { %v4715_v35 = vld [vmem:[#allocation10 + $0x48] ss:$16 sps:$4 sm:$0xff]   ;;  %v4721_v36 = vld [vmem:[#allocation10 + $0x64] ss:$16 sps:$4 sm:$0xff]   ;;  %v4723_v37 = vld [vmem:[#allocation10 + $0x60] ss:$16 sps:$4 sm:$0xff]  }
 0x766   :  { %v3676_v38 = vpop.eup %3675 }
 0x767   :  { %v1363_v39 = vadd.f32 1.0, %v3676_v38  ;;  %v3678_v13 = vpop.eup %3677  ;;  %v4725_v38 = vld [vmem:[#allocation10 + $0x6c] ss:$16 sps:$4 sm:$0xff]  }
 0x768   :  { %v1364_v49 = vadd.f32 1.0, %v3678_v13  ;;  %v3680_v50 = vpop.eup %3679  ;;  %v4733_v13 = vld [vmem:[#allocation10 + $0x84] ss:$16 sps:$4 sm:$0xff]  }
 0x769   :  { %3683 = vrcp.f32 %v1363_v39  ;;  %v3682_v40 = vpop.eup %3681  ;;  %v4727_v39 = vld [vmem:[#allocation10 + $0x68] ss:$16 sps:$4 sm:$0xff]  }
 0x76a   :  { %3685 = vrcp.f32 %v1364_v49  ;;  %v1365_v41 = vadd.f32 1.0, %v3682_v40  ;;  %v4735_v49 = vld [vmem:[#allocation10 + $0x8c] ss:$16 sps:$4 sm:$0xff]   ;;  %v4739_v40 = vld [vmem:[#allocation10 + $0x88] ss:$16 sps:$4 sm:$0xff]  }
 0x76c   :  { %3687 = vrcp.f32 %v1365_v41  ;;  %v4751_v41 = vld [vmem:[#allocation10 + $0xa8] ss:$16 sps:$4 sm:$0xff]  }
 0x773   :  { %v3684_v55 = vpop.eup %3683 }
 0x774   :  { %v1374_v25 = vmul.f32 %v3684_v55, %v3680_v50  ;;  %v3686_v52 = vpop.eup %3685  ;;  %v4737_v50 = vld [vmem:[#allocation10 + $0x80] ss:$16 sps:$4 sm:$0xff]   ;;  %v4745_v55 = vld [vmem:[#allocation10 + $0xa4] ss:$16 sps:$4 sm:$0xff]  }
 0x775   :  { %v1373_v46 = vmul.f32 %v3686_v52, %v4629_v29  ;;  %v3487_v29 = vld [vmem:[#allocation8 + $0x40] ss:$16 sps:$4 sm:$0xff]   ;;  %v4749_v52 = vld [vmem:[#allocation10 + $0xac] ss:$16 sps:$4 sm:$0xff]  }
 0x776   :  { %v3688_v11 = vpop.eup %3687 }
 0x777   :  { %v4664_v5 = vadd.f32 %v1374_v25, %v1373_v46  ;;  %v4747_v25 = vld [vmem:[#allocation10 + $0xa0] ss:$16 sps:$4 sm:$0xff]   ;;  %v4757_v46 = vld [vmem:[#allocation10 + $0xc4] ss:$16 sps:$4 sm:$0xff]  }
 0x779   :  { %3689 = vtanh.f32 %v4664_v5 }
 0x783   :  { %v3690_v0 = vpop.eup %3689 }
 0x784   :  { %v4667_v54 = vmul.f32 %v3690_v0, %v3688_v11  ;;  %v4759_v11 = vld [vmem:[#allocation10 + $0xcc] ss:$16 sps:$4 sm:$0xff]   ;;  %v4761_v0 = vld [vmem:[#allocation10 + $0xc0] ss:$16 sps:$4 sm:$0xff]  }
 0x786   :  { %v1380_v44 = vpack.c.bf16 %v4667_v54, %v4667_v54 }
 0x788   :  { %1421 = vmatmul.mubr.bf16.vlgmr.msra.gmra.mrb[40].mxu0 %v1380_v44  ;;  %1462 = vmatmul.mubr.bf16.vlgmr.msra.gmra.mrb[48].mxu1 %v1380_v44  ;;  %v4771_v44 = vld [vmem:[#allocation10 + $0xe0] ss:$16 sps:$4 sm:$0xff]  }
 0x789   :  { %1731 = vmatpush1.bf16.msra.mxu0 %v3475_v58  ;;  %1804 = vmatpush1.bf16.msra.mxu1 %v3478_v4  ;;  %v4763_v58 = vld [vmem:[#allocation10 + $0xc8] ss:$16 sps:$4 sm:$0xff]   ;;  %v4769_v4 = vld [vmem:[#allocation10 + $0xe4] ss:$16 sps:$4 sm:$0xff]  }
 0x78a   :  { %1732 = vmatprep.subr.bf16.mxu0 %v3483_v61  ;;  %1805 = vmatprep.subr.bf16.mxu1 %v3486_v2  ;;  %v4773_v61 = vld [vmem:[#allocation10 + $0xec] ss:$16 sps:$4 sm:$0xff]   ;;  %v4775_v2 = vld [vmem:[#allocation10 + $0xe8] ss:$16 sps:$4 sm:$0xff]  }
 0x78b   :  { %1762 = vmatprep.mubr.bf16.mxu0 %v5394_v42  ;;  %1835 = vmatprep.mubr.bf16.mxu1 %v5394_v42 }
 0x78d   :  { %1733 = vmatpush1.bf16.msra.mxu0 %v3481_v63  ;;  %1806 = vmatpush1.bf16.msra.mxu1 %v3484_v60 }
 0x78e   :  { %1734 = vmatprep.subr.bf16.mxu0 %v3489_v45  ;;  %1807 = vmatprep.subr.bf16.mxu1 %v3492_v56  ;;  %v5408_v45 = vld [vmem:[#allocation29_spill] sm:$0xff] }
 0x791   :  { %1735 = vmatpush1.bf16.msra.mxu0 %v3487_v29  ;;  %1808 = vmatpush1.bf16.msra.mxu1 %v3490_v62  ;;  %v5409_v29 = vld [vmem:[#allocation24_spill] sm:$0xff] }
 0x792   :  { %1736 = vmatprep.subr.bf16.mxu0 %v3495_v16  ;;  %1809 = vmatprep.subr.bf16.mxu1 %v3498_v15 }
 0x795   :  { %1737 = vmatpush1.bf16.msra.mxu0 %v3493_v1  ;;  %1810 = vmatpush1.bf16.msra.mxu1 %v3496_v3  ;;  %v5410_v1 = vld [vmem:[#allocation30_spill] sm:$0xff] }
 0x796   :  { %1738 = vmatprep.subr.bf16.mxu0 %v3501_v43  ;;  %1811 = vmatprep.subr.bf16.mxu1 %v3504_v47  ;;  %v5411_v43 = vld [vmem:[#allocation26_spill] sm:$0xff] }
 0x799   :  { %1739 = vmatpush1.bf16.msra.mxu0 %v3499_v26  ;;  %1812 = vmatpush1.bf16.msra.mxu1 %v3502_v27 }
 0x79a   :  { %1740 = vmatprep.subr.bf16.mxu0 %v3507_v59  ;;  %1813 = vmatprep.subr.bf16.mxu1 %v3510_v28 }
 0x79d   :  { %1741 = vmatpush1.bf16.msra.mxu0 %v3505_v30  ;;  %1814 = vmatpush1.bf16.msra.mxu1 %v3508_v31 }
 0x79e   :  { %1742 = vmatprep.subr.bf16.mxu0 %v3513_v32  ;;  %1815 = vmatprep.subr.bf16.mxu1 %v3516_v12 }
 0x7a1   :  { %1743 = vmatpush1.bf16.msra.mxu0 %v3511_v6  ;;  %1816 = vmatpush1.bf16.msra.mxu1 %v3514_v17 }
 0x7a2   :  { %1744 = vmatprep.subr.bf16.mxu0 %v3519_v19  ;;  %1817 = vmatprep.subr.bf16.mxu1 %v3522_v7 }
 0x7a5   :  { %1745 = vmatpush1.bf16.msra.mxu0 %v3517_v20  ;;  %1818 = vmatpush1.bf16.msra.mxu1 %v3520_v9 }
 0x7a6   :  { %2109 = vmatprep.subr.bf16.mxu0 %v4685_v51  ;;  %2150 = vmatprep.subr.bf16.mxu1 %v4687_v53 }
 0x7a8   :  { %1763 = vmatmul.mubr.bf16.vlgmr.msra.gmra.mrb[44].mxu0 %v1512_v22  ;;  %1836 = vmatmul.mubr.bf16.vlgmr.msra.gmra.mrb[52].mxu1 %v1512_v22 }
 0x7a9   :  { %1772 = vmatprep.mubr.bf16.mxu0 %v5394_v42  ;;  %1845 = vmatprep.mubr.bf16.mxu1 %v5394_v42 }
 0x7aa   :  { %2110 = vmatpush1.bf16.msra.mxu0 %v4689_v48  ;;  %2151 = vmatpush1.bf16.msra.mxu1 %v4691_v57 }
 0x7ab   :  { %2111 = vmatprep.subr.bf16.mxu0 %v4697_v18  ;;  %2152 = vmatprep.subr.bf16.mxu1 %v4699_v14 }
 0x7ae   :  { %2112 = vmatpush1.bf16.msra.mxu0 %v4701_v24  ;;  %2153 = vmatpush1.bf16.msra.mxu1 %v4703_v21 }
 0x7af   :  { %2113 = vmatprep.subr.bf16.mxu0 %v4709_v10  ;;  %2154 = vmatprep.subr.bf16.mxu1 %v4711_v33 }
 0x7b0   :  { %1773 = vmatmul.mubr.bf16.gmra.mrb[48].mxu0 %v1513_v8  ;;  %1846 = vmatmul.mubr.bf16.gmra.mrb[56].mxu1 %v1513_v8 }
 0x7b1   :  { %1782 = vmatprep.mubr.bf16.mxu0 %v5394_v42  ;;  %1855 = vmatprep.mubr.bf16.mxu1 %v5394_v42 }
 0x7b2   :  { %2114 = vmatpush1.bf16.msra.mxu0 %v4713_v34  ;;  %2155 = vmatpush1.bf16.msra.mxu1 %v4715_v35 }
 0x7b3   :  { %2115 = vmatprep.subr.bf16.mxu0 %v4721_v36  ;;  %2156 = vmatprep.subr.bf16.mxu1 %v4725_v38 }
 0x7b6   :  { %2116 = vmatpush1.bf16.msra.mxu0 %v4723_v37  ;;  %2157 = vmatpush1.bf16.msra.mxu1 %v4727_v39 }
 0x7b7   :  { %2117 = vmatprep.subr.bf16.mxu0 %v4733_v13  ;;  %2158 = vmatprep.subr.bf16.mxu1 %v4735_v49 }
 0x7b8   :  { %1783 = vmatmul.mubr.bf16.gmra.mrb[52].mxu0 %v1514_v23  ;;  %1856 = vmatmul.mubr.bf16.gmra.mrb[60].mxu1 %v1514_v23 }
 0x7b9   :  { %1792 = vmatprep.mubr.bf16.mxu0 %v5394_v42  ;;  %1865 = vmatprep.mubr.bf16.mxu1 %v5394_v42 }
 0x7ba   :  { %2118 = vmatpush1.bf16.msra.mxu0 %v4737_v50  ;;  %2159 = vmatpush1.bf16.msra.mxu1 %v4739_v40 }
 0x7bb   :  { %2119 = vmatprep.subr.bf16.mxu0 %v4745_v55  ;;  %2160 = vmatprep.subr.bf16.mxu1 %v4749_v52 }
 0x7be   :  { %2120 = vmatpush1.bf16.msra.mxu0 %v4747_v25  ;;  %2161 = vmatpush1.bf16.msra.mxu1 %v4751_v41 }
 0x7bf   :  { %2121 = vmatprep.subr.bf16.mxu0 %v4757_v46  ;;  %2162 = vmatprep.subr.bf16.mxu1 %v4759_v11 }
 0x7c2   :  { %2122 = vmatpush1.bf16.msra.mxu0 %v4761_v0  ;;  %2163 = vmatpush1.bf16.msra.mxu1 %v4763_v58 }
 0x7c3   :  { %2123 = vmatprep.subr.bf16.mxu0 %v4769_v4  ;;  %2164 = vmatprep.subr.bf16.mxu1 %v4773_v61 }
 0x7c6   :  { %2124 = vmatpush1.bf16.msra.mxu0 %v4771_v44  ;;  %2165 = vmatpush1.bf16.msra.mxu1 %v4775_v2 }
 0x7c7   :  { %2225 = vmatprep.subr.bf16.mxu0 %v4685_v51  ;;  %2266 = vmatprep.subr.bf16.mxu1 %v4687_v53 }
 0x85b   :  { %v1422_v63 = vpop.f32.mrb[40].mxu0  ;;  %v1463_v60 = vpop.f32.mrb[48].mxu1 }
 0x85c   :  { %v1470_v56 = vadd.f32 %v1422_v63, %v5408_v45  ;;  %v1472_v62 = vadd.f32 %v1463_v60, %v5409_v29  ;;  %v1424_v16 = vpop.f32.mrb[41].mxu0  ;;  %v1465_v15 = vpop.f32.mrb[49].mxu1 }
 0x85d   :  { %v1471_v3 = vadd.f32 %v1424_v16, %v5410_v1  ;;  %v1473_v47 = vadd.f32 %v1465_v15, %v5411_v43  ;;  %v1426_v26 = vpop.f32.mrb[42].mxu0  ;;  %v1467_v27 = vpop.f32.mrb[50].mxu1 }
 0x85e   :  { %v3274_v59 = vmul.f32 -1.442695, %v1470_v56  ;;  %v1427_v28 = vpop.f32.mrb[43].mxu0  ;;  %v1468_v30 = vpop.f32.mrb[51].mxu1  ;;  %v3276_v32 = vmul.f32 -1.442695, %v1472_v62 }
 0x85f   :  { %v3275_v31 = vmul.f32 -1.442695, %v1471_v3 }
 0x860   :  { %3691 = vpow2.f32 %v3274_v59 }
 0x861   :  { %3693 = vpow2.f32 %v3275_v31 }
 0x862   :  { %3695 = vtanh.f32 %v1473_v47 }
 0x863   :  { %3697 = vpow2.f32 %v3276_v32 }
 0x86a   :  { %v3692_v12 = vpop.eup %3691 }
 0x86b   :  { %v1483_v6 = vadd.f32 1.0, %v3692_v12  ;;  %v3694_v17 = vpop.eup %3693 }
 0x86c   :  { %v1484_v19 = vadd.f32 1.0, %v3694_v17  ;;  %v3696_v7 = vpop.eup %3695 }
 0x86d   :  { %3699 = vrcp.f32 %v1483_v6  ;;  %v3698_v20 = vpop.eup %3697 }
 0x86e   :  { %3701 = vrcp.f32 %v1484_v19  ;;  %v1485_v23 = vadd.f32 1.0, %v3698_v20 }
 0x870   :  { %3703 = vrcp.f32 %v1485_v23 }
 0x877   :  { %v3700_v9 = vpop.eup %3699 }
 0x878   :  { %v1494_v22 = vmul.f32 %v3700_v9, %v3696_v7  ;;  %v3702_v8 = vpop.eup %3701 }
 0x879   :  { %v1493_v63 = vmul.f32 %v3702_v8, %v4664_v5 }
 0x87a   :  { %v3704_v31 = vpop.eup %3703 }
 0x87b   :  { %v4788_v60 = vpop.f32.mrb[44].mxu0  ;;  %v4790_v45 = vpop.f32.mrb[52].mxu1  ;;  %v1495_v56 = vadd.f32 %v1494_v22, %v1493_v63  ;;  %v5427_v63 = vmov 0.0|0.0  }
 0x87c   :  { %v4792_v29 = vpop.f32.mrb[45].mxu0  ;;  %v4794_v62 = vpop.f32.mrb[53].mxu1 }
 0x87d   :  { %v4796_v16 = vpop.f32.mrb[46].mxu0  ;;  %v4798_v15 = vpop.f32.mrb[54].mxu1  ;;  %3705 = vtanh.f32 %v1495_v56 }
 0x87e   :  { %v4800_v1 = vpop.f32.mrb[47].mxu0  ;;  %v4802_v3 = vpop.f32.mrb[55].mxu1 }
 0x883   :  { %v4804_v5 = vpop.f32.mrb[48].mxu0  ;;  %v4806_v43 = vpop.f32.mrb[56].mxu1 }
 0x884   :  { %5412 = vst [vmem:[#allocation14_spill] sm:$0xff] %v4806_v43  ;;  %v4808_v47 = vpop.f32.mrb[49].mxu0  ;;  %v4810_v26 = vpop.f32.mrb[57].mxu1 }
 0x885   :  { %5413 = vst [vmem:[#allocation23_spill] sm:$0xff] %v4808_v47  ;;  %5414 = vst [vmem:[#allocation15_spill] sm:$0xff] %v4810_v26  ;;  %v4812_v27 = vpop.f32.mrb[50].mxu0  ;;  %v4814_v59 = vpop.f32.mrb[58].mxu1 }
 0x886   :  { %5415 = vst [vmem:[#allocation25_spill] sm:$0xff] %v4812_v27  ;;  %5416 = vst [vmem:[#allocation16_spill] sm:$0xff] %v4814_v59  ;;  %v4816_v28 = vpop.f32.mrb[51].mxu0  ;;  %v4818_v30 = vpop.f32.mrb[59].mxu1 }
 0x887   :  { %5417 = vst [vmem:[#allocation27_spill] sm:$0xff] %v4816_v28  ;;  %5418 = vst [vmem:[#allocation17_spill] sm:$0xff] %v4818_v30  ;;  %v3706_v32 = vpop.eup %3705 }
 0x888   :  { %v1497_v12 = vmul.f32 %v3706_v32, %v3704_v31 }
 0x88a   :  { %v1515_v19 = vpack.c.bf16 %v1497_v12, %v4667_v54  ;;  %v1548_v54 = vld [vmem:[%s5362_s6] sm:$0xf] }
 0x88b   :  { %v4820_v6 = vpop.f32.mrb[52].mxu0  ;;  %v4822_v17 = vpop.f32.mrb[60].mxu1 }
 0x88c   :  { %5419 = vst [vmem:[#allocation18_spill] sm:$0xff] %v4820_v6  ;;  %5420 = vst [vmem:[#allocation19_spill] sm:$0xff] %v4822_v17  ;;  %v4825_v7 = vpop.f32.mrb[53].mxu0  ;;  %v4827_v20 = vpop.f32.mrb[61].mxu1  ;;  %1793 = vmatmul.mubr.bf16.gmra.mrb[56].mxu0 %v1515_v19  ;;  %1866 = vmatmul.mubr.bf16.gmra.mrb[64].mxu1 %v1515_v19 }
 0x88d   :  { %5421 = vst [vmem:[#allocation20_spill] sm:$0xff] %v4825_v7  ;;  %5422 = vst [vmem:[#allocation21_spill] sm:$0xff] %v4827_v20  ;;  %v4829_v9 = vpop.f32.mrb[54].mxu0  ;;  %v4831_v22 = vpop.f32.mrb[62].mxu1  ;;  %2141 = vmatprep.mubr.bf16.mxu0 %v5394_v42  ;;  %2182 = vmatprep.mubr.bf16.mxu1 %v5394_v42 }
 0x88e   :  { %5423 = vst [vmem:[#allocation28_spill] sm:$0xff] %v4829_v9  ;;  %5424 = vst [vmem:[#allocation22_spill] sm:$0xff] %v4831_v22  ;;  %v4833_v8 = vpop.f32.mrb[55].mxu0  ;;  %v4835_v23 = vpop.f32.mrb[63].mxu1 }
 0x88f   :  { %5425 = vst [vmem:[#allocation29_spill] sm:$0xff] %v4833_v8  ;;  %5426 = vst [vmem:[#allocation24_spill] sm:$0xff] %v4835_v23  ;;  %v5434_v23 = vld [vmem:[#allocation13_spill] sm:$0xff] }
 0x890   :  { %v5435_v8 = vsub.s32 0, %v5434_v23  ;;  %v5436_v9 = vsub.s32 2, %v5434_v23 }
 0x892   :  { %v4892_v22 = vrot.slane %v1548_v54, %v5435_v8  ;;  %v4896_v20 = vrot.slane %v1548_v54, %v5436_v9 }
 0x894   :  { %2142 = vmatmul.mubr.bf16.vlgmr.msra.gmra.mrb[60].mxu0 %v5427_v63  ;;  %2183 = vmatmul.mubr.bf16.vlgmr.msra.gmra.mrb[68].mxu1 %v5427_v63  ;;  %v1765_v8 = vadd.f32 %v4788_v60, %v4892_v22 }
 0x895   :  { %2226 = vmatpush1.bf16.msra.mxu0 %v4689_v48  ;;  %2267 = vmatpush1.bf16.msra.mxu1 %v4691_v57 }
 0x896   :  { %2227 = vmatprep.subr.bf16.mxu0 %v4697_v18  ;;  %2268 = vmatprep.subr.bf16.mxu1 %v4699_v14 }
 0x897   :  { %2257 = vmatprep.mubr.bf16.mxu0 %v5394_v42  ;;  %2298 = vmatprep.mubr.bf16.mxu1 %v5394_v42 }
 0x899   :  { %2228 = vmatpush1.bf16.msra.mxu0 %v4701_v24  ;;  %2269 = vmatpush1.bf16.msra.mxu1 %v4703_v21 }
 0x89a   :  { %2229 = vmatprep.subr.bf16.mxu0 %v4709_v10  ;;  %2270 = vmatprep.subr.bf16.mxu1 %v4711_v33 }
 0x89d   :  { %2230 = vmatpush1.bf16.msra.mxu0 %v4713_v34  ;;  %2271 = vmatpush1.bf16.msra.mxu1 %v4715_v35 }
 0x89e   :  { %2231 = vmatprep.subr.bf16.mxu0 %v4721_v36  ;;  %2272 = vmatprep.subr.bf16.mxu1 %v4725_v38 }
 0x8a1   :  { %2232 = vmatpush1.bf16.msra.mxu0 %v4723_v37  ;;  %2273 = vmatpush1.bf16.msra.mxu1 %v4727_v39 }
 0x8a2   :  { %2233 = vmatprep.subr.bf16.mxu0 %v4733_v13  ;;  %2274 = vmatprep.subr.bf16.mxu1 %v4735_v49 }
 0x8a5   :  { %2234 = vmatpush1.bf16.msra.mxu0 %v4737_v50  ;;  %2275 = vmatpush1.bf16.msra.mxu1 %v4739_v40 }
 0x8a6   :  { %2235 = vmatprep.subr.bf16.mxu0 %v4745_v55  ;;  %2276 = vmatprep.subr.bf16.mxu1 %v4749_v52 }
 0x8a9   :  { %2236 = vmatpush1.bf16.msra.mxu0 %v4747_v25  ;;  %2277 = vmatpush1.bf16.msra.mxu1 %v4751_v41 }
 0x8aa   :  { %2237 = vmatprep.subr.bf16.mxu0 %v4757_v46  ;;  %2278 = vmatprep.subr.bf16.mxu1 %v4759_v11 }
 0x8ad   :  { %2238 = vmatpush1.bf16.msra.mxu0 %v4761_v0  ;;  %2279 = vmatpush1.bf16.msra.mxu1 %v4763_v58 }
 0x8ae   :  { %2239 = vmatprep.subr.bf16.mxu0 %v4769_v4  ;;  %2280 = vmatprep.subr.bf16.mxu1 %v4773_v61 }
 0x8b1   :  { %2240 = vmatpush1.bf16.msra.mxu0 %v4771_v44  ;;  %2281 = vmatpush1.bf16.msra.mxu1 %v4775_v2 }
 0x8b2   :  { %2341 = vmatprep.subr.bf16.mxu0 %v4685_v51  ;;  %2382 = vmatprep.subr.bf16.mxu1 %v4687_v53 }
 0x95f   :  { %v4878_v56 = vpop.f32.mrb[56].mxu0  ;;  %v4880_v31 = vpop.f32.mrb[64].mxu1 }
 0x960   :  { %5428 = vst [vmem:[#allocation30_spill] sm:$0xff] %v4878_v56  ;;  %5429 = vst [vmem:[#allocation26_spill] sm:$0xff] %v4880_v31  ;;  %v4882_v32 = vpop.f32.mrb[57].mxu0  ;;  %v4884_v12 = vpop.f32.mrb[65].mxu1 }
 0x961   :  { %5430 = vst [vmem:[#allocation31_spill] sm:$0xff] %v4882_v32  ;;  %5431 = vst [vmem:[#allocation32_spill] sm:$0xff] %v4884_v12  ;;  %v4886_v19 = vpop.f32.mrb[58].mxu0  ;;  %v4888_v63 = vpop.f32.mrb[66].mxu1  ;;  %v5439_v32 = vsub.s32 1, %v5434_v23 }
 0x962   :  { %5432 = vst [vmem:[#allocation33_spill] sm:$0xff] %v4886_v19  ;;  %5433 = vst [vmem:[#allocation34_spill] sm:$0xff] %v4888_v63  ;;  %v4898_v7 = vpop.f32.mrb[59].mxu0  ;;  %v4900_v56 = vpop.f32.mrb[67].mxu1  ;;  %v5440_v19 = vsub.s32 3, %v5434_v23  ;;  %v1838_v63 = vadd.f32 %v4790_v45, %v4896_v20 }
 0x963   :  { %5437 = vst [vmem:[#allocation13_spill] sm:$0xff] %v4898_v7  ;;  %5438 = vst [vmem:[#allocation35_spill] sm:$0xff] %v4900_v56  ;;  %v4904_v31 = vrot.slane %v1548_v54, %v5439_v32 }
 0x964   :  { %v4908_v12 = vrot.slane %v1548_v54, %v5440_v19 }
 0x965   :  { %v1767_v9 = vadd.f32 %v4792_v29, %v4904_v31 }
 0x966   :  { %v1840_v56 = vadd.f32 %v4794_v62, %v4908_v12 }
 0x967   :  { %v2143_v7 = vpop.f32.mrb[60].mxu0  ;;  %v2184_v17 = vpop.f32.mrb[68].mxu1 }
 0x968   :  { %v2191_v32 = vadd.f32 %v2143_v7, %v1765_v8  ;;  %v2193_v6 = vadd.f32 %v2184_v17, %v1838_v63  ;;  %v2145_v30 = vpop.f32.mrb[61].mxu0  ;;  %v2186_v23 = vpop.f32.mrb[69].mxu1 }
 0x969   :  { %v2192_v54 = vadd.f32 %v2145_v30, %v1767_v9  ;;  %v2194_v19 = vadd.f32 %v2186_v23, %v1840_v56  ;;  %v2147_v28 = vpop.f32.mrb[62].mxu0  ;;  %v2188_v59 = vpop.f32.mrb[70].mxu1  ;;  %v1769_v9 = vadd.f32 %v4796_v16, %v4892_v22  ;;  %v1771_v23 = vadd.f32 %v4800_v1, %v4904_v31 }
 0x96a   :  { %v3341_v60 = vmul.f32 -1.442695, %v2191_v32  ;;  %v2148_v27 = vpop.f32.mrb[63].mxu0  ;;  %v2189_v26 = vpop.f32.mrb[71].mxu1  ;;  %v3343_v29 = vmul.f32 -1.442695, %v2193_v6  ;;  %v1842_v32 = vadd.f32 %v4798_v15, %v4896_v20 }
 0x96b   :  { %v3342_v45 = vmul.f32 -1.442695, %v2192_v54  ;;  %v1844_v54 = vadd.f32 %v4802_v3, %v4908_v12 }
 0x96c   :  { %3707 = vpow2.f32 %v3341_v60 }
 0x96d   :  { %3709 = vpow2.f32 %v3342_v45 }
 0x96e   :  { %3711 = vtanh.f32 %v2194_v19 }
 0x96f   :  { %3713 = vpow2.f32 %v3343_v29 }
 0x976   :  { %v3708_v47 = vpop.eup %3707 }
 0x977   :  { %v2204_v43 = vadd.f32 1.0, %v3708_v47  ;;  %v3710_v62 = vpop.eup %3709 }
 0x978   :  { %v2205_v17 = vadd.f32 1.0, %v3710_v62  ;;  %v3712_v7 = vpop.eup %3711 }
 0x979   :  { %3715 = vrcp.f32 %v2204_v43  ;;  %v3714_v30 = vpop.eup %3713 }
 0x97a   :  { %3717 = vrcp.f32 %v2205_v17  ;;  %v2206_v63 = vadd.f32 1.0, %v3714_v30 }
 0x97c   :  { %3719 = vrcp.f32 %v2206_v63 }
 0x983   :  { %v3716_v56 = vpop.eup %3715 }
 0x984   :  { %v2215_v28 = vmul.f32 %v3716_v56, %v3712_v7  ;;  %v3718_v59 = vpop.eup %3717 }
 0x985   :  { %v2214_v27 = vmul.f32 0.0, %v3718_v59 }
 0x986   :  { %v3720_v6 = vpop.eup %3719 }
 0x987   :  { %v4918_v26 = vadd.f32 %v2215_v28, %v2214_v27 }
 0x989   :  { %3721 = vtanh.f32 %v4918_v26 }
 0x993   :  { %v3722_v47 = vpop.eup %3721 }
 0x994   :  { %v4921_v8 = vmul.f32 %v3722_v47, %v3720_v6 }
 0x996   :  { %v2220_v43 = vpack.c.bf16 %v4921_v8, %v4921_v8 }
 0x998   :  { %2258 = vmatmul.mubr.bf16.vlgmr.msra.gmra.mrb[64].mxu0 %v2220_v43  ;;  %2299 = vmatmul.mubr.bf16.vlgmr.msra.gmra.mrb[72].mxu1 %v2220_v43 }
 0x999   :  { %2342 = vmatpush1.bf16.msra.mxu0 %v4689_v48  ;;  %2383 = vmatpush1.bf16.msra.mxu1 %v4691_v57 }
 0x99a   :  { %2343 = vmatprep.subr.bf16.mxu0 %v4697_v18  ;;  %2384 = vmatprep.subr.bf16.mxu1 %v4699_v14 }
 0x99b   :  { %2373 = vmatprep.mubr.bf16.mxu0 %v5394_v42  ;;  %2414 = vmatprep.mubr.bf16.mxu1 %v5394_v42 }
 0x99d   :  { %2344 = vmatpush1.bf16.msra.mxu0 %v4701_v24  ;;  %2385 = vmatpush1.bf16.msra.mxu1 %v4703_v21 }
 0x99e   :  { %2345 = vmatprep.subr.bf16.mxu0 %v4709_v10  ;;  %2386 = vmatprep.subr.bf16.mxu1 %v4711_v33 }
 0x9a1   :  { %2346 = vmatpush1.bf16.msra.mxu0 %v4713_v34  ;;  %2387 = vmatpush1.bf16.msra.mxu1 %v4715_v35 }
 0x9a2   :  { %2347 = vmatprep.subr.bf16.mxu0 %v4721_v36  ;;  %2388 = vmatprep.subr.bf16.mxu1 %v4725_v38 }
 0x9a5   :  { %2348 = vmatpush1.bf16.msra.mxu0 %v4723_v37  ;;  %2389 = vmatpush1.bf16.msra.mxu1 %v4727_v39 }
 0x9a6   :  { %2349 = vmatprep.subr.bf16.mxu0 %v4733_v13  ;;  %2390 = vmatprep.subr.bf16.mxu1 %v4735_v49 }
 0x9a9   :  { %2350 = vmatpush1.bf16.msra.mxu0 %v4737_v50  ;;  %2391 = vmatpush1.bf16.msra.mxu1 %v4739_v40 }
 0x9aa   :  { %2351 = vmatprep.subr.bf16.mxu0 %v4745_v55  ;;  %2392 = vmatprep.subr.bf16.mxu1 %v4749_v52 }
 0x9ad   :  { %2352 = vmatpush1.bf16.msra.mxu0 %v4747_v25  ;;  %2393 = vmatpush1.bf16.msra.mxu1 %v4751_v41 }
 0x9ae   :  { %2353 = vmatprep.subr.bf16.mxu0 %v4757_v46  ;;  %2394 = vmatprep.subr.bf16.mxu1 %v4759_v11 }
 0x9b1   :  { %2354 = vmatpush1.bf16.msra.mxu0 %v4761_v0  ;;  %2395 = vmatpush1.bf16.msra.mxu1 %v4763_v58 }
 0x9b2   :  { %2355 = vmatprep.subr.bf16.mxu0 %v4769_v4  ;;  %2396 = vmatprep.subr.bf16.mxu1 %v4773_v61 }
 0x9b5   :  { %2356 = vmatpush1.bf16.msra.mxu0 %v4771_v44  ;;  %2397 = vmatpush1.bf16.msra.mxu1 %v4775_v2 }
 0x9b6   :  { %2457 = vmatprep.subr.bf16.mxu0 %v4685_v51  ;;  %2498 = vmatprep.subr.bf16.mxu1 %v4687_v53 }
 0xa6b   :  { %v2259_v19 = vpop.f32.mrb[64].mxu0  ;;  %v2300_v60 = vpop.f32.mrb[72].mxu1 }
 0xa6c   :  { %v2307_v45 = vadd.f32 %v2259_v19, %v1769_v9  ;;  %v2309_v29 = vadd.f32 %v2300_v60, %v1842_v32  ;;  %v2261_v62 = vpop.f32.mrb[65].mxu0  ;;  %v2302_v17 = vpop.f32.mrb[73].mxu1 }
 0xa6d   :  { %v2308_v7 = vadd.f32 %v2261_v62, %v1771_v23  ;;  %v2310_v30 = vadd.f32 %v2302_v17, %v1844_v54  ;;  %v2263_v56 = vpop.f32.mrb[66].mxu0  ;;  %v2304_v28 = vpop.f32.mrb[74].mxu1 }
 0xa6e   :  { %v3344_v16 = vmul.f32 -1.442695, %v2307_v45  ;;  %v2264_v59 = vpop.f32.mrb[67].mxu0  ;;  %v2305_v63 = vpop.f32.mrb[75].mxu1  ;;  %v3346_v1 = vmul.f32 -1.442695, %v2309_v29 }
 0xa6f   :  { %v3345_v15 = vmul.f32 -1.442695, %v2308_v7  ;;  %v5442_v28 = vld [vmem:[#allocation23_spill] sm:$0xff] }
 0xa70   :  { %3723 = vpow2.f32 %v3344_v16  ;;  %v1777_v16 = vadd.f32 %v5442_v28, %v4904_v31  ;;  %v5443_v59 = vld [vmem:[#allocation15_spill] sm:$0xff] }
 0xa71   :  { %3725 = vpow2.f32 %v3345_v15  ;;  %v1850_v63 = vadd.f32 %v5443_v59, %v4908_v12 }
 0xa72   :  { %3727 = vtanh.f32 %v2310_v30  ;;  %v5441_v30 = vld [vmem:[#allocation14_spill] sm:$0xff] }
 0xa73   :  { %3729 = vpow2.f32 %v3346_v1  ;;  %v1848_v56 = vadd.f32 %v5441_v30, %v4896_v20 }
 0xa7a   :  { %v3724_v27 = vpop.eup %3723 }
 0xa7b   :  { %v2320_v6 = vadd.f32 1.0, %v3724_v27  ;;  %v3726_v3 = vpop.eup %3725 }
 0xa7c   :  { %v2321_v47 = vadd.f32 1.0, %v3726_v3  ;;  %v3728_v43 = vpop.eup %3727 }
 0xa7d   :  { %3731 = vrcp.f32 %v2320_v6  ;;  %v3730_v9 = vpop.eup %3729 }
 0xa7e   :  { %3733 = vrcp.f32 %v2321_v47  ;;  %v2322_v19 = vadd.f32 1.0, %v3730_v9 }
 0xa80   :  { %3735 = vrcp.f32 %v2322_v19 }
 0xa87   :  { %v3732_v32 = vpop.eup %3731 }
 0xa88   :  { %v2331_v23 = vmul.f32 %v3732_v32, %v3728_v43  ;;  %v3734_v54 = vpop.eup %3733 }
 0xa89   :  { %v2330_v60 = vmul.f32 %v3734_v54, %v4918_v26  ;;  %v1775_v26 = vadd.f32 %v4804_v5, %v4892_v22 }
 0xa8a   :  { %v3736_v29 = vpop.eup %3735 }
 0xa8b   :  { %v4968_v45 = vadd.f32 %v2331_v23, %v2330_v60 }
 0xa8d   :  { %3737 = vtanh.f32 %v4968_v45 }
 0xa97   :  { %v3738_v62 = vpop.eup %3737 }
 0xa98   :  { %v4971_v17 = vmul.f32 %v3738_v62, %v3736_v29 }
 0xa9a   :  { %v2336_v7 = vpack.c.bf16 %v4971_v17, %v4971_v17 }
 0xa9c   :  { %2374 = vmatmul.mubr.bf16.vlgmr.msra.gmra.mrb[68].mxu0 %v2336_v7  ;;  %2415 = vmatmul.mubr.bf16.vlgmr.msra.gmra.mrb[76].mxu1 %v2336_v7 }
 0xa9d   :  { %2458 = vmatpush1.bf16.msra.mxu0 %v4689_v48  ;;  %2499 = vmatpush1.bf16.msra.mxu1 %v4691_v57 }
 0xa9e   :  { %2459 = vmatprep.subr.bf16.mxu0 %v4697_v18  ;;  %2500 = vmatprep.subr.bf16.mxu1 %v4699_v14 }
 0xa9f   :  { %2489 = vmatprep.mubr.bf16.mxu0 %v5394_v42  ;;  %2530 = vmatprep.mubr.bf16.mxu1 %v5394_v42 }
 0xaa1   :  { %2460 = vmatpush1.bf16.msra.mxu0 %v4701_v24  ;;  %2501 = vmatpush1.bf16.msra.mxu1 %v4703_v21 }
 0xaa2   :  { %2461 = vmatprep.subr.bf16.mxu0 %v4709_v10  ;;  %2502 = vmatprep.subr.bf16.mxu1 %v4711_v33 }
 0xaa5   :  { %2462 = vmatpush1.bf16.msra.mxu0 %v4713_v34  ;;  %2503 = vmatpush1.bf16.msra.mxu1 %v4715_v35 }
 0xaa6   :  { %2463 = vmatprep.subr.bf16.mxu0 %v4721_v36  ;;  %2504 = vmatprep.subr.bf16.mxu1 %v4725_v38 }
 0xaa9   :  { %2464 = vmatpush1.bf16.msra.mxu0 %v4723_v37  ;;  %2505 = vmatpush1.bf16.msra.mxu1 %v4727_v39 }
 0xaaa   :  { %2465 = vmatprep.subr.bf16.mxu0 %v4733_v13  ;;  %2506 = vmatprep.subr.bf16.mxu1 %v4735_v49 }
 0xaad   :  { %2466 = vmatpush1.bf16.msra.mxu0 %v4737_v50  ;;  %2507 = vmatpush1.bf16.msra.mxu1 %v4739_v40 }
 0xaae   :  { %2467 = vmatprep.subr.bf16.mxu0 %v4745_v55  ;;  %2508 = vmatprep.subr.bf16.mxu1 %v4749_v52 }
 0xab1   :  { %2468 = vmatpush1.bf16.msra.mxu0 %v4747_v25  ;;  %2509 = vmatpush1.bf16.msra.mxu1 %v4751_v41 }
 0xab2   :  { %2469 = vmatprep.subr.bf16.mxu0 %v4757_v46  ;;  %2510 = vmatprep.subr.bf16.mxu1 %v4759_v11 }
 0xab5   :  { %2470 = vmatpush1.bf16.msra.mxu0 %v4761_v0  ;;  %2511 = vmatpush1.bf16.msra.mxu1 %v4763_v58 }
 0xab6   :  { %2471 = vmatprep.subr.bf16.mxu0 %v4769_v4  ;;  %2512 = vmatprep.subr.bf16.mxu1 %v4773_v61 }
 0xab9   :  { %2472 = vmatpush1.bf16.msra.mxu0 %v4771_v44  ;;  %2513 = vmatpush1.bf16.msra.mxu1 %v4775_v2 }
 0xaba   :  { %2573 = vmatprep.subr.bf16.mxu0 %v4685_v51  ;;  %2614 = vmatprep.subr.bf16.mxu1 %v4687_v53 }
 0xb6f   :  { %v2375_v15 = vpop.f32.mrb[68].mxu0  ;;  %v2416_v1 = vpop.f32.mrb[76].mxu1 }
 0xb70   :  { %v2423_v27 = vadd.f32 %v2375_v15, %v1775_v26  ;;  %v2425_v6 = vadd.f32 %v2416_v1, %v1848_v56  ;;  %v2377_v3 = vpop.f32.mrb[69].mxu0  ;;  %v2418_v47 = vpop.f32.mrb[77].mxu1 }
 0xb71   :  { %v2424_v43 = vadd.f32 %v2377_v3, %v1777_v16  ;;  %v2426_v9 = vadd.f32 %v2418_v47, %v1850_v63  ;;  %v2379_v32 = vpop.f32.mrb[70].mxu0  ;;  %v2420_v23 = vpop.f32.mrb[78].mxu1 }
 0xb72   :  { %v3347_v5 = vmul.f32 -1.442695, %v2423_v27  ;;  %v2380_v54 = vpop.f32.mrb[71].mxu0  ;;  %v2421_v19 = vpop.f32.mrb[79].mxu1  ;;  %v3349_v29 = vmul.f32 -1.442695, %v2425_v6 }
 0xb73   :  { %v3348_v60 = vmul.f32 -1.442695, %v2424_v43  ;;  %v5445_v32 = vld [vmem:[#allocation16_spill] sm:$0xff]  ;;  %v5447_v19 = vld [vmem:[#allocation17_spill] sm:$0xff] }
 0xb74   :  { %3739 = vpow2.f32 %v3347_v5  ;;  %v1852_v23 = vadd.f32 %v5445_v32, %v4896_v20  ;;  %v5446_v5 = vld [vmem:[#allocation27_spill] sm:$0xff] }
 0xb75   :  { %3741 = vpow2.f32 %v3348_v60  ;;  %v1781_v54 = vadd.f32 %v5446_v5, %v4904_v31  ;;  %v1854_v60 = vadd.f32 %v5447_v19, %v4908_v12 }
 0xb76   :  { %3743 = vtanh.f32 %v2426_v9 }
 0xb77   :  { %3745 = vpow2.f32 %v3349_v29 }
 0xb7e   :  { %v3740_v62 = vpop.eup %3739 }
 0xb7f   :  { %v2436_v7 = vadd.f32 1.0, %v3740_v62  ;;  %v3742_v30 = vpop.eup %3741 }
 0xb80   :  { %v2437_v26 = vadd.f32 1.0, %v3742_v30  ;;  %v3744_v56 = vpop.eup %3743 }
 0xb81   :  { %3747 = vrcp.f32 %v2436_v7  ;;  %v3746_v28 = vpop.eup %3745 }
 0xb82   :  { %3749 = vrcp.f32 %v2437_v26  ;;  %v2438_v15 = vadd.f32 1.0, %v3746_v28 }
 0xb84   :  { %3751 = vrcp.f32 %v2438_v15 }
 0xb8b   :  { %v3748_v16 = vpop.eup %3747 }
 0xb8c   :  { %v2447_v59 = vmul.f32 %v3748_v16, %v3744_v56  ;;  %v3750_v63 = vpop.eup %3749 }
 0xb8d   :  { %v2446_v1 = vmul.f32 %v3750_v63, %v4968_v45  ;;  %v5444_v45 = vld [vmem:[#allocation25_spill] sm:$0xff] }
 0xb8e   :  { %v3752_v6 = vpop.eup %3751  ;;  %v1779_v9 = vadd.f32 %v5444_v45, %v4892_v22 }
 0xb8f   :  { %v5018_v27 = vadd.f32 %v2447_v59, %v2446_v1 }
 0xb91   :  { %3753 = vtanh.f32 %v5018_v27 }
 0xb9b   :  { %v3754_v3 = vpop.eup %3753 }
 0xb9c   :  { %v5021_v47 = vmul.f32 %v3754_v3, %v3752_v6 }
 0xb9e   :  { %v2452_v43 = vpack.c.bf16 %v5021_v47, %v5021_v47 }
 0xba0   :  { %2490 = vmatmul.mubr.bf16.vlgmr.msra.gmra.mrb[72].mxu0 %v2452_v43  ;;  %2531 = vmatmul.mubr.bf16.vlgmr.msra.gmra.mrb[80].mxu1 %v2452_v43 }
 0xba1   :  { %2574 = vmatpush1.bf16.msra.mxu0 %v4689_v48  ;;  %2615 = vmatpush1.bf16.msra.mxu1 %v4691_v57 }
 0xba2   :  { %2575 = vmatprep.subr.bf16.mxu0 %v4697_v18  ;;  %2616 = vmatprep.subr.bf16.mxu1 %v4699_v14 }
 0xba3   :  { %2605 = vmatprep.mubr.bf16.mxu0 %v5394_v42  ;;  %2646 = vmatprep.mubr.bf16.mxu1 %v5394_v42 }
 0xba5   :  { %2576 = vmatpush1.bf16.msra.mxu0 %v4701_v24  ;;  %2617 = vmatpush1.bf16.msra.mxu1 %v4703_v21 }
 0xba6   :  { %2577 = vmatprep.subr.bf16.mxu0 %v4709_v10  ;;  %2618 = vmatprep.subr.bf16.mxu1 %v4711_v33 }
 0xba9   :  { %2578 = vmatpush1.bf16.msra.mxu0 %v4713_v34  ;;  %2619 = vmatpush1.bf16.msra.mxu1 %v4715_v35 }
 0xbaa   :  { %2579 = vmatprep.subr.bf16.mxu0 %v4721_v36  ;;  %2620 = vmatprep.subr.bf16.mxu1 %v4725_v38 }
 0xbad   :  { %2580 = vmatpush1.bf16.msra.mxu0 %v4723_v37  ;;  %2621 = vmatpush1.bf16.msra.mxu1 %v4727_v39 }
 0xbae   :  { %2581 = vmatprep.subr.bf16.mxu0 %v4733_v13  ;;  %2622 = vmatprep.subr.bf16.mxu1 %v4735_v49 }
 0xbb1   :  { %2582 = vmatpush1.bf16.msra.mxu0 %v4737_v50  ;;  %2623 = vmatpush1.bf16.msra.mxu1 %v4739_v40 }
 0xbb2   :  { %2583 = vmatprep.subr.bf16.mxu0 %v4745_v55  ;;  %2624 = vmatprep.subr.bf16.mxu1 %v4749_v52 }
 0xbb5   :  { %2584 = vmatpush1.bf16.msra.mxu0 %v4747_v25  ;;  %2625 = vmatpush1.bf16.msra.mxu1 %v4751_v41 }
 0xbb6   :  { %2585 = vmatprep.subr.bf16.mxu0 %v4757_v46  ;;  %2626 = vmatprep.subr.bf16.mxu1 %v4759_v11 }
 0xbb9   :  { %2586 = vmatpush1.bf16.msra.mxu0 %v4761_v0  ;;  %2627 = vmatpush1.bf16.msra.mxu1 %v4763_v58 }
 0xbba   :  { %2587 = vmatprep.subr.bf16.mxu0 %v4769_v4  ;;  %2628 = vmatprep.subr.bf16.mxu1 %v4773_v61 }
 0xbbd   :  { %2588 = vmatpush1.bf16.msra.mxu0 %v4771_v44  ;;  %2629 = vmatpush1.bf16.msra.mxu1 %v4775_v2 }
 0xbbe   :  { %2689 = vmatprep.subr.bf16.mxu0 %v4685_v51  ;;  %2730 = vmatprep.subr.bf16.mxu1 %v4687_v53 }
 0xc73   :  { %v2491_v29 = vpop.f32.mrb[72].mxu0  ;;  %v2532_v62 = vpop.f32.mrb[80].mxu1 }
 0xc74   :  { %v2539_v7 = vadd.f32 %v2491_v29, %v1779_v9  ;;  %v2541_v30 = vadd.f32 %v2532_v62, %v1852_v23  ;;  %v2493_v26 = vpop.f32.mrb[73].mxu0  ;;  %v2534_v56 = vpop.f32.mrb[81].mxu1 }
 0xc75   :  { %v2540_v28 = vadd.f32 %v2493_v26, %v1781_v54  ;;  %v2542_v16 = vadd.f32 %v2534_v56, %v1854_v60  ;;  %v2495_v59 = vpop.f32.mrb[74].mxu0  ;;  %v2536_v63 = vpop.f32.mrb[82].mxu1 }
 0xc76   :  { %v3350_v15 = vmul.f32 -1.442695, %v2539_v7  ;;  %v2496_v1 = vpop.f32.mrb[75].mxu0  ;;  %v2537_v6 = vpop.f32.mrb[83].mxu1  ;;  %v3352_v43 = vmul.f32 -1.442695, %v2541_v30 }
 0xc77   :  { %v3351_v3 = vmul.f32 -1.442695, %v2540_v28 }
 0xc78   :  { %3755 = vpow2.f32 %v3350_v15 }
 0xc79   :  { %3757 = vpow2.f32 %v3351_v3 }
 0xc7a   :  { %3759 = vtanh.f32 %v2542_v16 }
 0xc7b   :  { %3761 = vpow2.f32 %v3352_v43  ;;  %v5125_v43 = vld [vmem:[#allocation10] ss:$16 sps:$4 sm:$0xff]  }
 0xc82   :  { %v3756_v45 = vpop.eup %3755 }
 0xc83   :  { %v2552_v32 = vadd.f32 1.0, %v3756_v45  ;;  %v3758_v5 = vpop.eup %3757  ;;  %v5128_v45 = vld [vmem:[#allocation10 + $0x8] ss:$16 sps:$4 sm:$0xff]  }
 0xc84   :  { %v2553_v9 = vadd.f32 1.0, %v3758_v5  ;;  %v3760_v23 = vpop.eup %3759  ;;  %v5134_v5 = vld [vmem:[#allocation10 + $0x2c] ss:$16 sps:$4 sm:$0xff]  }
 0xc85   :  { %3763 = vrcp.f32 %v2552_v32  ;;  %v3762_v54 = vpop.eup %3761  ;;  %v5131_v32 = vld [vmem:[#allocation10 + $0x24] ss:$16 sps:$4 sm:$0xff]  }
 0xc86   :  { %3765 = vrcp.f32 %v2553_v9  ;;  %v2554_v62 = vadd.f32 1.0, %v3762_v54  ;;  %v5139_v9 = vld [vmem:[#allocation10 + $0x20] ss:$16 sps:$4 sm:$0xff]   ;;  %v5145_v54 = vld [vmem:[#allocation10 + $0x44] ss:$16 sps:$4 sm:$0xff]  }
 0xc88   :  { %3767 = vrcp.f32 %v2554_v62  ;;  %v5157_v62 = vld [vmem:[#allocation10 + $0x64] ss:$16 sps:$4 sm:$0xff]  }
 0xc8f   :  { %v3764_v19 = vpop.eup %3763 }
 0xc90   :  { %v2563_v60 = vmul.f32 %v3764_v19, %v3760_v23  ;;  %v3766_v29 = vpop.eup %3765  ;;  %v5142_v23 = vld [vmem:[#allocation10 + $0x28] ss:$16 sps:$4 sm:$0xff]   ;;  %v5148_v19 = vld [vmem:[#allocation10 + $0x4c] ss:$16 sps:$4 sm:$0xff]  }
 0xc91   :  { %v2562_v7 = vmul.f32 %v3766_v29, %v5018_v27  ;;  %v5154_v29 = vld [vmem:[#allocation10 + $0x48] ss:$16 sps:$4 sm:$0xff]  }
 0xc92   :  { %v3768_v30 = vpop.eup %3767 }
 0xc93   :  { %v5068_v26 = vadd.f32 %v2563_v60, %v2562_v7  ;;  %v5151_v60 = vld [vmem:[#allocation10 + $0x40] ss:$16 sps:$4 sm:$0xff]   ;;  %v5160_v7 = vld [vmem:[#allocation10 + $0x6c] ss:$16 sps:$4 sm:$0xff]  }
 0xc95   :  { %3769 = vtanh.f32 %v5068_v26 }
 0xc9f   :  { %v3770_v56 = vpop.eup %3769 }
 0xca0   :  { %v5071_v28 = vmul.f32 %v3770_v56, %v3768_v30  ;;  %v5166_v30 = vld [vmem:[#allocation10 + $0x68] ss:$16 sps:$4 sm:$0xff]   ;;  %v5169_v56 = vld [vmem:[#allocation10 + $0x84] ss:$16 sps:$4 sm:$0xff]  }
 0xca2   :  { %v2568_v16 = vpack.c.bf16 %v5071_v28, %v5071_v28 }
 0xca4   :  { %2606 = vmatmul.mubr.bf16.vlgmr.msra.gmra.mrb[76].mxu0 %v2568_v16  ;;  %2647 = vmatmul.mubr.bf16.vlgmr.msra.gmra.mrb[84].mxu1 %v2568_v16  ;;  %v5172_v16 = vld [vmem:[#allocation10 + $0x8c] ss:$16 sps:$4 sm:$0xff]  }
 0xca5   :  { %2690 = vmatpush1.bf16.msra.mxu0 %v4689_v48  ;;  %2731 = vmatpush1.bf16.msra.mxu1 %v4691_v57  ;;  %v5448_v48 = vld [vmem:[#allocation18_spill] sm:$0xff] }
 0xca6   :  { %2691 = vmatprep.subr.bf16.mxu0 %v4697_v18  ;;  %2732 = vmatprep.subr.bf16.mxu1 %v4699_v14  ;;  %v1785_v57 = vadd.f32 %v5448_v48, %v4892_v22  ;;  %v5449_v18 = vld [vmem:[#allocation19_spill] sm:$0xff] }
 0xca7   :  { %2721 = vmatprep.mubr.bf16.mxu0 %v5394_v42  ;;  %2762 = vmatprep.mubr.bf16.mxu1 %v5394_v42  ;;  %v1858_v14 = vadd.f32 %v5449_v18, %v4896_v20  ;;  %v5175_v48 = vld [vmem:[#allocation10 + $0x80] ss:$16 sps:$4 sm:$0xff]   ;;  %v5181_v18 = vld [vmem:[#allocation10 + $0xa4] ss:$16 sps:$4 sm:$0xff]  }
 0xca9   :  { %2692 = vmatpush1.bf16.msra.mxu0 %v4701_v24  ;;  %2733 = vmatpush1.bf16.msra.mxu1 %v4703_v21  ;;  %v5450_v24 = vld [vmem:[#allocation20_spill] sm:$0xff] }
 0xcaa   :  { %2693 = vmatprep.subr.bf16.mxu0 %v4709_v10  ;;  %2734 = vmatprep.subr.bf16.mxu1 %v4711_v33  ;;  %v1787_v21 = vadd.f32 %v5450_v24, %v4904_v31  ;;  %v5451_v10 = vld [vmem:[#allocation21_spill] sm:$0xff] }
 0xcab   :  { %v1860_v33 = vadd.f32 %v5451_v10, %v4908_v12  ;;  %v5187_v24 = vld [vmem:[#allocation10 + $0xa0] ss:$16 sps:$4 sm:$0xff]   ;;  %v5193_v10 = vld [vmem:[#allocation10 + $0xc4] ss:$16 sps:$4 sm:$0xff]  }
 0xcad   :  { %2694 = vmatpush1.bf16.msra.mxu0 %v4713_v34  ;;  %2735 = vmatpush1.bf16.msra.mxu1 %v4715_v35 }
 0xcae   :  { %2695 = vmatprep.subr.bf16.mxu0 %v4721_v36  ;;  %2736 = vmatprep.subr.bf16.mxu1 %v4725_v38 }
 0xcb1   :  { %2696 = vmatpush1.bf16.msra.mxu0 %v4723_v37  ;;  %2737 = vmatpush1.bf16.msra.mxu1 %v4727_v39 }
 0xcb2   :  { %2697 = vmatprep.subr.bf16.mxu0 %v4733_v13  ;;  %2738 = vmatprep.subr.bf16.mxu1 %v4735_v49 }
 0xcb5   :  { %2698 = vmatpush1.bf16.msra.mxu0 %v4737_v50  ;;  %2739 = vmatpush1.bf16.msra.mxu1 %v4739_v40 }
 0xcb6   :  { %2699 = vmatprep.subr.bf16.mxu0 %v4745_v55  ;;  %2740 = vmatprep.subr.bf16.mxu1 %v4749_v52 }
 0xcb9   :  { %2700 = vmatpush1.bf16.msra.mxu0 %v4747_v25  ;;  %2741 = vmatpush1.bf16.msra.mxu1 %v4751_v41 }
 0xcba   :  { %2701 = vmatprep.subr.bf16.mxu0 %v4757_v46  ;;  %2742 = vmatprep.subr.bf16.mxu1 %v4759_v11 }
 0xcbd   :  { %2702 = vmatpush1.bf16.msra.mxu0 %v4761_v0  ;;  %2743 = vmatpush1.bf16.msra.mxu1 %v4763_v58 }
 0xcbe   :  { %2703 = vmatprep.subr.bf16.mxu0 %v4769_v4  ;;  %2744 = vmatprep.subr.bf16.mxu1 %v4773_v61 }
 0xcc1   :  { %2704 = vmatpush1.bf16.msra.mxu0 %v4771_v44  ;;  %2745 = vmatpush1.bf16.msra.mxu1 %v4775_v2 }
 0xcc2   :  { %2805 = vmatprep.subr.bf16.mxu0 %v4685_v51  ;;  %2846 = vmatprep.subr.bf16.mxu1 %v4687_v53 }
 0xd77   :  { %v2607_v34 = vpop.f32.mrb[76].mxu0  ;;  %v2648_v35 = vpop.f32.mrb[84].mxu1 }
 0xd78   :  { %v2655_v36 = vadd.f32 %v2607_v34, %v1785_v57  ;;  %v2657_v37 = vadd.f32 %v2648_v35, %v1858_v14  ;;  %v2609_v38 = vpop.f32.mrb[77].mxu0  ;;  %v2650_v51 = vpop.f32.mrb[85].mxu1  ;;  %v5178_v57 = vld [vmem:[#allocation10 + $0x88] ss:$16 sps:$4 sm:$0xff]   ;;  %v5184_v14 = vld [vmem:[#allocation10 + $0xac] ss:$16 sps:$4 sm:$0xff]  }
 0xd79   :  { %v2656_v39 = vadd.f32 %v2609_v38, %v1787_v21  ;;  %v2658_v53 = vadd.f32 %v2650_v51, %v1860_v33  ;;  %v2611_v13 = vpop.f32.mrb[78].mxu0  ;;  %v2652_v49 = vpop.f32.mrb[86].mxu1  ;;  %v5190_v21 = vld [vmem:[#allocation10 + $0xa8] ss:$16 sps:$4 sm:$0xff]   ;;  %v5196_v33 = vld [vmem:[#allocation10 + $0xcc] ss:$16 sps:$4 sm:$0xff]  }
 0xd7a   :  { %v3353_v50 = vmul.f32 -1.442695, %v2655_v36  ;;  %v2612_v40 = vpop.f32.mrb[79].mxu0  ;;  %v2653_v55 = vpop.f32.mrb[87].mxu1  ;;  %v3355_v52 = vmul.f32 -1.442695, %v2657_v37 }
 0xd7b   :  { %v3354_v25 = vmul.f32 -1.442695, %v2656_v39  ;;  %v5199_v34 = vld [vmem:[#allocation10 + $0xc0] ss:$16 sps:$4 sm:$0xff]   ;;  %v5202_v35 = vld [vmem:[#allocation10 + $0xc8] ss:$16 sps:$4 sm:$0xff]  }
 0xd7c   :  { %3771 = vpow2.f32 %v3353_v50  ;;  %v5205_v36 = vld [vmem:[#allocation10 + $0xe4] ss:$16 sps:$4 sm:$0xff]   ;;  %v5208_v37 = vld [vmem:[#allocation10 + $0xec] ss:$16 sps:$4 sm:$0xff]   ;;  %v5211_v38 = vld [vmem:[#allocation10 + $0xe0] ss:$16 sps:$4 sm:$0xff]  }
 0xd7d   :  { %3773 = vpow2.f32 %v3354_v25  ;;  %v5214_v51 = vld [vmem:[#allocation10 + $0xe8] ss:$16 sps:$4 sm:$0xff]   ;;  %v3897_v39 = vld [vmem:[#allocation10 + $0x4] ss:$16 sps:$4 sm:$0xff]  }
 0xd7e   :  { %3775 = vtanh.f32 %v2658_v53  ;;  %v3898_v53 = vld [vmem:[#allocation10 + $0xc] ss:$16 sps:$4 sm:$0xff]   ;;  %v5454_v55 = vld [vmem:[#allocation29_spill] sm:$0xff] }
 0xd7f   :  { %3777 = vpow2.f32 %v3355_v52  ;;  %v5452_v13 = vld [vmem:[#allocation28_spill] sm:$0xff]  ;;  %v5453_v50 = vld [vmem:[#allocation22_spill] sm:$0xff]  ;;  %v1791_v25 = vadd.f32 %v5454_v55, %v4904_v31 }
 0xd80   :  { %v1789_v49 = vadd.f32 %v5452_v13, %v4892_v22  ;;  %v1862_v40 = vadd.f32 %v5453_v50, %v4896_v20  ;;  %v5455_v52 = vld [vmem:[#allocation24_spill] sm:$0xff] }
 0xd86   :  { %v3772_v41 = vpop.eup %3771 }
 0xd87   :  { %v2668_v46 = vadd.f32 1.0, %v3772_v41  ;;  %v3774_v11 = vpop.eup %3773  ;;  %v1864_v41 = vadd.f32 %v5455_v52, %v4908_v12 }
 0xd88   :  { %v2669_v0 = vadd.f32 1.0, %v3774_v11  ;;  %v3776_v58 = vpop.eup %3775 }
 0xd89   :  { %3779 = vrcp.f32 %v2668_v46  ;;  %v3778_v4 = vpop.eup %3777 }
 0xd8a   :  { %3781 = vrcp.f32 %v2669_v0  ;;  %v2670_v27 = vadd.f32 1.0, %v3778_v4 }
 0xd8c   :  { %3783 = vrcp.f32 %v2670_v27 }
 0xd93   :  { %v3780_v44 = vpop.eup %3779 }
 0xd94   :  { %v2679_v61 = vmul.f32 %v3780_v44, %v3776_v58  ;;  %v3782_v2 = vpop.eup %3781 }
 0xd95   :  { %v2678_v59 = vmul.f32 %v3782_v2, %v5068_v26  ;;  %v5163_v26 = vld [vmem:[#allocation10 + $0x60] ss:$16 sps:$4 sm:$0xff]  }
 0xd96   :  { %v3784_v15 = vpop.eup %3783 }
 0xd97   :  { %v5118_v63 = vadd.f32 %v2679_v61, %v2678_v59 }
 0xd99   :  { %3785 = vtanh.f32 %v5118_v63 }
 0xda3   :  { %v3786_v1 = vpop.eup %3785 }
 0xda4   :  { %v5121_v6 = vmul.f32 %v3786_v1, %v3784_v15 }
 0xda6   :  { %v2684_v3 = vpack.c.bf16 %v5121_v6, %v5121_v6 }
 0xda8   :  { %2722 = vmatmul.mubr.bf16.vlgmr.msra.gmra.mrb[80].mxu0 %v2684_v3  ;;  %2763 = vmatmul.mubr.bf16.vlgmr.msra.gmra.mrb[88].mxu1 %v2684_v3 }
 0xda9   :  { %2806 = vmatpush1.bf16.msra.mxu0 %v5125_v43  ;;  %2847 = vmatpush1.bf16.msra.mxu1 %v5128_v45 }
 0xdaa   :  { %2807 = vmatprep.subr.bf16.mxu0 %v5131_v32  ;;  %2848 = vmatprep.subr.bf16.mxu1 %v5134_v5 }
 0xdab   :  { %2837 = vmatprep.mubr.bf16.mxu0 %v5394_v42  ;;  %2878 = vmatprep.mubr.bf16.mxu1 %v5394_v42 }
 0xdad   :  { %2808 = vmatpush1.bf16.msra.mxu0 %v5139_v9  ;;  %2849 = vmatpush1.bf16.msra.mxu1 %v5142_v23 }
 0xdae   :  { %2809 = vmatprep.subr.bf16.mxu0 %v5145_v54  ;;  %2850 = vmatprep.subr.bf16.mxu1 %v5148_v19 }
 0xdb1   :  { %2810 = vmatpush1.bf16.msra.mxu0 %v5151_v60  ;;  %2851 = vmatpush1.bf16.msra.mxu1 %v5154_v29 }
 0xdb2   :  { %2811 = vmatprep.subr.bf16.mxu0 %v5157_v62  ;;  %2852 = vmatprep.subr.bf16.mxu1 %v5160_v7 }
 0xdb5   :  { %2812 = vmatpush1.bf16.msra.mxu0 %v5163_v26  ;;  %2853 = vmatpush1.bf16.msra.mxu1 %v5166_v30 }
 0xdb6   :  { %2813 = vmatprep.subr.bf16.mxu0 %v5169_v56  ;;  %2854 = vmatprep.subr.bf16.mxu1 %v5172_v16 }
 0xdb9   :  { %2814 = vmatpush1.bf16.msra.mxu0 %v5175_v48  ;;  %2855 = vmatpush1.bf16.msra.mxu1 %v5178_v57 }
 0xdba   :  { %2815 = vmatprep.subr.bf16.mxu0 %v5181_v18  ;;  %2856 = vmatprep.subr.bf16.mxu1 %v5184_v14 }
 0xdbd   :  { %2816 = vmatpush1.bf16.msra.mxu0 %v5187_v24  ;;  %2857 = vmatpush1.bf16.msra.mxu1 %v5190_v21 }
 0xdbe   :  { %2817 = vmatprep.subr.bf16.mxu0 %v5193_v10  ;;  %2858 = vmatprep.subr.bf16.mxu1 %v5196_v33 }
 0xdc1   :  { %2818 = vmatpush1.bf16.msra.mxu0 %v5199_v34  ;;  %2859 = vmatpush1.bf16.msra.mxu1 %v5202_v35 }
 0xdc2   :  { %2819 = vmatprep.subr.bf16.mxu0 %v5205_v36  ;;  %2860 = vmatprep.subr.bf16.mxu1 %v5208_v37 }
 0xdc5   :  { %2820 = vmatpush1.bf16.msra.mxu0 %v5211_v38  ;;  %2861 = vmatpush1.bf16.msra.mxu1 %v5214_v51 }
 0xdc6   :  { %2921 = vmatprep.subr.bf16.mxu0 %v3897_v39  ;;  %2962 = vmatprep.subr.bf16.mxu1 %v3898_v53 }
 0xe7b   :  { %v2723_v46 = vpop.f32.mrb[80].mxu0  ;;  %v2764_v11 = vpop.f32.mrb[88].mxu1 }
 0xe7c   :  { %v2771_v0 = vadd.f32 %v2723_v46, %v1789_v49  ;;  %v2773_v58 = vadd.f32 %v2764_v11, %v1862_v40  ;;  %v2725_v4 = vpop.f32.mrb[81].mxu0  ;;  %v2766_v44 = vpop.f32.mrb[89].mxu1 }
 0xe7d   :  { %v2772_v61 = vadd.f32 %v2725_v4, %v1791_v25  ;;  %v2774_v2 = vadd.f32 %v2766_v44, %v1864_v41  ;;  %v2727_v27 = vpop.f32.mrb[82].mxu0  ;;  %v2768_v59 = vpop.f32.mrb[90].mxu1 }
 0xe7e   :  { %v3356_v15 = vmul.f32 -1.442695, %v2771_v0  ;;  %v2728_v1 = vpop.f32.mrb[83].mxu0  ;;  %v2769_v3 = vpop.f32.mrb[91].mxu1  ;;  %v3358_v53 = vmul.f32 -1.442695, %v2773_v58 }
 0xe7f   :  { %v3357_v39 = vmul.f32 -1.442695, %v2772_v61 }
 0xe80   :  { %3787 = vpow2.f32 %v3356_v15 }
 0xe81   :  { %3789 = vpow2.f32 %v3357_v39 }
 0xe82   :  { %3791 = vtanh.f32 %v2774_v2 }
 0xe83   :  { %3793 = vpow2.f32 %v3358_v53 }
 0xe8a   :  { %v3788_v13 = vpop.eup %3787 }
 0xe8b   :  { %v2784_v50 = vadd.f32 1.0, %v3788_v13  ;;  %v3790_v55 = vpop.eup %3789 }
 0xe8c   :  { %v2785_v49 = vadd.f32 1.0, %v3790_v55  ;;  %v3792_v40 = vpop.eup %3791  ;;  %v3044_v55 = vpack.c.bf16 %v4971_v17, %v4921_v8  ;;  %v3575_v8 = vld [vmem:[%s5363_s7 + $0x20] sm:$0xff]   ;;  %v3576_v17 = vld [vmem:[%s5363_s7 + $0x28] sm:$0xff]  }
 0xe8d   :  { %3795 = vrcp.f32 %v2784_v50  ;;  %v3794_v25 = vpop.eup %3793  ;;  %v3572_v50 = vld [vmem:[%s5363_s7 + $0x8] sm:$0xff]  }
 0xe8e   :  { %3797 = vrcp.f32 %v2785_v49  ;;  %v2786_v11 = vadd.f32 1.0, %v3794_v25  ;;  %v3573_v49 = vld [vmem:[%s5363_s7 + $0x10] sm:$0xff]  }
 0xe8f   :  { %v3577_v25 = vld [vmem:[%s5363_s7 + $0x30] sm:$0xff]  }
 0xe90   :  { %3799 = vrcp.f32 %v2786_v11  ;;  %v5460_v11 = vld [vmem:[#allocation33_spill] sm:$0xff] }
 0xe97   :  { %v3796_v52 = vpop.eup %3795 }
 0xe98   :  { %v2795_v41 = vmul.f32 %v3796_v52, %v3792_v40  ;;  %v3798_v46 = vpop.eup %3797  ;;  %v3574_v40 = vld [vmem:[%s5363_s7 + $0x18] sm:$0xff]  }
 0xe99   :  { %v2794_v0 = vmul.f32 %v3798_v46, %v5118_v63  ;;  %v5456_v63 = vld [vmem:[#allocation30_spill] sm:$0xff]  ;;  %v3578_v52 = vld [vmem:[%s5363_s7 + $0x38] sm:$0xff]  }
 0xe9a   :  { %v3800_v58 = vpop.eup %3799 }
 0xe9b   :  { %v5226_v4 = vadd.f32 %v2795_v41, %v2794_v0  ;;  %v3045_v41 = vpack.c.bf16 %v5071_v28, %v5021_v47  ;;  %v1799_v0 = vadd.f32 %v5460_v11, %v4892_v22 }
 0xe9d   :  { %3801 = vtanh.f32 %v5226_v4 }
 0xea7   :  { %v3802_v44 = vpop.eup %3801 }
 0xea8   :  { %v5229_v61 = vmul.f32 %v3802_v44, %v3800_v58  ;;  %v5462_v44 = vld [vmem:[#allocation13_spill] sm:$0xff] }
 0xeaa   :  { %v2800_v2 = vpack.c.bf16 %v5229_v61, %v5229_v61  ;;  %v3046_v46 = vpack.c.bf16 %v5229_v61, %v5121_v6 }
 0xeac   :  { %2838 = vmatmul.mubr.bf16.vlgmr.msra.gmra.mrb[84].mxu0 %v2800_v2  ;;  %2879 = vmatmul.mubr.bf16.vlgmr.msra.gmra.mrb[92].mxu1 %v2800_v2  ;;  %v1801_v2 = vadd.f32 %v5462_v44, %v4904_v31 }
 0xead   :  { %2922 = vmatpush1.bf16.msra.mxu0 %v5125_v43  ;;  %2963 = vmatpush1.bf16.msra.mxu1 %v5128_v45  ;;  %v1795_v43 = vadd.f32 %v5456_v63, %v4892_v22  ;;  %v5457_v45 = vld [vmem:[#allocation26_spill] sm:$0xff] }
 0xeae   :  { %2923 = vmatprep.subr.bf16.mxu0 %v5131_v32  ;;  %2964 = vmatprep.subr.bf16.mxu1 %v5134_v5  ;;  %v1868_v32 = vadd.f32 %v5457_v45, %v4896_v20  ;;  %v5458_v5 = vld [vmem:[#allocation31_spill] sm:$0xff] }
 0xeaf   :  { %2953 = vmatprep.mubr.bf16.mxu0 %v5394_v42  ;;  %2994 = vmatprep.mubr.bf16.mxu1 %v5394_v42  ;;  %v3571_v42 = vld [vmem:[%s5363_s7] sm:$0xff]  }
 0xeb1   :  { %2924 = vmatpush1.bf16.msra.mxu0 %v5139_v9  ;;  %2965 = vmatpush1.bf16.msra.mxu1 %v5142_v23  ;;  %v1797_v9 = vadd.f32 %v5458_v5, %v4904_v31  ;;  %v5459_v23 = vld [vmem:[#allocation32_spill] sm:$0xff] }
 0xeb2   :  { %2925 = vmatprep.subr.bf16.mxu0 %v5145_v54  ;;  %2966 = vmatprep.subr.bf16.mxu1 %v5148_v19  ;;  %v1870_v54 = vadd.f32 %v5459_v23, %v4908_v12 }
 0xeb5   :  { %2926 = vmatpush1.bf16.msra.mxu0 %v5151_v60  ;;  %2967 = vmatpush1.bf16.msra.mxu1 %v5154_v29 }
 0xeb6   :  { %2927 = vmatprep.subr.bf16.mxu0 %v5157_v62  ;;  %2968 = vmatprep.subr.bf16.mxu1 %v5160_v7 }
 0xeb9   :  { %2928 = vmatpush1.bf16.msra.mxu0 %v5163_v26  ;;  %2969 = vmatpush1.bf16.msra.mxu1 %v5166_v30 }
 0xeba   :  { %2929 = vmatprep.subr.bf16.mxu0 %v5169_v56  ;;  %2970 = vmatprep.subr.bf16.mxu1 %v5172_v16 }
 0xebd   :  { %2930 = vmatpush1.bf16.msra.mxu0 %v5175_v48  ;;  %2971 = vmatpush1.bf16.msra.mxu1 %v5178_v57 }
 0xebe   :  { %2931 = vmatprep.subr.bf16.mxu0 %v5181_v18  ;;  %2972 = vmatprep.subr.bf16.mxu1 %v5184_v14 }
 0xec1   :  { %2932 = vmatpush1.bf16.msra.mxu0 %v5187_v24  ;;  %2973 = vmatpush1.bf16.msra.mxu1 %v5190_v21 }
 0xec2   :  { %2933 = vmatprep.subr.bf16.mxu0 %v5193_v10  ;;  %2974 = vmatprep.subr.bf16.mxu1 %v5196_v33 }
 0xec5   :  { %2934 = vmatpush1.bf16.msra.mxu0 %v5199_v34  ;;  %2975 = vmatpush1.bf16.msra.mxu1 %v5202_v35 }
 0xec6   :  { %2935 = vmatprep.subr.bf16.mxu0 %v5205_v36  ;;  %2976 = vmatprep.subr.bf16.mxu1 %v5208_v37 }
 0xec9   :  { %2936 = vmatpush1.bf16.msra.mxu0 %v5211_v38  ;;  %2977 = vmatpush1.bf16.msra.mxu1 %v5214_v51 }
 0xeca   :  { %3386 = vmatprep.subr.bf16.mxu0 %v3571_v42 }
 0xf7f   :  { %v2839_v19 = vpop.f32.mrb[84].mxu0  ;;  %v2880_v60 = vpop.f32.mrb[92].mxu1 }
 0xf80   :  { %v2887_v29 = vadd.f32 %v2839_v19, %v1795_v43  ;;  %v2889_v62 = vadd.f32 %v2880_v60, %v1868_v32  ;;  %v2841_v7 = vpop.f32.mrb[85].mxu0  ;;  %v2882_v26 = vpop.f32.mrb[93].mxu1 }
 0xf81   :  { %v2888_v30 = vadd.f32 %v2841_v7, %v1797_v9  ;;  %v2890_v56 = vadd.f32 %v2882_v26, %v1870_v54  ;;  %v2843_v16 = vpop.f32.mrb[86].mxu0  ;;  %v2884_v48 = vpop.f32.mrb[94].mxu1 }
 0xf82   :  { %v3359_v57 = vmul.f32 -1.442695, %v2887_v29  ;;  %v2844_v18 = vpop.f32.mrb[87].mxu0  ;;  %v2885_v14 = vpop.f32.mrb[95].mxu1  ;;  %v3361_v21 = vmul.f32 -1.442695, %v2889_v62 }
 0xf83   :  { %v3360_v24 = vmul.f32 -1.442695, %v2888_v30 }
 0xf84   :  { %3803 = vpow2.f32 %v3359_v57  ;;  %v3365_v57 = vld [vmem:[%s5364_s8] ss:$0 sm:$0xff] }
 0xf85   :  { %3805 = vpow2.f32 %v3360_v24 }
 0xf86   :  { %3807 = vtanh.f32 %v2890_v56 }
 0xf87   :  { %3809 = vpow2.f32 %v3361_v21 }
 0xf8e   :  { %v3804_v10 = vpop.eup %3803 }
 0xf8f   :  { %v2900_v33 = vadd.f32 1.0, %v3804_v10  ;;  %v3806_v34 = vpop.eup %3805 }
 0xf90   :  { %v2901_v35 = vadd.f32 1.0, %v3806_v34  ;;  %v3808_v36 = vpop.eup %3807 }
 0xf91   :  { %3811 = vrcp.f32 %v2900_v33  ;;  %v3810_v37 = vpop.eup %3809 }
 0xf92   :  { %3813 = vrcp.f32 %v2901_v35  ;;  %v2902_v59 = vadd.f32 1.0, %v3810_v37 }
 0xf94   :  { %3815 = vrcp.f32 %v2902_v59 }
 0xf9b   :  { %v3812_v38 = vpop.eup %3811 }
 0xf9c   :  { %v2911_v51 = vmul.f32 %v3812_v38, %v3808_v36  ;;  %v3814_v27 = vpop.eup %3813 }
 0xf9d   :  { %v2910_v15 = vmul.f32 %v3814_v27, %v5226_v4  ;;  %v5461_v4 = vld [vmem:[#allocation34_spill] sm:$0xff] }
 0xf9e   :  { %v3816_v3 = vpop.eup %3815  ;;  %v1872_v58 = vadd.f32 %v5461_v4, %v4896_v20 }
 0xf9f   :  { %v5277_v1 = vadd.f32 %v2911_v51, %v2910_v15 }
 0xfa1   :  { %3817 = vtanh.f32 %v5277_v1 }
 0xfab   :  { %v3818_v39 = vpop.eup %3817 }
 0xfac   :  { %v5280_v53 = vmul.f32 %v3818_v39, %v3816_v3 }
 0xfae   :  { %v2916_v13 = vpack.c.bf16 %v5280_v53, %v5280_v53 }
 0xfb0   :  { %2954 = vmatmul.mubr.bf16.vlgmr.msra.gmra.mrb[88].mxu0 %v2916_v13  ;;  %2995 = vmatmul.mubr.bf16.vlgmr.msra.gmra.mrb[96].mxu1 %v2916_v13 }
 0xfb1   :  { %3387 = vmatpush3.bf16.msra.mxu0 %v3571_v42  ;;  %3402 = vmatprep.mubr.bf16.mxu0 %v3044_v55  ;;  %v5463_v42 = vld [vmem:[#allocation35_spill] sm:$0xff] }
 0xfb2   :  { %3388 = vmatprep.subr.bf16.mxu0 %v3572_v50  ;;  %v1874_v63 = vadd.f32 %v5463_v42, %v4908_v12 }
 0xfb5   :  { %3389 = vmatpush3.bf16.msra.mxu0 %v3572_v50 }
 0xfb6   :  { %3390 = vmatprep.subr.bf16.mxu0 %v3573_v49 }
 0xfb9   :  { %3391 = vmatpush3.bf16.msra.mxu0 %v3573_v49 }
 0xfba   :  { %3392 = vmatprep.subr.bf16.mxu0 %v3574_v40 }
 0xfbd   :  { %3393 = vmatpush3.bf16.msra.mxu0 %v3574_v40 }
 0xfbe   :  { %3394 = vmatprep.subr.bf16.mxu0 %v3575_v8 }
 0xfc1   :  { %3395 = vmatpush3.bf16.msra.mxu0 %v3575_v8 }
 0xfc2   :  { %3396 = vmatprep.subr.bf16.mxu0 %v3576_v17 }
 0xfc5   :  { %3397 = vmatpush3.bf16.msra.mxu0 %v3576_v17 }
 0xfc6   :  { %3398 = vmatprep.subr.bf16.mxu0 %v3577_v25 }
 0xfc9   :  { %3399 = vmatpush3.bf16.msra.mxu0 %v3577_v25 }
 0xfca   :  { %3400 = vmatprep.subr.bf16.mxu0 %v3578_v52 }
 0xfcd   :  { %3401 = vmatpush3.bf16.msra.mxu0 %v3578_v52 }
 0xfd0   :  { %3403 = vmatmul.mubr.bf16.vlgmr.msra.gmra.mrb[92].mxu0 %v3045_v41 }
 0xfd1   :  { %3406 = vmatprep.mubr.bf16.mxu0 %v3046_v46 }
0x1083   :  { %v2955_v43 = vpop.f32.mrb[88].mxu0  ;;  %v2996_v45 = vpop.f32.mrb[96].mxu1 }
0x1084   :  { %v3003_v47 = vadd.f32 %v2955_v43, %v1799_v0  ;;  %v3005_v28 = vadd.f32 %v2996_v45, %v1872_v58  ;;  %v2957_v32 = vpop.f32.mrb[89].mxu0  ;;  %v2998_v6 = vpop.f32.mrb[97].mxu1 }
0x1085   :  { %v3004_v61 = vadd.f32 %v2957_v32, %v1801_v2  ;;  %v3006_v5 = vadd.f32 %v2998_v6, %v1874_v63  ;;  %v2959_v9 = vpop.f32.mrb[90].mxu0  ;;  %v3000_v23 = vpop.f32.mrb[98].mxu1 }
0x1086   :  { %v3362_v22 = vmul.f32 -1.442695, %v3003_v47  ;;  %v2960_v54 = vpop.f32.mrb[91].mxu0  ;;  %v3001_v19 = vpop.f32.mrb[99].mxu1  ;;  %v3364_v31 = vmul.f32 -1.442695, %v3005_v28 }
0x1087   :  { %v3363_v20 = vmul.f32 -1.442695, %v3004_v61 }
0x1088   :  { %3819 = vpow2.f32 %v3362_v22 }
0x1089   :  { %3821 = vpow2.f32 %v3363_v20 }
0x108a   :  { %3823 = vtanh.f32 %v3006_v5 }
0x108b   :  { %3825 = vpow2.f32 %v3364_v31 }
0x1092   :  { %v3820_v60 = vpop.eup %3819 }
0x1093   :  { %v3016_v29 = vadd.f32 1.0, %v3820_v60  ;;  %v3822_v12 = vpop.eup %3821 }
0x1094   :  { %v3017_v62 = vadd.f32 1.0, %v3822_v12  ;;  %v3824_v7 = vpop.eup %3823 }
0x1095   :  { %3827 = vrcp.f32 %v3016_v29  ;;  %v3826_v26 = vpop.eup %3825 }
0x1096   :  { %3829 = vrcp.f32 %v3017_v62  ;;  %v3018_v48 = vadd.f32 1.0, %v3826_v26 }
0x1098   :  { %3831 = vrcp.f32 %v3018_v48 }
0x109f   :  { %v3828_v30 = vpop.eup %3827 }
0x10a0   :  { %v3027_v56 = vmul.f32 %v3828_v30, %v3824_v7  ;;  %v3830_v16 = vpop.eup %3829 }
0x10a1   :  { %v3026_v18 = vmul.f32 %v3830_v16, %v5277_v1 }
0x10a2   :  { %v3832_v38 = vpop.eup %3831 }
0x10a3   :  { %v3404_v14 = vpop.f32.mrb[92].mxu0  ;;  %v3028_v24 = vadd.f32 %v3027_v56, %v3026_v18 }
0x10a4   :  { %v3162_v21 = vadd.f32 %v3404_v14, %v3365_v57  ;;  %v3153_v10 = vpop.f32.mrb[93].mxu0 }
0x10a5   :  { %v3154_v33 = vadd.f32 %v3365_v57, %v3153_v10  ;;  %v3405_v34 = vpop.f32.mrb[94].mxu0  ;;  %3833 = vtanh.f32 %v3028_v24 }
0x10a6   :  { %3186 = vst.msk [vmem:[%s5365_s9 + $0x10] sm:$0xff] %vm156_vm0, %v3162_v21  ;;  %v3165_v35 = vadd.f32 %v3405_v34, %v3365_v57  ;;  %v3156_v36 = vpop.f32.mrb[95].mxu0 }
0x10a7   :  { %3184 = vst.msk [vmem:[%s5365_s9] sm:$0xff] %vm156_vm0, %v3154_v33  ;;  %v3157_v37 = vadd.f32 %v3365_v57, %v3156_v36 }
0x10a8   :  { %3187 = vst.msk [vmem:[%s5365_s9 + $0x18] sm:$0xff] %vm156_vm0, %v3165_v35 }
0x10a9   :  { %3185 = vst.msk [vmem:[%s5365_s9 + $0x8] sm:$0xff] %vm156_vm0, %v3157_v37 }
0x10af   :  { %v3834_v51 = vpop.eup %3833 }
0x10b0   :  { %v3030_v27 = vmul.f32 %v3834_v51, %v3832_v38 }
0x10b2   :  { %v3047_v59 = vpack.c.bf16 %v3030_v27, %v5280_v53 }
0x10b4   :  { %3407 = vmatmul.mubr.bf16.gmra.mrb[96].mxu0 %v3047_v59 }
0x1187   :  { %v3408_v15 = vpop.f32.mrb[96].mxu0 }
0x1188   :  { %v3178_v1 = vadd.f32 %v3408_v15, %v3365_v57  ;;  %v3169_v3 = vpop.f32.mrb[97].mxu0 }
0x1189   :  { %v3170_v39 = vadd.f32 %v3365_v57, %v3169_v3  ;;  %v3409_v13 = vpop.f32.mrb[98].mxu0 }
0x118a   :  { %3190 = vst.msk [vmem:[%s5365_s9 + $0x30] sm:$0xff] %vm156_vm0, %v3178_v1  ;;  %v3181_v50 = vadd.f32 %v3409_v13, %v3365_v57  ;;  %v3172_v55 = vpop.f32.mrb[99].mxu0 }
0x118b   :  { %3188 = vst.msk [vmem:[%s5365_s9 + $0x20] sm:$0xff] %vm156_vm0, %v3170_v39  ;;  %v3173_v49 = vadd.f32 %v3365_v57, %v3172_v55 }
0x118c   :  { %3191 = vst.msk [vmem:[%s5365_s9 + $0x38] sm:$0xff] %vm156_vm0, %v3181_v50 }
0x118d   :  { %3189 = vst.msk [vmem:[%s5365_s9 + $0x28] sm:$0xff] %vm156_vm0, %v3173_v49 }
0x118e   :  { %3196 = vsyncpa [#allocation7], 1 }
0x118f   :  { %3197 = vsyncpa [#allocation9], 1 }

</bundles_post_ra>
